<compile_context>
chip_gen: v6e
topology: v6e:2x2x1
jax: 0.10.0
libtpu: 0.0.40
codegen_flags: <defaults>
</compile_context>

<pallas_src>
import math

import jax
import jax.numpy as jnp
from jax.experimental import pallas as pl
from jax.experimental.pallas import tpu as pltpu

INPUT_DIM = 98
OUT_DIM = 2
PAD_IN = 128          # lane-padded input feature dim
N_L2 = 10             # number of identical 128x128 layer2 Denses
NUM_W = 9             # streamed weight tensors (layer2 weights are stacked)


# ----------------------------------------------------------------------------
# Model description / parameter init (PyTorch-style uniform(-1/sqrt(fan_in), .))
# ----------------------------------------------------------------------------
def build_layer_dims(input_dim=INPUT_DIM, out_dim=OUT_DIM):
    """(din, dout, relu) for every Linear in BasicModel(model_id=7)."""
    layers = []
    size = 1024
    layers.append((input_dim, size, True))            # in_: Dense(98, 1024)
    s = size
    for _ in range(3):                                # layer1: d_factor=2
        ns = int(s // 2)
        layers.append((s, ns, True))
        s = ns
    for _ in range(N_L2):                             # layer2: d_factor=1
        layers.append((s, s, True))
    for _ in range(3):                                # layer3: d_factor=1/2
        ns = int(s // (1 / 2))
        layers.append((s, ns, True))
        s = ns
    layers.append((s, out_dim, False))                # out: nn.Linear(1024, 2)
    return layers


LAYER_DIMS = build_layer_dims(INPUT_DIM, OUT_DIM)     # 18 Linear layers
LAYER_DOUTS = tuple(d for (_, d, _) in LAYER_DIMS)

_offs, _o = [], 0
for _d in LAYER_DOUTS:
    _offs.append(_o)
    _o += _d
BIAS_OFFSETS = tuple(_offs)                           # all multiples of 128
BIAS_TOTAL = _o                                       # 4994
BIAS_PAD = ((BIAS_TOTAL + 127) // 128) * 128          # 5120


def init_params(layer_dims, key):
    params = []
    for (din, dout, _) in layer_dims:
        key, kw, kb = jax.random.split(key, 3)
        bound = 1.0 / math.sqrt(din)
        w = jax.random.uniform(kw, (din, dout), jnp.float32, -bound, bound)
        b = jax.random.uniform(kb, (1, dout), jnp.float32, -bound, bound)
        params.append((w, b))
    return params


def prepare_fused_params(params):
    """Returns (weights, b_flat).

    weights: 9 bf16 HBM tensors in kernel order:
      w0 (128,1024)  w1a (1024,512)  w1b (512,256)  w1c (256,128)
      w2 (10,128,128) stacked layer2  w3a (128,256) w3b (256,512) w3c (512,1024)
      wo (1024,2)  -- final projection, left unpadded.
    b_flat: all 18 biases packed into one (1, 5120) f32 buffer.
    """
    (w0, _) = params[0]
    w0p = jnp.zeros((PAD_IN, w0.shape[1]), jnp.float32).at[: w0.shape[0]].set(w0)

    weights = [w0p.astype(jnp.bfloat16)]
    for (w, _) in params[1:4]:                                   # layer1
        weights.append(w.astype(jnp.bfloat16))
    w2 = jnp.stack([w for (w, _) in params[4:14]])               # layer2 stacked
    weights.append(w2.astype(jnp.bfloat16))
    for (w, _) in params[14:17]:                                 # layer3
        weights.append(w.astype(jnp.bfloat16))
    (wo, _) = params[17]
    weights.append(wo.astype(jnp.bfloat16))                      # (1024, 2)

    b_flat = jnp.zeros((1, BIAS_PAD), jnp.float32)
    for (_, b), off, dout in zip(params, BIAS_OFFSETS, LAYER_DOUTS):
        b_flat = b_flat.at[0, off:off + dout].set(b[0])
    return weights, b_flat


# ----------------------------------------------------------------------------
# Fused kernel: weights streamed HBM->VMEM with per-layer waits, compute
# overlaps the in-flight DMAs of later layers.
# ----------------------------------------------------------------------------
def _fused_mlp_kernel(x_ref, b_ref,
                      w0_h, w1a_h, w1b_h, w1c_h, w2_h, w3a_h, w3b_h, w3c_h, wo_h,
                      o_ref,
                      w0_v, w1a_v, w1b_v, w1c_v, w2_v, w3a_v, w3b_v, w3c_v, wo_v,
                      sems):
    hbm = (w0_h, w1a_h, w1b_h, w1c_h, w2_h, w3a_h, w3b_h, w3c_h, wo_h)
    vmem = (w0_v, w1a_v, w1b_v, w1c_v, w2_v, w3a_v, w3b_v, w3c_v, wo_v)

    # Issue every weight DMA up-front (dedicated buffer + semaphore each); the
    # DMA engine drains them in compute order while the MXU works.
    copies = []
    for idx in range(NUM_W):
        cp = pltpu.make_async_copy(hbm[idx], vmem[idx], sems.at[idx])
        cp.start()
        copies.append(cp)

    def dense(y, w, layer_idx, relu=True):
        off = BIAS_OFFSETS[layer_idx]
        dout = LAYER_DOUTS[layer_idx]
        z = jnp.dot(y, w, preferred_element_type=jnp.float32)
        z = z + b_ref[:, off:off + dout]
        if relu:
            return jnp.maximum(z, 0.0).astype(jnp.bfloat16)
        return z

    copies[0].wait()
    y = dense(x_ref[...].astype(jnp.bfloat16), w0_v[...], 0)     # (B, 1024)

    copies[1].wait()
    y = dense(y, w1a_v[...], 1)                                  # (B, 512)
    copies[2].wait()
    y = dense(y, w1b_v[...], 2)                                  # (B, 256)
    copies[3].wait()
    y = dense(y, w1c_v[...], 3)                                  # (B, 128)

    copies[4].wait()
    for i in range(N_L2):                                        # 10x (B,128)
        y = dense(y, w2_v[i], 4 + i)

    copies[5].wait()
    y = dense(y, w3a_v[...], 14)                                 # (B, 256)
    copies[6].wait()
    y = dense(y, w3b_v[...], 15)                                 # (B, 512)
    copies[7].wait()
    y = dense(y, w3c_v[...], 16)                                 # (B, 1024)

    copies[8].wait()
    z = dense(y, wo_v[...], 17, relu=False)                      # (B, 2) f32
    o_ref[...] = z.astype(o_ref.dtype)


@jax.jit
def _fused_forward(x_pad, b_flat, *weights):
    bp = x_pad.shape[0]
    vmem_spec = pl.BlockSpec(memory_space=pltpu.MemorySpace.VMEM)
    hbm_spec = pl.BlockSpec(memory_space=pl.ANY)
    in_specs = [vmem_spec, vmem_spec] + [hbm_spec] * len(weights)
    scratch_shapes = ([pltpu.VMEM(w.shape, jnp.bfloat16) for w in weights]
                      + [pltpu.SemaphoreType.DMA((len(weights),))])
    return pl.pallas_call(
        _fused_mlp_kernel,
        out_shape=jax.ShapeDtypeStruct((bp, OUT_DIM), jnp.float32),
        in_specs=in_specs,
        out_specs=vmem_spec,
        scratch_shapes=scratch_shapes,
    )(x_pad, b_flat, *weights)


def basic_model_forward(x, weights, b_flat):
    """x: (B, 98) f32 -> (B, 2) f32, single fused Pallas kernel launch."""
    B, din = x.shape
    bp = max(8, ((B + 7) // 8) * 8)                   # sublane-align batch
    x_pad = jnp.zeros((bp, PAD_IN), jnp.float32).at[:B, :din].set(x)
    out = _fused_forward(x_pad, b_flat, *weights)
    return out[:B]


# ----------------------------------------------------------------------------
# Pure-JAX reference mirroring the kernel's bf16-weight / f32-accumulate math.
# ----------------------------------------------------------------------------
def basic_model_reference(x, params, layer_dims):
    y = x
    for (w, b), (_, _, relu) in zip(params, layer_dims):
        y = jnp.dot(y.astype(jnp.bfloat16), w.astype(jnp.bfloat16),
                    preferred_element_type=jnp.float32) + b
        if relu:
            y = jnp.maximum(y, 0.0)
    return y


if __name__ == "__main__":
    key = jax.random.PRNGKey(0)
    key, kx = jax.random.split(key)

    B = 8
    params = init_params(LAYER_DIMS, key)
    weights, b_flat = prepare_fused_params(params)

    x = jax.random.normal(kx, (B, INPUT_DIM), jnp.float32)

    out = jax.block_until_ready(basic_model_forward(x, weights, b_flat))

    ref = basic_model_reference(x, params, LAYER_DIMS)
    assert out.shape == (B, OUT_DIM)
    assert jnp.allclose(out, ref, atol=2e-3, rtol=2e-3), \
        "Pallas output mismatch vs reference"

    print("KERNEL_OK")
</pallas_src>

<mosaic_0001>
module attributes {stable_mosaic.version = 11 : i64} {
  func.func @_fused_mlp_kernel(%arg0: memref<8x128xf32, #tpu.memory_space<vmem>>, %arg1: memref<1x5120xf32, #tpu.memory_space<vmem>>, %arg2: memref<128x1024xbf16, #tpu.memory_space<any>>, %arg3: memref<1024x512xbf16, #tpu.memory_space<any>>, %arg4: memref<512x256xbf16, #tpu.memory_space<any>>, %arg5: memref<256x128xbf16, #tpu.memory_space<any>>, %arg6: memref<10x128x128xbf16, #tpu.memory_space<any>>, %arg7: memref<128x256xbf16, #tpu.memory_space<any>>, %arg8: memref<256x512xbf16, #tpu.memory_space<any>>, %arg9: memref<512x1024xbf16, #tpu.memory_space<any>>, %arg10: memref<1024x2xbf16, #tpu.memory_space<any>>, %arg11: memref<8x2xf32, #tpu.memory_space<vmem>>, %arg12: memref<128x1024xbf16, #tpu.memory_space<vmem>>, %arg13: memref<1024x512xbf16, #tpu.memory_space<vmem>>, %arg14: memref<512x256xbf16, #tpu.memory_space<vmem>>, %arg15: memref<256x128xbf16, #tpu.memory_space<vmem>>, %arg16: memref<10x128x128xbf16, #tpu.memory_space<vmem>>, %arg17: memref<128x256xbf16, #tpu.memory_space<vmem>>, %arg18: memref<256x512xbf16, #tpu.memory_space<vmem>>, %arg19: memref<512x1024xbf16, #tpu.memory_space<vmem>>, %arg20: memref<1024x2xbf16, #tpu.memory_space<vmem>>, %arg21: memref<9x!tpu.dma_semaphore, #tpu.memory_space<semaphore_mem>>) attributes {dimension_semantics = [], scalar_prefetch = 0 : i64, scratch_operands = 10 : i64, tpu.core_type = #tpu.core_type<tc>} {
    %c0_i32 = arith.constant 0 : i32
    %0 = tpu.memref_slice %arg21[%c0_i32] : memref<9x!tpu.dma_semaphore, #tpu.memory_space<semaphore_mem>> -> memref<1x!tpu.dma_semaphore, #tpu.memory_space<semaphore_mem>>
    %1 = tpu.memref_squeeze %0 : memref<1x!tpu.dma_semaphore, #tpu.memory_space<semaphore_mem>> -> memref<!tpu.dma_semaphore, #tpu.memory_space<semaphore_mem>>
    tpu.enqueue_dma source(%arg2 : memref<128x1024xbf16, #tpu.memory_space<any>>) target(%arg12 : memref<128x1024xbf16, #tpu.memory_space<vmem>>) target_semaphore(%1 : memref<!tpu.dma_semaphore, #tpu.memory_space<semaphore_mem>>)
    %c1_i32 = arith.constant 1 : i32
    %2 = tpu.memref_slice %arg21[%c1_i32] : memref<9x!tpu.dma_semaphore, #tpu.memory_space<semaphore_mem>> -> memref<1x!tpu.dma_semaphore, #tpu.memory_space<semaphore_mem>>
    %3 = tpu.memref_squeeze %2 : memref<1x!tpu.dma_semaphore, #tpu.memory_space<semaphore_mem>> -> memref<!tpu.dma_semaphore, #tpu.memory_space<semaphore_mem>>
    tpu.enqueue_dma source(%arg3 : memref<1024x512xbf16, #tpu.memory_space<any>>) target(%arg13 : memref<1024x512xbf16, #tpu.memory_space<vmem>>) target_semaphore(%3 : memref<!tpu.dma_semaphore, #tpu.memory_space<semaphore_mem>>)
    %c2_i32 = arith.constant 2 : i32
    %4 = tpu.memref_slice %arg21[%c2_i32] : memref<9x!tpu.dma_semaphore, #tpu.memory_space<semaphore_mem>> -> memref<1x!tpu.dma_semaphore, #tpu.memory_space<semaphore_mem>>
    %5 = tpu.memref_squeeze %4 : memref<1x!tpu.dma_semaphore, #tpu.memory_space<semaphore_mem>> -> memref<!tpu.dma_semaphore, #tpu.memory_space<semaphore_mem>>
    tpu.enqueue_dma source(%arg4 : memref<512x256xbf16, #tpu.memory_space<any>>) target(%arg14 : memref<512x256xbf16, #tpu.memory_space<vmem>>) target_semaphore(%5 : memref<!tpu.dma_semaphore, #tpu.memory_space<semaphore_mem>>)
    %c3_i32 = arith.constant 3 : i32
    %6 = tpu.memref_slice %arg21[%c3_i32] : memref<9x!tpu.dma_semaphore, #tpu.memory_space<semaphore_mem>> -> memref<1x!tpu.dma_semaphore, #tpu.memory_space<semaphore_mem>>
    %7 = tpu.memref_squeeze %6 : memref<1x!tpu.dma_semaphore, #tpu.memory_space<semaphore_mem>> -> memref<!tpu.dma_semaphore, #tpu.memory_space<semaphore_mem>>
    tpu.enqueue_dma source(%arg5 : memref<256x128xbf16, #tpu.memory_space<any>>) target(%arg15 : memref<256x128xbf16, #tpu.memory_space<vmem>>) target_semaphore(%7 : memref<!tpu.dma_semaphore, #tpu.memory_space<semaphore_mem>>)
    %c4_i32 = arith.constant 4 : i32
    %8 = tpu.memref_slice %arg21[%c4_i32] : memref<9x!tpu.dma_semaphore, #tpu.memory_space<semaphore_mem>> -> memref<1x!tpu.dma_semaphore, #tpu.memory_space<semaphore_mem>>
    %9 = tpu.memref_squeeze %8 : memref<1x!tpu.dma_semaphore, #tpu.memory_space<semaphore_mem>> -> memref<!tpu.dma_semaphore, #tpu.memory_space<semaphore_mem>>
    tpu.enqueue_dma source(%arg6 : memref<10x128x128xbf16, #tpu.memory_space<any>>) target(%arg16 : memref<10x128x128xbf16, #tpu.memory_space<vmem>>) target_semaphore(%9 : memref<!tpu.dma_semaphore, #tpu.memory_space<semaphore_mem>>)
    %c5_i32 = arith.constant 5 : i32
    %10 = tpu.memref_slice %arg21[%c5_i32] : memref<9x!tpu.dma_semaphore, #tpu.memory_space<semaphore_mem>> -> memref<1x!tpu.dma_semaphore, #tpu.memory_space<semaphore_mem>>
    %11 = tpu.memref_squeeze %10 : memref<1x!tpu.dma_semaphore, #tpu.memory_space<semaphore_mem>> -> memref<!tpu.dma_semaphore, #tpu.memory_space<semaphore_mem>>
    tpu.enqueue_dma source(%arg7 : memref<128x256xbf16, #tpu.memory_space<any>>) target(%arg17 : memref<128x256xbf16, #tpu.memory_space<vmem>>) target_semaphore(%11 : memref<!tpu.dma_semaphore, #tpu.memory_space<semaphore_mem>>)
    %c6_i32 = arith.constant 6 : i32
    %12 = tpu.memref_slice %arg21[%c6_i32] : memref<9x!tpu.dma_semaphore, #tpu.memory_space<semaphore_mem>> -> memref<1x!tpu.dma_semaphore, #tpu.memory_space<semaphore_mem>>
    %13 = tpu.memref_squeeze %12 : memref<1x!tpu.dma_semaphore, #tpu.memory_space<semaphore_mem>> -> memref<!tpu.dma_semaphore, #tpu.memory_space<semaphore_mem>>
    tpu.enqueue_dma source(%arg8 : memref<256x512xbf16, #tpu.memory_space<any>>) target(%arg18 : memref<256x512xbf16, #tpu.memory_space<vmem>>) target_semaphore(%13 : memref<!tpu.dma_semaphore, #tpu.memory_space<semaphore_mem>>)
    %c7_i32 = arith.constant 7 : i32
    %14 = tpu.memref_slice %arg21[%c7_i32] : memref<9x!tpu.dma_semaphore, #tpu.memory_space<semaphore_mem>> -> memref<1x!tpu.dma_semaphore, #tpu.memory_space<semaphore_mem>>
    %15 = tpu.memref_squeeze %14 : memref<1x!tpu.dma_semaphore, #tpu.memory_space<semaphore_mem>> -> memref<!tpu.dma_semaphore, #tpu.memory_space<semaphore_mem>>
    tpu.enqueue_dma source(%arg9 : memref<512x1024xbf16, #tpu.memory_space<any>>) target(%arg19 : memref<512x1024xbf16, #tpu.memory_space<vmem>>) target_semaphore(%15 : memref<!tpu.dma_semaphore, #tpu.memory_space<semaphore_mem>>)
    %c8_i32 = arith.constant 8 : i32
    %16 = tpu.memref_slice %arg21[%c8_i32] : memref<9x!tpu.dma_semaphore, #tpu.memory_space<semaphore_mem>> -> memref<1x!tpu.dma_semaphore, #tpu.memory_space<semaphore_mem>>
    %17 = tpu.memref_squeeze %16 : memref<1x!tpu.dma_semaphore, #tpu.memory_space<semaphore_mem>> -> memref<!tpu.dma_semaphore, #tpu.memory_space<semaphore_mem>>
    tpu.enqueue_dma source(%arg10 : memref<1024x2xbf16, #tpu.memory_space<any>>) target(%arg20 : memref<1024x2xbf16, #tpu.memory_space<vmem>>) target_semaphore(%17 : memref<!tpu.dma_semaphore, #tpu.memory_space<semaphore_mem>>)
    %c0_i32_0 = arith.constant 0 : i32
    %18 = tpu.memref_slice %arg21[%c0_i32_0] : memref<9x!tpu.dma_semaphore, #tpu.memory_space<semaphore_mem>> -> memref<1x!tpu.dma_semaphore, #tpu.memory_space<semaphore_mem>>
    %19 = tpu.memref_squeeze %18 : memref<1x!tpu.dma_semaphore, #tpu.memory_space<semaphore_mem>> -> memref<!tpu.dma_semaphore, #tpu.memory_space<semaphore_mem>>
    tpu.wait_dma2 semaphore(%19 : memref<!tpu.dma_semaphore, #tpu.memory_space<semaphore_mem>>) src(%arg2 : memref<128x1024xbf16, #tpu.memory_space<any>>) dst(%arg12 : memref<128x1024xbf16, #tpu.memory_space<vmem>>)
    %c0 = arith.constant 0 : index
    %c0_1 = arith.constant 0 : index
    %20 = vector.load %arg0[%c0, %c0_1] : memref<8x128xf32, #tpu.memory_space<vmem>>, vector<8x128xf32>
    %21 = arith.truncf %20 : vector<8x128xf32> to vector<8x128xbf16>
    %c0_2 = arith.constant 0 : index
    %c0_3 = arith.constant 0 : index
    %22 = vector.load %arg12[%c0_2, %c0_3] : memref<128x1024xbf16, #tpu.memory_space<vmem>>, vector<128x1024xbf16>
    %cst = arith.constant dense<0.000000e+00> : vector<8x1024xf32>
    %23 = tpu.matmul %21, %22, %cst {dimension_numbers = #tpu.dot_dimension_numbers<[1], [0], [0], [1], [0, 0, 1, 1], [], []>} : vector<8x128xbf16>, vector<128x1024xbf16>, vector<8x1024xf32> -> vector<8x1024xf32>
    %c0_4 = arith.constant 0 : index
    %c0_5 = arith.constant 0 : index
    %24 = vector.load %arg1[%c0_4, %c0_5] : memref<1x5120xf32, #tpu.memory_space<vmem>>, vector<1x1024xf32>
    %25 = vector.broadcast %24 : vector<1x1024xf32> to vector<8x1024xf32>
    %26 = arith.addf %23, %25 : vector<8x1024xf32>
    %cst_6 = arith.constant 0.000000e+00 : f32
    %27 = vector.broadcast %cst_6 : f32 to vector<8x1024xf32>
    %28 = arith.maximumf %26, %27 : vector<8x1024xf32>
    %29 = arith.truncf %28 : vector<8x1024xf32> to vector<8x1024xbf16>
    %c1_i32_7 = arith.constant 1 : i32
    %30 = tpu.memref_slice %arg21[%c1_i32_7] : memref<9x!tpu.dma_semaphore, #tpu.memory_space<semaphore_mem>> -> memref<1x!tpu.dma_semaphore, #tpu.memory_space<semaphore_mem>>
    %31 = tpu.memref_squeeze %30 : memref<1x!tpu.dma_semaphore, #tpu.memory_space<semaphore_mem>> -> memref<!tpu.dma_semaphore, #tpu.memory_space<semaphore_mem>>
    tpu.wait_dma2 semaphore(%31 : memref<!tpu.dma_semaphore, #tpu.memory_space<semaphore_mem>>) src(%arg3 : memref<1024x512xbf16, #tpu.memory_space<any>>) dst(%arg13 : memref<1024x512xbf16, #tpu.memory_space<vmem>>)
    %c0_8 = arith.constant 0 : index
    %c0_9 = arith.constant 0 : index
    %32 = vector.load %arg13[%c0_8, %c0_9] : memref<1024x512xbf16, #tpu.memory_space<vmem>>, vector<1024x512xbf16>
    %cst_10 = arith.constant dense<0.000000e+00> : vector<8x512xf32>
    %33 = tpu.matmul %29, %32, %cst_10 {dimension_numbers = #tpu.dot_dimension_numbers<[1], [0], [0], [1], [0, 0, 1, 1], [], []>} : vector<8x1024xbf16>, vector<1024x512xbf16>, vector<8x512xf32> -> vector<8x512xf32>
    %c0_11 = arith.constant 0 : index
    %c1024 = arith.constant 1024 : index
    %34 = vector.load %arg1[%c0_11, %c1024] : memref<1x5120xf32, #tpu.memory_space<vmem>>, vector<1x512xf32>
    %35 = vector.broadcast %34 : vector<1x512xf32> to vector<8x512xf32>
    %36 = arith.addf %33, %35 : vector<8x512xf32>
    %cst_12 = arith.constant 0.000000e+00 : f32
    %37 = vector.broadcast %cst_12 : f32 to vector<8x512xf32>
    %38 = arith.maximumf %36, %37 : vector<8x512xf32>
    %39 = arith.truncf %38 : vector<8x512xf32> to vector<8x512xbf16>
    %c2_i32_13 = arith.constant 2 : i32
    %40 = tpu.memref_slice %arg21[%c2_i32_13] : memref<9x!tpu.dma_semaphore, #tpu.memory_space<semaphore_mem>> -> memref<1x!tpu.dma_semaphore, #tpu.memory_space<semaphore_mem>>
    %41 = tpu.memref_squeeze %40 : memref<1x!tpu.dma_semaphore, #tpu.memory_space<semaphore_mem>> -> memref<!tpu.dma_semaphore, #tpu.memory_space<semaphore_mem>>
    tpu.wait_dma2 semaphore(%41 : memref<!tpu.dma_semaphore, #tpu.memory_space<semaphore_mem>>) src(%arg4 : memref<512x256xbf16, #tpu.memory_space<any>>) dst(%arg14 : memref<512x256xbf16, #tpu.memory_space<vmem>>)
    %c0_14 = arith.constant 0 : index
    %c0_15 = arith.constant 0 : index
    %42 = vector.load %arg14[%c0_14, %c0_15] : memref<512x256xbf16, #tpu.memory_space<vmem>>, vector<512x256xbf16>
    %cst_16 = arith.constant dense<0.000000e+00> : vector<8x256xf32>
    %43 = tpu.matmul %39, %42, %cst_16 {dimension_numbers = #tpu.dot_dimension_numbers<[1], [0], [0], [1], [0, 0, 1, 1], [], []>} : vector<8x512xbf16>, vector<512x256xbf16>, vector<8x256xf32> -> vector<8x256xf32>
    %c0_17 = arith.constant 0 : index
    %c1536 = arith.constant 1536 : index
    %44 = vector.load %arg1[%c0_17, %c1536] : memref<1x5120xf32, #tpu.memory_space<vmem>>, vector<1x256xf32>
    %45 = vector.broadcast %44 : vector<1x256xf32> to vector<8x256xf32>
    %46 = arith.addf %43, %45 : vector<8x256xf32>
    %cst_18 = arith.constant 0.000000e+00 : f32
    %47 = vector.broadcast %cst_18 : f32 to vector<8x256xf32>
    %48 = arith.maximumf %46, %47 : vector<8x256xf32>
    %49 = arith.truncf %48 : vector<8x256xf32> to vector<8x256xbf16>
    %c3_i32_19 = arith.constant 3 : i32
    %50 = tpu.memref_slice %arg21[%c3_i32_19] : memref<9x!tpu.dma_semaphore, #tpu.memory_space<semaphore_mem>> -> memref<1x!tpu.dma_semaphore, #tpu.memory_space<semaphore_mem>>
    %51 = tpu.memref_squeeze %50 : memref<1x!tpu.dma_semaphore, #tpu.memory_space<semaphore_mem>> -> memref<!tpu.dma_semaphore, #tpu.memory_space<semaphore_mem>>
    tpu.wait_dma2 semaphore(%51 : memref<!tpu.dma_semaphore, #tpu.memory_space<semaphore_mem>>) src(%arg5 : memref<256x128xbf16, #tpu.memory_space<any>>) dst(%arg15 : memref<256x128xbf16, #tpu.memory_space<vmem>>)
    %c0_20 = arith.constant 0 : index
    %c0_21 = arith.constant 0 : index
    %52 = vector.load %arg15[%c0_20, %c0_21] : memref<256x128xbf16, #tpu.memory_space<vmem>>, vector<256x128xbf16>
    %cst_22 = arith.constant dense<0.000000e+00> : vector<8x128xf32>
    %53 = tpu.matmul %49, %52, %cst_22 {dimension_numbers = #tpu.dot_dimension_numbers<[1], [0], [0], [1], [0, 0, 1, 1], [], []>} : vector<8x256xbf16>, vector<256x128xbf16>, vector<8x128xf32> -> vector<8x128xf32>
    %c0_23 = arith.constant 0 : index
    %c1792 = arith.constant 1792 : index
    %54 = vector.load %arg1[%c0_23, %c1792] : memref<1x5120xf32, #tpu.memory_space<vmem>>, vector<1x128xf32>
    %55 = vector.broadcast %54 : vector<1x128xf32> to vector<8x128xf32>
    %56 = arith.addf %53, %55 : vector<8x128xf32>
    %cst_24 = arith.constant 0.000000e+00 : f32
    %57 = vector.broadcast %cst_24 : f32 to vector<8x128xf32>
    %58 = arith.maximumf %56, %57 : vector<8x128xf32>
    %59 = arith.truncf %58 : vector<8x128xf32> to vector<8x128xbf16>
    %c4_i32_25 = arith.constant 4 : i32
    %60 = tpu.memref_slice %arg21[%c4_i32_25] : memref<9x!tpu.dma_semaphore, #tpu.memory_space<semaphore_mem>> -> memref<1x!tpu.dma_semaphore, #tpu.memory_space<semaphore_mem>>
    %61 = tpu.memref_squeeze %60 : memref<1x!tpu.dma_semaphore, #tpu.memory_space<semaphore_mem>> -> memref<!tpu.dma_semaphore, #tpu.memory_space<semaphore_mem>>
    tpu.wait_dma2 semaphore(%61 : memref<!tpu.dma_semaphore, #tpu.memory_space<semaphore_mem>>) src(%arg6 : memref<10x128x128xbf16, #tpu.memory_space<any>>) dst(%arg16 : memref<10x128x128xbf16, #tpu.memory_space<vmem>>)
    %c0_26 = arith.constant 0 : index
    %c0_27 = arith.constant 0 : index
    %c0_28 = arith.constant 0 : index
    %62 = vector.load %arg16[%c0_26, %c0_27, %c0_28] : memref<10x128x128xbf16, #tpu.memory_space<vmem>>, vector<1x128x128xbf16>
    %63 = vector.shape_cast %62 : vector<1x128x128xbf16> to vector<128x128xbf16>
    %cst_29 = arith.constant dense<0.000000e+00> : vector<8x128xf32>
    %64 = tpu.matmul %59, %63, %cst_29 {dimension_numbers = #tpu.dot_dimension_numbers<[1], [0], [0], [1], [0, 0, 1, 1], [], []>} : vector<8x128xbf16>, vector<128x128xbf16>, vector<8x128xf32> -> vector<8x128xf32>
    %c0_30 = arith.constant 0 : index
    %c1920 = arith.constant 1920 : index
    %65 = vector.load %arg1[%c0_30, %c1920] : memref<1x5120xf32, #tpu.memory_space<vmem>>, vector<1x128xf32>
    %66 = vector.broadcast %65 : vector<1x128xf32> to vector<8x128xf32>
    %67 = arith.addf %64, %66 : vector<8x128xf32>
    %cst_31 = arith.constant 0.000000e+00 : f32
    %68 = vector.broadcast %cst_31 : f32 to vector<8x128xf32>
    %69 = arith.maximumf %67, %68 : vector<8x128xf32>
    %70 = arith.truncf %69 : vector<8x128xf32> to vector<8x128xbf16>
    %c1 = arith.constant 1 : index
    %c0_32 = arith.constant 0 : index
    %c0_33 = arith.constant 0 : index
    %71 = vector.load %arg16[%c1, %c0_32, %c0_33] : memref<10x128x128xbf16, #tpu.memory_space<vmem>>, vector<1x128x128xbf16>
    %72 = vector.shape_cast %71 : vector<1x128x128xbf16> to vector<128x128xbf16>
    %cst_34 = arith.constant dense<0.000000e+00> : vector<8x128xf32>
    %73 = tpu.matmul %70, %72, %cst_34 {dimension_numbers = #tpu.dot_dimension_numbers<[1], [0], [0], [1], [0, 0, 1, 1], [], []>} : vector<8x128xbf16>, vector<128x128xbf16>, vector<8x128xf32> -> vector<8x128xf32>
    %c0_35 = arith.constant 0 : index
    %c2048 = arith.constant 2048 : index
    %74 = vector.load %arg1[%c0_35, %c2048] : memref<1x5120xf32, #tpu.memory_space<vmem>>, vector<1x128xf32>
    %75 = vector.broadcast %74 : vector<1x128xf32> to vector<8x128xf32>
    %76 = arith.addf %73, %75 : vector<8x128xf32>
    %cst_36 = arith.constant 0.000000e+00 : f32
    %77 = vector.broadcast %cst_36 : f32 to vector<8x128xf32>
    %78 = arith.maximumf %76, %77 : vector<8x128xf32>
    %79 = arith.truncf %78 : vector<8x128xf32> to vector<8x128xbf16>
    %c2 = arith.constant 2 : index
    %c0_37 = arith.constant 0 : index
    %c0_38 = arith.constant 0 : index
    %80 = vector.load %arg16[%c2, %c0_37, %c0_38] : memref<10x128x128xbf16, #tpu.memory_space<vmem>>, vector<1x128x128xbf16>
    %81 = vector.shape_cast %80 : vector<1x128x128xbf16> to vector<128x128xbf16>
    %cst_39 = arith.constant dense<0.000000e+00> : vector<8x128xf32>
    %82 = tpu.matmul %79, %81, %cst_39 {dimension_numbers = #tpu.dot_dimension_numbers<[1], [0], [0], [1], [0, 0, 1, 1], [], []>} : vector<8x128xbf16>, vector<128x128xbf16>, vector<8x128xf32> -> vector<8x128xf32>
    %c0_40 = arith.constant 0 : index
    %c2176 = arith.constant 2176 : index
    %83 = vector.load %arg1[%c0_40, %c2176] : memref<1x5120xf32, #tpu.memory_space<vmem>>, vector<1x128xf32>
    %84 = vector.broadcast %83 : vector<1x128xf32> to vector<8x128xf32>
    %85 = arith.addf %82, %84 : vector<8x128xf32>
    %cst_41 = arith.constant 0.000000e+00 : f32
    %86 = vector.broadcast %cst_41 : f32 to vector<8x128xf32>
    %87 = arith.maximumf %85, %86 : vector<8x128xf32>
    %88 = arith.truncf %87 : vector<8x128xf32> to vector<8x128xbf16>
    %c3 = arith.constant 3 : index
    %c0_42 = arith.constant 0 : index
    %c0_43 = arith.constant 0 : index
    %89 = vector.load %arg16[%c3, %c0_42, %c0_43] : memref<10x128x128xbf16, #tpu.memory_space<vmem>>, vector<1x128x128xbf16>
    %90 = vector.shape_cast %89 : vector<1x128x128xbf16> to vector<128x128xbf16>
    %cst_44 = arith.constant dense<0.000000e+00> : vector<8x128xf32>
    %91 = tpu.matmul %88, %90, %cst_44 {dimension_numbers = #tpu.dot_dimension_numbers<[1], [0], [0], [1], [0, 0, 1, 1], [], []>} : vector<8x128xbf16>, vector<128x128xbf16>, vector<8x128xf32> -> vector<8x128xf32>
    %c0_45 = arith.constant 0 : index
    %c2304 = arith.constant 2304 : index
    %92 = vector.load %arg1[%c0_45, %c2304] : memref<1x5120xf32, #tpu.memory_space<vmem>>, vector<1x128xf32>
    %93 = vector.broadcast %92 : vector<1x128xf32> to vector<8x128xf32>
    %94 = arith.addf %91, %93 : vector<8x128xf32>
    %cst_46 = arith.constant 0.000000e+00 : f32
    %95 = vector.broadcast %cst_46 : f32 to vector<8x128xf32>
    %96 = arith.maximumf %94, %95 : vector<8x128xf32>
    %97 = arith.truncf %96 : vector<8x128xf32> to vector<8x128xbf16>
    %c4 = arith.constant 4 : index
    %c0_47 = arith.constant 0 : index
    %c0_48 = arith.constant 0 : index
    %98 = vector.load %arg16[%c4, %c0_47, %c0_48] : memref<10x128x128xbf16, #tpu.memory_space<vmem>>, vector<1x128x128xbf16>
    %99 = vector.shape_cast %98 : vector<1x128x128xbf16> to vector<128x128xbf16>
    %cst_49 = arith.constant dense<0.000000e+00> : vector<8x128xf32>
    %100 = tpu.matmul %97, %99, %cst_49 {dimension_numbers = #tpu.dot_dimension_numbers<[1], [0], [0], [1], [0, 0, 1, 1], [], []>} : vector<8x128xbf16>, vector<128x128xbf16>, vector<8x128xf32> -> vector<8x128xf32>
    %c0_50 = arith.constant 0 : index
    %c2432 = arith.constant 2432 : index
    %101 = vector.load %arg1[%c0_50, %c2432] : memref<1x5120xf32, #tpu.memory_space<vmem>>, vector<1x128xf32>
    %102 = vector.broadcast %101 : vector<1x128xf32> to vector<8x128xf32>
    %103 = arith.addf %100, %102 : vector<8x128xf32>
    %cst_51 = arith.constant 0.000000e+00 : f32
    %104 = vector.broadcast %cst_51 : f32 to vector<8x128xf32>
    %105 = arith.maximumf %103, %104 : vector<8x128xf32>
    %106 = arith.truncf %105 : vector<8x128xf32> to vector<8x128xbf16>
    %c5 = arith.constant 5 : index
    %c0_52 = arith.constant 0 : index
    %c0_53 = arith.constant 0 : index
    %107 = vector.load %arg16[%c5, %c0_52, %c0_53] : memref<10x128x128xbf16, #tpu.memory_space<vmem>>, vector<1x128x128xbf16>
    %108 = vector.shape_cast %107 : vector<1x128x128xbf16> to vector<128x128xbf16>
    %cst_54 = arith.constant dense<0.000000e+00> : vector<8x128xf32>
    %109 = tpu.matmul %106, %108, %cst_54 {dimension_numbers = #tpu.dot_dimension_numbers<[1], [0], [0], [1], [0, 0, 1, 1], [], []>} : vector<8x128xbf16>, vector<128x128xbf16>, vector<8x128xf32> -> vector<8x128xf32>
    %c0_55 = arith.constant 0 : index
    %c2560 = arith.constant 2560 : index
    %110 = vector.load %arg1[%c0_55, %c2560] : memref<1x5120xf32, #tpu.memory_space<vmem>>, vector<1x128xf32>
    %111 = vector.broadcast %110 : vector<1x128xf32> to vector<8x128xf32>
    %112 = arith.addf %109, %111 : vector<8x128xf32>
    %cst_56 = arith.constant 0.000000e+00 : f32
    %113 = vector.broadcast %cst_56 : f32 to vector<8x128xf32>
    %114 = arith.maximumf %112, %113 : vector<8x128xf32>
    %115 = arith.truncf %114 : vector<8x128xf32> to vector<8x128xbf16>
    %c6 = arith.constant 6 : index
    %c0_57 = arith.constant 0 : index
    %c0_58 = arith.constant 0 : index
    %116 = vector.load %arg16[%c6, %c0_57, %c0_58] : memref<10x128x128xbf16, #tpu.memory_space<vmem>>, vector<1x128x128xbf16>
    %117 = vector.shape_cast %116 : vector<1x128x128xbf16> to vector<128x128xbf16>
    %cst_59 = arith.constant dense<0.000000e+00> : vector<8x128xf32>
    %118 = tpu.matmul %115, %117, %cst_59 {dimension_numbers = #tpu.dot_dimension_numbers<[1], [0], [0], [1], [0, 0, 1, 1], [], []>} : vector<8x128xbf16>, vector<128x128xbf16>, vector<8x128xf32> -> vector<8x128xf32>
    %c0_60 = arith.constant 0 : index
    %c2688 = arith.constant 2688 : index
    %119 = vector.load %arg1[%c0_60, %c2688] : memref<1x5120xf32, #tpu.memory_space<vmem>>, vector<1x128xf32>
    %120 = vector.broadcast %119 : vector<1x128xf32> to vector<8x128xf32>
    %121 = arith.addf %118, %120 : vector<8x128xf32>
    %cst_61 = arith.constant 0.000000e+00 : f32
    %122 = vector.broadcast %cst_61 : f32 to vector<8x128xf32>
    %123 = arith.maximumf %121, %122 : vector<8x128xf32>
    %124 = arith.truncf %123 : vector<8x128xf32> to vector<8x128xbf16>
    %c7 = arith.constant 7 : index
    %c0_62 = arith.constant 0 : index
    %c0_63 = arith.constant 0 : index
    %125 = vector.load %arg16[%c7, %c0_62, %c0_63] : memref<10x128x128xbf16, #tpu.memory_space<vmem>>, vector<1x128x128xbf16>
    %126 = vector.shape_cast %125 : vector<1x128x128xbf16> to vector<128x128xbf16>
    %cst_64 = arith.constant dense<0.000000e+00> : vector<8x128xf32>
    %127 = tpu.matmul %124, %126, %cst_64 {dimension_numbers = #tpu.dot_dimension_numbers<[1], [0], [0], [1], [0, 0, 1, 1], [], []>} : vector<8x128xbf16>, vector<128x128xbf16>, vector<8x128xf32> -> vector<8x128xf32>
    %c0_65 = arith.constant 0 : index
    %c2816 = arith.constant 2816 : index
    %128 = vector.load %arg1[%c0_65, %c2816] : memref<1x5120xf32, #tpu.memory_space<vmem>>, vector<1x128xf32>
    %129 = vector.broadcast %128 : vector<1x128xf32> to vector<8x128xf32>
    %130 = arith.addf %127, %129 : vector<8x128xf32>
    %cst_66 = arith.constant 0.000000e+00 : f32
    %131 = vector.broadcast %cst_66 : f32 to vector<8x128xf32>
    %132 = arith.maximumf %130, %131 : vector<8x128xf32>
    %133 = arith.truncf %132 : vector<8x128xf32> to vector<8x128xbf16>
    %c8 = arith.constant 8 : index
    %c0_67 = arith.constant 0 : index
    %c0_68 = arith.constant 0 : index
    %134 = vector.load %arg16[%c8, %c0_67, %c0_68] : memref<10x128x128xbf16, #tpu.memory_space<vmem>>, vector<1x128x128xbf16>
    %135 = vector.shape_cast %134 : vector<1x128x128xbf16> to vector<128x128xbf16>
    %cst_69 = arith.constant dense<0.000000e+00> : vector<8x128xf32>
    %136 = tpu.matmul %133, %135, %cst_69 {dimension_numbers = #tpu.dot_dimension_numbers<[1], [0], [0], [1], [0, 0, 1, 1], [], []>} : vector<8x128xbf16>, vector<128x128xbf16>, vector<8x128xf32> -> vector<8x128xf32>
    %c0_70 = arith.constant 0 : index
    %c2944 = arith.constant 2944 : index
    %137 = vector.load %arg1[%c0_70, %c2944] : memref<1x5120xf32, #tpu.memory_space<vmem>>, vector<1x128xf32>
    %138 = vector.broadcast %137 : vector<1x128xf32> to vector<8x128xf32>
    %139 = arith.addf %136, %138 : vector<8x128xf32>
    %cst_71 = arith.constant 0.000000e+00 : f32
    %140 = vector.broadcast %cst_71 : f32 to vector<8x128xf32>
    %141 = arith.maximumf %139, %140 : vector<8x128xf32>
    %142 = arith.truncf %141 : vector<8x128xf32> to vector<8x128xbf16>
    %c9 = arith.constant 9 : index
    %c0_72 = arith.constant 0 : index
    %c0_73 = arith.constant 0 : index
    %143 = vector.load %arg16[%c9, %c0_72, %c0_73] : memref<10x128x128xbf16, #tpu.memory_space<vmem>>, vector<1x128x128xbf16>
    %144 = vector.shape_cast %143 : vector<1x128x128xbf16> to vector<128x128xbf16>
    %cst_74 = arith.constant dense<0.000000e+00> : vector<8x128xf32>
    %145 = tpu.matmul %142, %144, %cst_74 {dimension_numbers = #tpu.dot_dimension_numbers<[1], [0], [0], [1], [0, 0, 1, 1], [], []>} : vector<8x128xbf16>, vector<128x128xbf16>, vector<8x128xf32> -> vector<8x128xf32>
    %c0_75 = arith.constant 0 : index
    %c3072 = arith.constant 3072 : index
    %146 = vector.load %arg1[%c0_75, %c3072] : memref<1x5120xf32, #tpu.memory_space<vmem>>, vector<1x128xf32>
    %147 = vector.broadcast %146 : vector<1x128xf32> to vector<8x128xf32>
    %148 = arith.addf %145, %147 : vector<8x128xf32>
    %cst_76 = arith.constant 0.000000e+00 : f32
    %149 = vector.broadcast %cst_76 : f32 to vector<8x128xf32>
    %150 = arith.maximumf %148, %149 : vector<8x128xf32>
    %151 = arith.truncf %150 : vector<8x128xf32> to vector<8x128xbf16>
    %c5_i32_77 = arith.constant 5 : i32
    %152 = tpu.memref_slice %arg21[%c5_i32_77] : memref<9x!tpu.dma_semaphore, #tpu.memory_space<semaphore_mem>> -> memref<1x!tpu.dma_semaphore, #tpu.memory_space<semaphore_mem>>
    %153 = tpu.memref_squeeze %152 : memref<1x!tpu.dma_semaphore, #tpu.memory_space<semaphore_mem>> -> memref<!tpu.dma_semaphore, #tpu.memory_space<semaphore_mem>>
    tpu.wait_dma2 semaphore(%153 : memref<!tpu.dma_semaphore, #tpu.memory_space<semaphore_mem>>) src(%arg7 : memref<128x256xbf16, #tpu.memory_space<any>>) dst(%arg17 : memref<128x256xbf16, #tpu.memory_space<vmem>>)
    %c0_78 = arith.constant 0 : index
    %c0_79 = arith.constant 0 : index
    %154 = vector.load %arg17[%c0_78, %c0_79] : memref<128x256xbf16, #tpu.memory_space<vmem>>, vector<128x256xbf16>
    %cst_80 = arith.constant dense<0.000000e+00> : vector<8x256xf32>
    %155 = tpu.matmul %151, %154, %cst_80 {dimension_numbers = #tpu.dot_dimension_numbers<[1], [0], [0], [1], [0, 0, 1, 1], [], []>} : vector<8x128xbf16>, vector<128x256xbf16>, vector<8x256xf32> -> vector<8x256xf32>
    %c0_81 = arith.constant 0 : index
    %c3200 = arith.constant 3200 : index
    %156 = vector.load %arg1[%c0_81, %c3200] : memref<1x5120xf32, #tpu.memory_space<vmem>>, vector<1x256xf32>
    %157 = vector.broadcast %156 : vector<1x256xf32> to vector<8x256xf32>
    %158 = arith.addf %155, %157 : vector<8x256xf32>
    %cst_82 = arith.constant 0.000000e+00 : f32
    %159 = vector.broadcast %cst_82 : f32 to vector<8x256xf32>
    %160 = arith.maximumf %158, %159 : vector<8x256xf32>
    %161 = arith.truncf %160 : vector<8x256xf32> to vector<8x256xbf16>
    %c6_i32_83 = arith.constant 6 : i32
    %162 = tpu.memref_slice %arg21[%c6_i32_83] : memref<9x!tpu.dma_semaphore, #tpu.memory_space<semaphore_mem>> -> memref<1x!tpu.dma_semaphore, #tpu.memory_space<semaphore_mem>>
    %163 = tpu.memref_squeeze %162 : memref<1x!tpu.dma_semaphore, #tpu.memory_space<semaphore_mem>> -> memref<!tpu.dma_semaphore, #tpu.memory_space<semaphore_mem>>
    tpu.wait_dma2 semaphore(%163 : memref<!tpu.dma_semaphore, #tpu.memory_space<semaphore_mem>>) src(%arg8 : memref<256x512xbf16, #tpu.memory_space<any>>) dst(%arg18 : memref<256x512xbf16, #tpu.memory_space<vmem>>)
    %c0_84 = arith.constant 0 : index
    %c0_85 = arith.constant 0 : index
    %164 = vector.load %arg18[%c0_84, %c0_85] : memref<256x512xbf16, #tpu.memory_space<vmem>>, vector<256x512xbf16>
    %cst_86 = arith.constant dense<0.000000e+00> : vector<8x512xf32>
    %165 = tpu.matmul %161, %164, %cst_86 {dimension_numbers = #tpu.dot_dimension_numbers<[1], [0], [0], [1], [0, 0, 1, 1], [], []>} : vector<8x256xbf16>, vector<256x512xbf16>, vector<8x512xf32> -> vector<8x512xf32>
    %c0_87 = arith.constant 0 : index
    %c3456 = arith.constant 3456 : index
    %166 = vector.load %arg1[%c0_87, %c3456] : memref<1x5120xf32, #tpu.memory_space<vmem>>, vector<1x512xf32>
    %167 = vector.broadcast %166 : vector<1x512xf32> to vector<8x512xf32>
    %168 = arith.addf %165, %167 : vector<8x512xf32>
    %cst_88 = arith.constant 0.000000e+00 : f32
    %169 = vector.broadcast %cst_88 : f32 to vector<8x512xf32>
    %170 = arith.maximumf %168, %169 : vector<8x512xf32>
    %171 = arith.truncf %170 : vector<8x512xf32> to vector<8x512xbf16>
    %c7_i32_89 = arith.constant 7 : i32
    %172 = tpu.memref_slice %arg21[%c7_i32_89] : memref<9x!tpu.dma_semaphore, #tpu.memory_space<semaphore_mem>> -> memref<1x!tpu.dma_semaphore, #tpu.memory_space<semaphore_mem>>
    %173 = tpu.memref_squeeze %172 : memref<1x!tpu.dma_semaphore, #tpu.memory_space<semaphore_mem>> -> memref<!tpu.dma_semaphore, #tpu.memory_space<semaphore_mem>>
    tpu.wait_dma2 semaphore(%173 : memref<!tpu.dma_semaphore, #tpu.memory_space<semaphore_mem>>) src(%arg9 : memref<512x1024xbf16, #tpu.memory_space<any>>) dst(%arg19 : memref<512x1024xbf16, #tpu.memory_space<vmem>>)
    %c0_90 = arith.constant 0 : index
    %c0_91 = arith.constant 0 : index
    %174 = vector.load %arg19[%c0_90, %c0_91] : memref<512x1024xbf16, #tpu.memory_space<vmem>>, vector<512x1024xbf16>
    %cst_92 = arith.constant dense<0.000000e+00> : vector<8x1024xf32>
    %175 = tpu.matmul %171, %174, %cst_92 {dimension_numbers = #tpu.dot_dimension_numbers<[1], [0], [0], [1], [0, 0, 1, 1], [], []>} : vector<8x512xbf16>, vector<512x1024xbf16>, vector<8x1024xf32> -> vector<8x1024xf32>
    %c0_93 = arith.constant 0 : index
    %c3968 = arith.constant 3968 : index
    %176 = vector.load %arg1[%c0_93, %c3968] : memref<1x5120xf32, #tpu.memory_space<vmem>>, vector<1x1024xf32>
    %177 = vector.broadcast %176 : vector<1x1024xf32> to vector<8x1024xf32>
    %178 = arith.addf %175, %177 : vector<8x1024xf32>
    %cst_94 = arith.constant 0.000000e+00 : f32
    %179 = vector.broadcast %cst_94 : f32 to vector<8x1024xf32>
    %180 = arith.maximumf %178, %179 : vector<8x1024xf32>
    %181 = arith.truncf %180 : vector<8x1024xf32> to vector<8x1024xbf16>
    %c8_i32_95 = arith.constant 8 : i32
    %182 = tpu.memref_slice %arg21[%c8_i32_95] : memref<9x!tpu.dma_semaphore, #tpu.memory_space<semaphore_mem>> -> memref<1x!tpu.dma_semaphore, #tpu.memory_space<semaphore_mem>>
    %183 = tpu.memref_squeeze %182 : memref<1x!tpu.dma_semaphore, #tpu.memory_space<semaphore_mem>> -> memref<!tpu.dma_semaphore, #tpu.memory_space<semaphore_mem>>
    tpu.wait_dma2 semaphore(%183 : memref<!tpu.dma_semaphore, #tpu.memory_space<semaphore_mem>>) src(%arg10 : memref<1024x2xbf16, #tpu.memory_space<any>>) dst(%arg20 : memref<1024x2xbf16, #tpu.memory_space<vmem>>)
    %c0_96 = arith.constant 0 : index
    %c0_97 = arith.constant 0 : index
    %184 = vector.load %arg20[%c0_96, %c0_97] : memref<1024x2xbf16, #tpu.memory_space<vmem>>, vector<1024x2xbf16>
    %cst_98 = arith.constant dense<0.000000e+00> : vector<8x2xf32>
    %185 = tpu.matmul %181, %184, %cst_98 {dimension_numbers = #tpu.dot_dimension_numbers<[1], [0], [0], [1], [0, 0, 1, 1], [], []>} : vector<8x1024xbf16>, vector<1024x2xbf16>, vector<8x2xf32> -> vector<8x2xf32>
    %c0_99 = arith.constant 0 : index
    %c4992 = arith.constant 4992 : index
    %186 = vector.load %arg1[%c0_99, %c4992] : memref<1x5120xf32, #tpu.memory_space<vmem>>, vector<1x2xf32>
    %187 = vector.broadcast %186 : vector<1x2xf32> to vector<8x2xf32>
    %188 = arith.addf %185, %187 : vector<8x2xf32>
    %c0_100 = arith.constant 0 : index
    %c0_101 = arith.constant 0 : index
    %189 = vector.load %arg11[%c0_100, %c0_101] : memref<8x2xf32, #tpu.memory_space<vmem>>, vector<8x2xf32>
    tpu.vector_store %arg11[%c0_100, %c0_101], %188 {strides = array<i32>} : memref<8x2xf32, #tpu.memory_space<vmem>>, vector<8x2xf32>,
    return
  }
}

</mosaic_0001>

<bundles_post_ra>
// kernel: _fused_forward.1
= control target key start
LH: loop header
LB: loop body
LE: loop exit
PB: predicated region body
PF: predicated region fallthrough
CT: control target
= control target key end

     0   :  { %16 = vsyncpa [#allocation13], 0  ;;  %s10376_s17 = smov [#allocation12]   ;;  %s11366_s0 = inlined_call_operand.vmem [shape: f32[8,128], index: 0, kind: input, shape index: {}]   ;;  %s11367_s1 = inlined_call_operand.hbm [shape: f32[1,5120], index: 1, kind: input, shape index: {}]   ;;  %s11368_s2 = inlined_call_operand.vmem [shape: bf16[128,1024], index: 2, kind: input, shape index: {}]   ;;  %s11369_s3 = inlined_call_operand.hbm [shape: bf16[1024,512], index: 3, kind: input, shape index: {}]   ;;  %s11370_s4 = inlined_call_operand.hbm [shape: bf16[512,256], index: 4, kind: input, shape index: {}]   ;;  %s11371_s5 = inlined_call_operand.hbm [shape: bf16[256,128], index: 5, kind: input, shape index: {}]   ;;  %s11372_s6 = inlined_call_operand.hbm [shape: bf16[10,128,128], index: 6, kind: input, shape index: {}]   ;;  %s11373_s7 = inlined_call_operand.hbm [shape: bf16[128,256], index: 7, kind: input, shape index: {}]   ;;  %s11374_s8 = inlined_call_operand.hbm [shape: bf16[256,512], index: 8, kind: input, shape index: {}]   ;;  %s11375_s9 = inlined_call_operand.hbm [shape: bf16[512,1024], index: 9, kind: input, shape index: {}]   ;;  %s11376_s10 = inlined_call_operand.vmem [shape: bf16[1024,2], index: 10, kind: input, shape index: {}]   ;;  %s11377_s11 = inlined_call_operand.vmem [shape: f32[8,2], index: 11, kind: output, shape index: {}]  }
   0x1   :  { %s25_s18 = sshll.u32 %s10376_s17, 4  ;;  %s26_s18 = int_to_ptr.vmem [resolvable:$true] %s25_s18 }
   0x2   :  { %s10204_s19 = scalar_lea.vmem %s26_s18, 640  ;;  %p10209_p1 = scmp.lt.s32.totalorder %s26_s18, %s26_s18 }
   0x3   :  { %p10205_p0 = scmp.ne.s32.totalorder %s26_s18, %s10204_s19  ;;  %p10210_p2 = scmp.lt.s32.totalorder %s10204_s19, %s10204_s19 }
   0x5   :  { %p10211_p3 = por %p10210_p2, %p10209_p1 }
   0x7   :  { %p10212_p4 = pnand %p10211_p3, %p10205_p0 }
   0x9   :  { %10215 = shalt.err (!%p10212_p4)
}
   0xa   :  { %28 = dma.hbm_to_vmem [thread:$0]  %s11367_s1, 640, %s26_s18, [#allocation13]  }
   0xb   :  { %10356 = dma.done.wait [#allocation13], 640  }
   0xc   :  { %10357 = vsyncadd [#allocation13], 4294966656  ;;  %v10453_v0 = vld [vmem:[%s11368_s2] sm:$0xff]  ;;  %v10458_v1 = vld [vmem:[%s11368_s2 + $0x8] sm:$0xff] }
   0xd   :  { %v10463_v2 = vld [vmem:[%s11368_s2 + $0x10] sm:$0xff]  ;;  %v10468_v3 = vld [vmem:[%s11368_s2 + $0x18] sm:$0xff]  ;;  %v10473_v4 = vld [vmem:[%s11368_s2 + $0x20] sm:$0xff] }
   0xe   :  { %11385 = vst [vmem:[#allocation42_spill] sm:$0xff] %v10463_v2  ;;  %11386 = vst [vmem:[#allocation43_spill] sm:$0xff] %v10468_v3  ;;  %v10478_v5 = vld [vmem:[%s11368_s2 + $0x28] sm:$0xff]  ;;  %v10483_v6 = vld [vmem:[%s11368_s2 + $0x30] sm:$0xff] }
   0xf   :  { %11387 = vst [vmem:[#allocation44_spill] sm:$0xff] %v10483_v6  ;;  %v10488_v7 = vld [vmem:[%s11368_s2 + $0x38] sm:$0xff]  ;;  %v10493_v8 = vld [vmem:[%s11368_s2 + $0x40] sm:$0xff]  ;;  %v10498_v9 = vld [vmem:[%s11368_s2 + $0x48] sm:$0xff] }
  0x10   :  { %11388 = vst [vmem:[#allocation45_spill] sm:$0xff] %v10488_v7  ;;  %v10503_v10 = vld [vmem:[%s11368_s2 + $0x50] sm:$0xff]  ;;  %v10508_v11 = vld [vmem:[%s11368_s2 + $0x58] sm:$0xff]  ;;  %v10513_v12 = vld [vmem:[%s11368_s2 + $0x60] sm:$0xff] }
  0x11   :  { %11389 = vst [vmem:[#allocation46_spill] sm:$0xff] %v10503_v10  ;;  %11390 = vst [vmem:[#allocation47_spill] sm:$0xff] %v10508_v11  ;;  %v10518_v13 = vld [vmem:[%s11368_s2 + $0x68] sm:$0xff]  ;;  %v10523_v14 = vld [vmem:[%s11368_s2 + $0x70] sm:$0xff] }
  0x12   :  { %v10528_v15 = vld [vmem:[%s11368_s2 + $0x78] sm:$0xff]  ;;  %v10533_v16 = vld [vmem:[%s11368_s2 + $0x80] sm:$0xff]  ;;  %v10538_v17 = vld [vmem:[%s11368_s2 + $0x88] sm:$0xff] }
  0x13   :  { %11391 = vst [vmem:[#allocation48_spill] sm:$0xff] %v10528_v15  ;;  %v10543_v18 = vld [vmem:[%s11368_s2 + $0x90] sm:$0xff]  ;;  %v10548_v19 = vld [vmem:[%s11368_s2 + $0x98] sm:$0xff]  ;;  %v10553_v20 = vld [vmem:[%s11368_s2 + $0xa0] sm:$0xff] }
  0x14   :  { %v10558_v21 = vld [vmem:[%s11368_s2 + $0xa8] sm:$0xff]  ;;  %v10563_v22 = vld [vmem:[%s11368_s2 + $0xb0] sm:$0xff]  ;;  %v10568_v23 = vld [vmem:[%s11368_s2 + $0xb8] sm:$0xff] }
  0x15   :  { %v10573_v24 = vld [vmem:[%s11368_s2 + $0xc0] sm:$0xff]  ;;  %v10578_v25 = vld [vmem:[%s11368_s2 + $0xc8] sm:$0xff]  ;;  %v10583_v26 = vld [vmem:[%s11368_s2 + $0xd0] sm:$0xff] }
  0x16   :  { %v10588_v27 = vld [vmem:[%s11368_s2 + $0xd8] sm:$0xff]  ;;  %v10593_v28 = vld [vmem:[%s11368_s2 + $0xe0] sm:$0xff]  ;;  %v10598_v29 = vld [vmem:[%s11368_s2 + $0xe8] sm:$0xff] }
  0x17   :  { %v10603_v30 = vld [vmem:[%s11368_s2 + $0xf0] sm:$0xff]  ;;  %v10608_v31 = vld [vmem:[%s11368_s2 + $0xf8] sm:$0xff]  ;;  %v10613_v32 = vld [vmem:[%s11368_s2 + $0x100] sm:$0xff] }
  0x18   :  { %v10618_v33 = vld [vmem:[%s11368_s2 + $0x108] sm:$0xff]  ;;  %v10623_v34 = vld [vmem:[%s11368_s2 + $0x110] sm:$0xff]  ;;  %v10628_v35 = vld [vmem:[%s11368_s2 + $0x118] sm:$0xff] }
  0x19   :  { %v10633_v36 = vld [vmem:[%s11368_s2 + $0x120] sm:$0xff]  ;;  %v10638_v37 = vld [vmem:[%s11368_s2 + $0x128] sm:$0xff]  ;;  %v10643_v38 = vld [vmem:[%s11368_s2 + $0x130] sm:$0xff] }
  0x1a   :  { %v10648_v39 = vld [vmem:[%s11368_s2 + $0x138] sm:$0xff]  ;;  %v10653_v40 = vld [vmem:[%s11368_s2 + $0x140] sm:$0xff]  ;;  %v10658_v41 = vld [vmem:[%s11368_s2 + $0x148] sm:$0xff] }
  0x1b   :  { %v10663_v42 = vld [vmem:[%s11368_s2 + $0x150] sm:$0xff]  ;;  %v10668_v43 = vld [vmem:[%s11368_s2 + $0x158] sm:$0xff]  ;;  %v10673_v44 = vld [vmem:[%s11368_s2 + $0x160] sm:$0xff] }
  0x1c   :  { %v10678_v45 = vld [vmem:[%s11368_s2 + $0x168] sm:$0xff]  ;;  %v10683_v46 = vld [vmem:[%s11368_s2 + $0x170] sm:$0xff]  ;;  %v10688_v47 = vld [vmem:[%s11368_s2 + $0x178] sm:$0xff] }
  0x1d   :  { %v10693_v48 = vld [vmem:[%s11368_s2 + $0x180] sm:$0xff]  ;;  %v10698_v49 = vld [vmem:[%s11368_s2 + $0x188] sm:$0xff]  ;;  %v10703_v50 = vld [vmem:[%s11368_s2 + $0x190] sm:$0xff] }
  0x1e   :  { %v10708_v51 = vld [vmem:[%s11368_s2 + $0x198] sm:$0xff]  ;;  %v10713_v52 = vld [vmem:[%s11368_s2 + $0x1a0] sm:$0xff]  ;;  %v10718_v53 = vld [vmem:[%s11368_s2 + $0x1a8] sm:$0xff] }
  0x1f   :  { %v10723_v54 = vld [vmem:[%s11368_s2 + $0x1b0] sm:$0xff]  ;;  %v10728_v55 = vld [vmem:[%s11368_s2 + $0x1b8] sm:$0xff]  ;;  %v10733_v56 = vld [vmem:[%s11368_s2 + $0x1c0] sm:$0xff] }
  0x20   :  { %v10738_v57 = vld [vmem:[%s11368_s2 + $0x1c8] sm:$0xff]  ;;  %v10743_v58 = vld [vmem:[%s11368_s2 + $0x1d0] sm:$0xff]  ;;  %v10748_v59 = vld [vmem:[%s11368_s2 + $0x1d8] sm:$0xff] }
  0x21   :  { %v10753_v60 = vld [vmem:[%s11368_s2 + $0x1e0] sm:$0xff]  ;;  %v10758_v61 = vld [vmem:[%s11368_s2 + $0x1e8] sm:$0xff]  ;;  %v10763_v62 = vld [vmem:[%s11368_s2 + $0x1f0] sm:$0xff] }
  0x22   :  { %v10768_v63 = vld [vmem:[%s11368_s2 + $0x1f8] sm:$0xff] }
  0x23   :  { %201 = vsyncadd [#allocation11], 8192  ;;  %v320_v3 = vld [vmem:[%s11376_s10] sm:$0xff]  ;;  %v322_v7 = vld [vmem:[%s11376_s10 + $0x8] sm:$0xff]  ;;  %s10377_s14 = smov [#allocation3]   ;;  %s10378_s16 = smov [#allocation4]  }
  0x24   :  { %s210_s15 = sshll.u32 %s10377_s14, 4  ;;  %s222_s17 = sshll.u32 %s10378_s16, 4  ;;  %321 = vst [vmem:[#allocation10] sm:$0xff] %v320_v3  ;;  %323 = vst [vmem:[#allocation10 + $0x8] sm:$0xff] %v322_v7  ;;  %v324_v2 = vld [vmem:[%s11376_s10 + $0x10] sm:$0xff]  ;;  %v326_v6 = vld [vmem:[%s11376_s10 + $0x18] sm:$0xff]  ;;  %s211_s15 = int_to_ptr.vmem [resolvable:$true] %s210_s15  ;;  %s223_s17 = int_to_ptr.vmem [resolvable:$true] %s222_s17 }
  0x25   :  { %v328_v11 = vld [vmem:[%s11376_s10 + $0x20] sm:$0xff]  ;;  %325 = vst [vmem:[#allocation10 + $0x10] sm:$0xff] %v324_v2  ;;  %327 = vst [vmem:[#allocation10 + $0x18] sm:$0xff] %v326_v6  ;;  %v330_v3 = vld [vmem:[%s11376_s10 + $0x28] sm:$0xff]  ;;  %s10224_s29 = scalar_lea.vmem %s211_s15, 32768  ;;  %p10229_p6 = scmp.lt.s32.totalorder %s211_s15, %s211_s15 }
  0x26   :  { %329 = vst [vmem:[#allocation10 + $0x20] sm:$0xff] %v328_v11  ;;  %v332_v7 = vld [vmem:[%s11376_s10 + $0x30] sm:$0xff]  ;;  %v334_v15 = vld [vmem:[%s11376_s10 + $0x38] sm:$0xff]  ;;  %p10225_p5 = scmp.ne.s32.totalorder %s211_s15, %s10224_s29  ;;  %p10230_p7 = scmp.lt.s32.totalorder %s10224_s29, %s10224_s29 }
  0x28   :  { %p10231_p8 = por %p10230_p7, %p10229_p6 }
  0x2a   :  { %p10232_p9 = pnand %p10231_p8, %p10225_p5 }
  0x2c   :  { %10235 = shalt.err (!%p10232_p9)  }
  0x2d   :  { %213 = dma.hbm_to_vmem [thread:$0]  %s11369_s3, 32768, %s211_s15, [#allocation11 + $0x1]  ;;  %331 = vst [vmem:[#allocation10 + $0x28] sm:$0xff] %v330_v3  ;;  %333 = vst [vmem:[#allocation10 + $0x30] sm:$0xff] %v332_v7  ;;  %v336_v2 = vld [vmem:[%s11376_s10 + $0x40] sm:$0xff]  ;;  %v338_v6 = vld [vmem:[%s11376_s10 + $0x48] sm:$0xff] }
  0x2e   :  { %335 = vst [vmem:[#allocation10 + $0x38] sm:$0xff] %v334_v15  ;;  %v340_v11 = vld [vmem:[%s11376_s10 + $0x50] sm:$0xff]  ;;  %s10244_s2 = scalar_lea.vmem %s223_s17, 8192  ;;  %p10249_p11 = scmp.lt.s32.totalorder %s223_s17, %s223_s17 }
  0x2f   :  { %p10245_p10 = scmp.ne.s32.totalorder %s223_s17, %s10244_s2  ;;  %p10250_p12 = scmp.lt.s32.totalorder %s10244_s2, %s10244_s2 }
  0x31   :  { %p10251_p13 = por %p10250_p12, %p10249_p11 }
  0x33   :  { %p10252_p0 = pnand %p10251_p13, %p10245_p10 }
  0x35   :  { %10255 = shalt.err (!%p10252_p0)  }
  0x36   :  { %225 = dma.hbm_to_vmem [thread:$0]  %s11370_s4, 8192, %s223_s17, [#allocation11 + $0x2]  ;;  %337 = vst [vmem:[#allocation10 + $0x40] sm:$0xff] %v336_v2  ;;  %339 = vst [vmem:[#allocation10 + $0x48] sm:$0xff] %v338_v6  ;;  %v342_v15 = vld [vmem:[%s11376_s10 + $0x58] sm:$0xff]  ;;  %v344_v3 = vld [vmem:[%s11376_s10 + $0x60] sm:$0xff] }
  0x37   :  { %341 = vst [vmem:[#allocation10 + $0x50] sm:$0xff] %v340_v11  ;;  %v346_v7 = vld [vmem:[%s11376_s10 + $0x68] sm:$0xff]  ;;  %343 = vst [vmem:[#allocation10 + $0x58] sm:$0xff] %v342_v15  ;;  %v348_v2 = vld [vmem:[%s11376_s10 + $0x70] sm:$0xff]  ;;  %s10379_s1 = smov [#allocation5]   ;;  %s10380_s12 = smov [#allocation6]  }
  0x38   :  { %345 = vst [vmem:[#allocation10 + $0x60] sm:$0xff] %v344_v3  ;;  %347 = vst [vmem:[#allocation10 + $0x68] sm:$0xff] %v346_v7  ;;  %v350_v6 = vld [vmem:[%s11376_s10 + $0x78] sm:$0xff]  ;;  %v352_v11 = vld [vmem:[%s11376_s10 + $0x80] sm:$0xff]  ;;  %s234_s30 = sshll.u32 %s10379_s1, 4  ;;  %s246_s13 = sshll.u32 %s10380_s12, 4  ;;  %s235_s30 = int_to_ptr.vmem [resolvable:$true] %s234_s30  ;;  %s247_s13 = int_to_ptr.vmem [resolvable:$true] %s246_s13 }
  0x39   :  { %349 = vst [vmem:[#allocation10 + $0x70] sm:$0xff] %v348_v2  ;;  %351 = vst [vmem:[#allocation10 + $0x78] sm:$0xff] %v350_v6  ;;  %v354_v15 = vld [vmem:[%s11376_s10 + $0x88] sm:$0xff]  ;;  %v356_v3 = vld [vmem:[%s11376_s10 + $0x90] sm:$0xff]  ;;  %s10264_s25 = scalar_lea.vmem %s235_s30, 2048  ;;  %p10269_p2 = scmp.lt.s32.totalorder %s235_s30, %s235_s30 }
  0x3a   :  { %353 = vst [vmem:[#allocation10 + $0x80] sm:$0xff] %v352_v11  ;;  %v358_v7 = vld [vmem:[%s11376_s10 + $0x98] sm:$0xff]  ;;  %355 = vst [vmem:[#allocation10 + $0x88] sm:$0xff] %v354_v15  ;;  %v360_v2 = vld [vmem:[%s11376_s10 + $0xa0] sm:$0xff]  ;;  %p10265_p1 = scmp.ne.s32.totalorder %s235_s30, %s10264_s25  ;;  %p10270_p3 = scmp.lt.s32.totalorder %s10264_s25, %s10264_s25 }
  0x3b   :  { %357 = vst [vmem:[#allocation10 + $0x90] sm:$0xff] %v356_v3  ;;  %359 = vst [vmem:[#allocation10 + $0x98] sm:$0xff] %v358_v7  ;;  %v362_v6 = vld [vmem:[%s11376_s10 + $0xa8] sm:$0xff]  ;;  %v364_v11 = vld [vmem:[%s11376_s10 + $0xb0] sm:$0xff] }
  0x3c   :  { %p10271_p4 = por %p10270_p3, %p10269_p2 }
  0x3e   :  { %p10272_p5 = pnand %p10271_p4, %p10265_p1 }
  0x40   :  { %10275 = shalt.err (!%p10272_p5)  }
  0x41   :  { %237 = dma.hbm_to_vmem [thread:$0]  %s11371_s5, 2048, %s235_s30, [#allocation11 + $0x3]  ;;  %361 = vst [vmem:[#allocation10 + $0xa0] sm:$0xff] %v360_v2  ;;  %363 = vst [vmem:[#allocation10 + $0xa8] sm:$0xff] %v362_v6  ;;  %v366_v15 = vld [vmem:[%s11376_s10 + $0xb8] sm:$0xff]  ;;  %v368_v3 = vld [vmem:[%s11376_s10 + $0xc0] sm:$0xff] }
  0x42   :  { %365 = vst [vmem:[#allocation10 + $0xb0] sm:$0xff] %v364_v11  ;;  %v370_v7 = vld [vmem:[%s11376_s10 + $0xc8] sm:$0xff]  ;;  %s10284_s14 = scalar_lea.vmem %s247_s13, 10240  ;;  %p10289_p7 = scmp.lt.s32.totalorder %s247_s13, %s247_s13 }
  0x43   :  { %p10285_p6 = scmp.ne.s32.totalorder %s247_s13, %s10284_s14  ;;  %p10290_p8 = scmp.lt.s32.totalorder %s10284_s14, %s10284_s14 }
  0x45   :  { %p10291_p9 = por %p10290_p8, %p10289_p7 }
  0x47   :  { %p10292_p10 = pnand %p10291_p9, %p10285_p6 }
  0x49   :  { %10295 = shalt.err (!%p10292_p10)  }
  0x4a   :  { %249 = dma.hbm_to_vmem [thread:$0]  %s11372_s6, 10240, %s247_s13, [#allocation11 + $0x4]  ;;  %367 = vst [vmem:[#allocation10 + $0xb8] sm:$0xff] %v366_v15  ;;  %369 = vst [vmem:[#allocation10 + $0xc0] sm:$0xff] %v368_v3  ;;  %v372_v2 = vld [vmem:[%s11376_s10 + $0xd0] sm:$0xff]  ;;  %v374_v6 = vld [vmem:[%s11376_s10 + $0xd8] sm:$0xff] }
  0x4b   :  { %371 = vst [vmem:[#allocation10 + $0xc8] sm:$0xff] %v370_v7  ;;  %v376_v11 = vld [vmem:[%s11376_s10 + $0xe0] sm:$0xff]  ;;  %373 = vst [vmem:[#allocation10 + $0xd0] sm:$0xff] %v372_v2  ;;  %v378_v15 = vld [vmem:[%s11376_s10 + $0xe8] sm:$0xff]  ;;  %s10381_s24 = smov [#allocation7]   ;;  %s10382_s26 = smov [#allocation8]  }
  0x4c   :  { %375 = vst [vmem:[#allocation10 + $0xd8] sm:$0xff] %v374_v6  ;;  %377 = vst [vmem:[#allocation10 + $0xe0] sm:$0xff] %v376_v11  ;;  %v380_v3 = vld [vmem:[%s11376_s10 + $0xf0] sm:$0xff]  ;;  %v382_v7 = vld [vmem:[%s11376_s10 + $0xf8] sm:$0xff]  ;;  %s258_s25 = sshll.u32 %s10381_s24, 4  ;;  %s270_s4 = sshll.u32 %s10382_s26, 4  ;;  %s259_s25 = int_to_ptr.vmem [resolvable:$true] %s258_s25  ;;  %s271_s4 = int_to_ptr.vmem [resolvable:$true] %s270_s4 }
  0x4d   :  { %379 = vst [vmem:[#allocation10 + $0xe8] sm:$0xff] %v378_v15  ;;  %381 = vst [vmem:[#allocation10 + $0xf0] sm:$0xff] %v380_v3  ;;  %v384_v2 = vld [vmem:[%s11376_s10 + $0x100] sm:$0xff]  ;;  %v386_v6 = vld [vmem:[%s11376_s10 + $0x108] sm:$0xff]  ;;  %s10304_s2 = scalar_lea.vmem %s259_s25, 2048  ;;  %p10309_p12 = scmp.lt.s32.totalorder %s259_s25, %s259_s25 }
  0x4e   :  { %383 = vst [vmem:[#allocation10 + $0xf8] sm:$0xff] %v382_v7  ;;  %v388_v11 = vld [vmem:[%s11376_s10 + $0x110] sm:$0xff]  ;;  %385 = vst [vmem:[#allocation10 + $0x100] sm:$0xff] %v384_v2  ;;  %v390_v15 = vld [vmem:[%s11376_s10 + $0x118] sm:$0xff]  ;;  %p10305_p11 = scmp.ne.s32.totalorder %s259_s25, %s10304_s2  ;;  %p10310_p13 = scmp.lt.s32.totalorder %s10304_s2, %s10304_s2 }
  0x4f   :  { %387 = vst [vmem:[#allocation10 + $0x108] sm:$0xff] %v386_v6  ;;  %389 = vst [vmem:[#allocation10 + $0x110] sm:$0xff] %v388_v11  ;;  %v392_v3 = vld [vmem:[%s11376_s10 + $0x120] sm:$0xff]  ;;  %v394_v7 = vld [vmem:[%s11376_s10 + $0x128] sm:$0xff] }
  0x50   :  { %p10311_p0 = por %p10310_p13, %p10309_p12 }
  0x52   :  { %p10312_p1 = pnand %p10311_p0, %p10305_p11 }
  0x54   :  { %10315 = shalt.err (!%p10312_p1)  }
  0x55   :  { %261 = dma.hbm_to_vmem [thread:$0]  %s11373_s7, 2048, %s259_s25, [#allocation11 + $0x5]  ;;  %391 = vst [vmem:[#allocation10 + $0x118] sm:$0xff] %v390_v15  ;;  %393 = vst [vmem:[#allocation10 + $0x120] sm:$0xff] %v392_v3  ;;  %v396_v2 = vld [vmem:[%s11376_s10 + $0x130] sm:$0xff]  ;;  %v398_v6 = vld [vmem:[%s11376_s10 + $0x138] sm:$0xff] }
  0x56   :  { %395 = vst [vmem:[#allocation10 + $0x128] sm:$0xff] %v394_v7  ;;  %v400_v11 = vld [vmem:[%s11376_s10 + $0x140] sm:$0xff]  ;;  %s10324_s24 = scalar_lea.vmem %s271_s4, 8192  ;;  %p10329_p3 = scmp.lt.s32.totalorder %s271_s4, %s271_s4 }
  0x57   :  { %p10325_p2 = scmp.ne.s32.totalorder %s271_s4, %s10324_s24  ;;  %p10330_p4 = scmp.lt.s32.totalorder %s10324_s24, %s10324_s24 }
  0x59   :  { %p10331_p5 = por %p10330_p4, %p10329_p3 }
  0x5b   :  { %p10332_p6 = pnand %p10331_p5, %p10325_p2 }
  0x5d   :  { %10335 = shalt.err (!%p10332_p6)  }
  0x5e   :  { %273 = dma.hbm_to_vmem [thread:$0]  %s11374_s8, 8192, %s271_s4, [#allocation11 + $0x6]  ;;  %397 = vst [vmem:[#allocation10 + $0x130] sm:$0xff] %v396_v2  ;;  %399 = vst [vmem:[#allocation10 + $0x138] sm:$0xff] %v398_v6  ;;  %v402_v15 = vld [vmem:[%s11376_s10 + $0x148] sm:$0xff]  ;;  %v404_v3 = vld [vmem:[%s11376_s10 + $0x150] sm:$0xff] }
  0x5f   :  { %401 = vst [vmem:[#allocation10 + $0x140] sm:$0xff] %v400_v11  ;;  %v406_v7 = vld [vmem:[%s11376_s10 + $0x158] sm:$0xff]  ;;  %403 = vst [vmem:[#allocation10 + $0x148] sm:$0xff] %v402_v15  ;;  %v408_v2 = vld [vmem:[%s11376_s10 + $0x160] sm:$0xff]  ;;  %s10383_s16 = smov [#allocation9]  }
  0x60   :  { %405 = vst [vmem:[#allocation10 + $0x150] sm:$0xff] %v404_v3  ;;  %407 = vst [vmem:[#allocation10 + $0x158] sm:$0xff] %v406_v7  ;;  %v410_v6 = vld [vmem:[%s11376_s10 + $0x168] sm:$0xff]  ;;  %v412_v11 = vld [vmem:[%s11376_s10 + $0x170] sm:$0xff]  ;;  %s282_s18 = sshll.u32 %s10383_s16, 4  ;;  %s283_s18 = int_to_ptr.vmem [resolvable:$true] %s282_s18 }
  0x61   :  { %409 = vst [vmem:[#allocation10 + $0x160] sm:$0xff] %v408_v2  ;;  %411 = vst [vmem:[#allocation10 + $0x168] sm:$0xff] %v410_v6  ;;  %v414_v15 = vld [vmem:[%s11376_s10 + $0x178] sm:$0xff]  ;;  %v416_v3 = vld [vmem:[%s11376_s10 + $0x180] sm:$0xff]  ;;  %s10344_s25 = scalar_lea.vmem %s283_s18, 32768  ;;  %p10349_p8 = scmp.lt.s32.totalorder %s283_s18, %s283_s18 }
  0x62   :  { %413 = vst [vmem:[#allocation10 + $0x170] sm:$0xff] %v412_v11  ;;  %v418_v7 = vld [vmem:[%s11376_s10 + $0x188] sm:$0xff]  ;;  %415 = vst [vmem:[#allocation10 + $0x178] sm:$0xff] %v414_v15  ;;  %v420_v2 = vld [vmem:[%s11376_s10 + $0x190] sm:$0xff]  ;;  %p10345_p7 = scmp.ne.s32.totalorder %s283_s18, %s10344_s25  ;;  %p10350_p9 = scmp.lt.s32.totalorder %s10344_s25, %s10344_s25 }
  0x63   :  { %417 = vst [vmem:[#allocation10 + $0x180] sm:$0xff] %v416_v3  ;;  %419 = vst [vmem:[#allocation10 + $0x188] sm:$0xff] %v418_v7  ;;  %v422_v6 = vld [vmem:[%s11376_s10 + $0x198] sm:$0xff]  ;;  %v424_v11 = vld [vmem:[%s11376_s10 + $0x1a0] sm:$0xff] }
  0x64   :  { %p10351_p10 = por %p10350_p9, %p10349_p8 }
  0x66   :  { %p10352_p11 = pnand %p10351_p10, %p10345_p7 }
  0x68   :  { %10355 = shalt.err (!%p10352_p11)  }
  0x69   :  { %285 = dma.hbm_to_vmem [thread:$0]  %s11375_s9, 32768, %s283_s18, [#allocation11 + $0x7]  ;;  %421 = vst [vmem:[#allocation10 + $0x190] sm:$0xff] %v420_v2  ;;  %423 = vst [vmem:[#allocation10 + $0x198] sm:$0xff] %v422_v6  ;;  %v426_v15 = vld [vmem:[%s11376_s10 + $0x1a8] sm:$0xff]  ;;  %v428_v3 = vld [vmem:[%s11376_s10 + $0x1b0] sm:$0xff] }
  0x6a   :  { %425 = vst [vmem:[#allocation10 + $0x1a0] sm:$0xff] %v424_v11  ;;  %v430_v7 = vld [vmem:[%s11376_s10 + $0x1b8] sm:$0xff]  ;;  %427 = vst [vmem:[#allocation10 + $0x1a8] sm:$0xff] %v426_v15  ;;  %v432_v2 = vld [vmem:[%s11376_s10 + $0x1c0] sm:$0xff] }
  0x6b   :  { %429 = vst [vmem:[#allocation10 + $0x1b0] sm:$0xff] %v428_v3  ;;  %431 = vst [vmem:[#allocation10 + $0x1b8] sm:$0xff] %v430_v7  ;;  %v434_v6 = vld [vmem:[%s11376_s10 + $0x1c8] sm:$0xff]  ;;  %v436_v11 = vld [vmem:[%s11376_s10 + $0x1d0] sm:$0xff] }
  0x6c   :  { %433 = vst [vmem:[#allocation10 + $0x1c0] sm:$0xff] %v432_v2  ;;  %435 = vst [vmem:[#allocation10 + $0x1c8] sm:$0xff] %v434_v6  ;;  %v438_v15 = vld [vmem:[%s11376_s10 + $0x1d8] sm:$0xff]  ;;  %v440_v3 = vld [vmem:[%s11376_s10 + $0x1e0] sm:$0xff] }
  0x6d   :  { %437 = vst [vmem:[#allocation10 + $0x1d0] sm:$0xff] %v436_v11  ;;  %v442_v7 = vld [vmem:[%s11376_s10 + $0x1e8] sm:$0xff]  ;;  %439 = vst [vmem:[#allocation10 + $0x1d8] sm:$0xff] %v438_v15  ;;  %v444_v2 = vld [vmem:[%s11376_s10 + $0x1f0] sm:$0xff] }
  0x6e   :  { %441 = vst [vmem:[#allocation10 + $0x1e0] sm:$0xff] %v440_v3  ;;  %443 = vst [vmem:[#allocation10 + $0x1e8] sm:$0xff] %v442_v7  ;;  %v446_v6 = vld [vmem:[%s11376_s10 + $0x1f8] sm:$0xff] }
  0x6f   :  { %445 = vst [vmem:[#allocation10 + $0x1f0] sm:$0xff] %v444_v2  ;;  %447 = vst [vmem:[#allocation10 + $0x1f8] sm:$0xff] %v446_v6 }
  0x70   :  { %455 = vsyncadd [#allocation11 + $0x8], 8192  ;;  %v8181_v11 = vcombine.high %v10733_v56, %v10753_v60  ;;  %v8183_v10 = vcombine.high %v10738_v57, %v10758_v61  ;;  %v8180_v15 = vcombine.low %v10733_v56, %v10753_v60  ;;  %v8182_v3 = vcombine.low %v10738_v57, %v10758_v61 }
  0x71   :  { %10358 = dma.done.wait [#allocation11], 8192 }
  0x72   :  { %10359 = vsyncadd [#allocation11], 4294959104  ;;  %v8173_v7 = vcombine.high %v10693_v48, %v10713_v52  ;;  %v8175_v2 = vcombine.high %v10698_v49, %v10718_v53  ;;  %888 = vmatprep.subr.bf16.mxu0 %v8181_v11  ;;  %929 = vmatprep.subr.bf16.mxu1 %v8183_v10  ;;  %v8172_v6 = vcombine.low %v10693_v48, %v10713_v52  ;;  %v10384_v61 = vmov 0  }
  0x73   :  { %889 = vmatpush1.bf16.msra.mxu0 %v8180_v15  ;;  %930 = vmatpush1.bf16.msra.mxu1 %v8182_v3  ;;  %v8174_v56 = vcombine.low %v10698_v49, %v10718_v53  ;;  %v8165_v57 = vcombine.high %v10653_v40, %v10673_v44  ;;  %v8167_v60 = vcombine.high %v10658_v41, %v10678_v45 }
  0x74   :  { %890 = vmatprep.subr.bf16.mxu0 %v8173_v7  ;;  %931 = vmatprep.subr.bf16.mxu1 %v8175_v2  ;;  %v8164_v10 = vcombine.low %v10653_v40, %v10673_v44  ;;  %v8166_v48 = vcombine.low %v10658_v41, %v10678_v45  ;;  %v8157_v49 = vcombine.high %v10613_v32, %v10633_v36 }
  0x75   :  { %920 = vmatprep.mubr.bf16.mxu0 %v10384_v61  ;;  %961 = vmatprep.mubr.bf16.mxu1 %v10384_v61  ;;  %v8159_v52 = vcombine.high %v10618_v33, %v10638_v37  ;;  %v8156_v53 = vcombine.low %v10613_v32, %v10633_v36  ;;  %v8158_v11 = vcombine.low %v10618_v33, %v10638_v37 }
  0x76   :  { %v8149_v40 = vcombine.high %v10573_v24, %v10593_v28  ;;  %v8151_v41 = vcombine.high %v10578_v25, %v10598_v29  ;;  %v8148_v44 = vcombine.low %v10573_v24, %v10593_v28  ;;  %v8150_v45 = vcombine.low %v10578_v25, %v10598_v29 }
  0x77   :  { %891 = vmatpush1.bf16.msra.mxu0 %v8172_v6  ;;  %932 = vmatpush1.bf16.msra.mxu1 %v8174_v56  ;;  %v8141_v32 = vcombine.high %v10533_v16, %v10553_v20  ;;  %v8143_v33 = vcombine.high %v10538_v17, %v10558_v21  ;;  %v8140_v36 = vcombine.low %v10533_v16, %v10553_v20  ;;  %v460_v20 = vld [vmem:[%s11366_s0] sm:$0xff]  ;;  %v11398_v56 = vld [vmem:[#allocation43_spill] sm:$0xff] }
  0x78   :  { %892 = vmatprep.subr.bf16.mxu0 %v8165_v57  ;;  %933 = vmatprep.subr.bf16.mxu1 %v8167_v60  ;;  %v8142_v37 = vcombine.low %v10538_v17, %v10558_v21  ;;  %v8133_v24 = vcombine.high %v10493_v8, %v10513_v12  ;;  %v8135_v25 = vcombine.high %v10498_v9, %v10518_v13 }
  0x79   :  { %v8132_v28 = vcombine.low %v10493_v8, %v10513_v12  ;;  %v8134_v29 = vcombine.low %v10498_v9, %v10518_v13  ;;  %v8125_v16 = vcombine.high %v10453_v0, %v10473_v4  ;;  %v8127_v17 = vcombine.high %v10458_v1, %v10478_v5 }
  0x7a   :  { %v8124_v8 = vcombine.low %v10453_v0, %v10473_v4  ;;  %v8126_v9 = vcombine.low %v10458_v1, %v10478_v5  ;;  %v8185_v12 = vcombine.high %v10743_v58, %v10763_v62  ;;  %v8187_v13 = vcombine.high %v10748_v59, %v10768_v63 }
  0x7b   :  { %893 = vmatpush1.bf16.msra.mxu0 %v8164_v10  ;;  %934 = vmatpush1.bf16.msra.mxu1 %v8166_v48  ;;  %v11056_v21 = vpack.c.bf16 %v460_v20, %v460_v20  ;;  %v8184_v15 = vcombine.low %v10743_v58, %v10763_v62  ;;  %v8186_v0 = vcombine.low %v10748_v59, %v10768_v63 }
  0x7c   :  { %894 = vmatprep.subr.bf16.mxu0 %v8157_v49  ;;  %935 = vmatprep.subr.bf16.mxu1 %v8159_v52  ;;  %v8177_v1 = vcombine.high %v10703_v50, %v10723_v54  ;;  %v8179_v4 = vcombine.high %v10708_v51, %v10728_v55  ;;  %v8176_v5 = vcombine.low %v10703_v50, %v10723_v54 }
  0x7d   :  { %v8178_v58 = vcombine.low %v10708_v51, %v10728_v55  ;;  %v8169_v59 = vcombine.high %v10663_v42, %v10683_v46  ;;  %v8171_v62 = vcombine.high %v10668_v43, %v10688_v47  ;;  %v8168_v50 = vcombine.low %v10663_v42, %v10683_v46 }
  0x7e   :  { %v8170_v51 = vcombine.low %v10668_v43, %v10688_v47  ;;  %v8161_v54 = vcombine.high %v10623_v34, %v10643_v38  ;;  %v8163_v55 = vcombine.high %v10628_v35, %v10648_v39  ;;  %v8160_v63 = vcombine.low %v10623_v34, %v10643_v38 }
  0x7f   :  { %895 = vmatpush1.bf16.msra.mxu0 %v8156_v53  ;;  %936 = vmatpush1.bf16.msra.mxu1 %v8158_v11  ;;  %v8162_v3 = vcombine.low %v10628_v35, %v10648_v39  ;;  %v8153_v42 = vcombine.high %v10583_v26, %v10603_v30  ;;  %v8155_v43 = vcombine.high %v10588_v27, %v10608_v31  ;;  %v526_v53 = vld [vmem:[#allocation12] sm:$0xff] }
  0x80   :  { %896 = vmatprep.subr.bf16.mxu0 %v8149_v40  ;;  %937 = vmatprep.subr.bf16.mxu1 %v8151_v41  ;;  %v8152_v46 = vcombine.low %v10583_v26, %v10603_v30  ;;  %v8154_v47 = vcombine.low %v10588_v27, %v10608_v31  ;;  %v8145_v34 = vcombine.high %v10543_v18, %v10563_v22  ;;  %v11392_v26 = vld [vmem:[#allocation46_spill] sm:$0xff]  ;;  %v11393_v30 = vld [vmem:[#allocation48_spill] sm:$0xff]  ;;  %v11394_v31 = vld [vmem:[#allocation47_spill] sm:$0xff] }
  0x81   :  { %v8147_v35 = vcombine.high %v10548_v19, %v10568_v23  ;;  %v8144_v38 = vcombine.low %v10543_v18, %v10563_v22  ;;  %v8146_v39 = vcombine.low %v10548_v19, %v10568_v23  ;;  %v8137_v27 = vcombine.high %v11392_v26, %v10523_v14  ;;  %v11395_v18 = vld [vmem:[#allocation44_spill] sm:$0xff]  ;;  %v11396_v19 = vld [vmem:[#allocation42_spill] sm:$0xff]  ;;  %v11397_v23 = vld [vmem:[#allocation45_spill] sm:$0xff] }
  0x82   :  { %v8139_v7 = vcombine.high %v11394_v31, %v11393_v30  ;;  %v8136_v2 = vcombine.low %v11392_v26, %v10523_v14  ;;  %v8138_v6 = vcombine.low %v11394_v31, %v11393_v30  ;;  %v8129_v22 = vcombine.high %v11396_v19, %v11395_v18 }
  0x83   :  { %897 = vmatpush1.bf16.msra.mxu0 %v8148_v44  ;;  %938 = vmatpush1.bf16.msra.mxu1 %v8150_v45  ;;  %v8131_v57 = vcombine.high %v11398_v56, %v11397_v23  ;;  %v8128_v60 = vcombine.low %v11396_v19, %v11395_v18  ;;  %v8130_v10 = vcombine.low %v11398_v56, %v11397_v23  ;;  %v528_v14 = vlaneseq }
  0x84   :  { %898 = vmatprep.subr.bf16.mxu0 %v8141_v32  ;;  %939 = vmatprep.subr.bf16.mxu1 %v8143_v33 }
  0x85   :  { %v11124_v48 = vshrl.u32 %v528_v14, 7 }
  0x87   :  { %899 = vmatpush1.bf16.msra.mxu0 %v8140_v36  ;;  %940 = vmatpush1.bf16.msra.mxu1 %v8142_v37  ;;  %v11127_v49 = vsub.s32 0, %v11124_v48  ;;  %v11130_v52 = vsub.s32 2, %v11124_v48  ;;  %v11133_v11 = vsub.s32 1, %v11124_v48  ;;  %v11136_v40 = vsub.s32 3, %v11124_v48 }
  0x88   :  { %900 = vmatprep.subr.bf16.mxu0 %v8133_v24  ;;  %941 = vmatprep.subr.bf16.mxu1 %v8135_v25 }
  0x89   :  { %v531_v41 = vrot.slane %v526_v53, %v11127_v49  ;;  %v539_v44 = vrot.slane %v526_v53, %v11130_v52  ;;  %v535_v45 = vrot.slane %v526_v53, %v11133_v11  ;;  %v543_v32 = vrot.slane %v526_v53, %v11136_v40 }
  0x8b   :  { %901 = vmatpush1.bf16.msra.mxu0 %v8132_v28  ;;  %942 = vmatpush1.bf16.msra.mxu1 %v8134_v29 }
  0x8c   :  { %902 = vmatprep.subr.bf16.mxu0 %v8125_v16  ;;  %943 = vmatprep.subr.bf16.mxu1 %v8127_v17 }
  0x8f   :  { %903 = vmatpush1.bf16.msra.mxu0 %v8124_v8  ;;  %944 = vmatpush1.bf16.msra.mxu1 %v8126_v9 }
  0x90   :  { %970 = vmatprep.subr.bf16.mxu0 %v8185_v12  ;;  %1011 = vmatprep.subr.bf16.mxu1 %v8187_v13 }
  0x92   :  { %921 = vmatmul.mubr.bf16.vlgmr.msra.gmra.mxu0 %v11056_v21  ;;  %962 = vmatmul.mubr.bf16.vlgmr.msra.gmra.mxu1 %v11056_v21 }
  0x93   :  { %971 = vmatpush1.bf16.msra.mxu0 %v8184_v15  ;;  %1012 = vmatpush1.bf16.msra.mxu1 %v8186_v0 }
  0x94   :  { %972 = vmatprep.subr.bf16.mxu0 %v8177_v1  ;;  %1013 = vmatprep.subr.bf16.mxu1 %v8179_v4 }
  0x95   :  { %1002 = vmatprep.mubr.bf16.mxu0 %v10384_v61  ;;  %1043 = vmatprep.mubr.bf16.mxu1 %v10384_v61 }
  0x97   :  { %973 = vmatpush1.bf16.msra.mxu0 %v8176_v5  ;;  %1014 = vmatpush1.bf16.msra.mxu1 %v8178_v58  ;;  %v546_v58 = vsub.s32 4, %v11124_v48 }
  0x98   :  { %974 = vmatprep.subr.bf16.mxu0 %v8169_v59  ;;  %1015 = vmatprep.subr.bf16.mxu1 %v8171_v62  ;;  %v554_v59 = vsub.s32 6, %v11124_v48  ;;  %v550_v62 = vsub.s32 5, %v11124_v48 }
  0x9b   :  { %975 = vmatpush1.bf16.msra.mxu0 %v8168_v50  ;;  %1016 = vmatpush1.bf16.msra.mxu1 %v8170_v51  ;;  %v558_v50 = vsub.s32 7, %v11124_v48  ;;  %v547_v51 = vrot.slane %v526_v53, %v546_v58 }
  0x9c   :  { %976 = vmatprep.subr.bf16.mxu0 %v8161_v54  ;;  %1017 = vmatprep.subr.bf16.mxu1 %v8163_v55  ;;  %v555_v54 = vrot.slane %v526_v53, %v554_v59  ;;  %v551_v55 = vrot.slane %v526_v53, %v550_v62 }
  0x9f   :  { %977 = vmatpush1.bf16.msra.mxu0 %v8160_v63  ;;  %1018 = vmatpush1.bf16.msra.mxu1 %v8162_v3  ;;  %v559_v63 = vrot.slane %v526_v53, %v558_v50 }
  0xa0   :  { %978 = vmatprep.subr.bf16.mxu0 %v8153_v42  ;;  %1019 = vmatprep.subr.bf16.mxu1 %v8155_v43 }
  0xa3   :  { %979 = vmatpush1.bf16.msra.mxu0 %v8152_v46  ;;  %1020 = vmatpush1.bf16.msra.mxu1 %v8154_v47 }
  0xa4   :  { %980 = vmatprep.subr.bf16.mxu0 %v8145_v34  ;;  %1021 = vmatprep.subr.bf16.mxu1 %v8147_v35 }
  0xa7   :  { %981 = vmatpush1.bf16.msra.mxu0 %v8144_v38  ;;  %1022 = vmatpush1.bf16.msra.mxu1 %v8146_v39 }
  0xa8   :  { %982 = vmatprep.subr.bf16.mxu0 %v8137_v27  ;;  %1023 = vmatprep.subr.bf16.mxu1 %v8139_v7 }
  0xab   :  { %983 = vmatpush1.bf16.msra.mxu0 %v8136_v2  ;;  %1024 = vmatpush1.bf16.msra.mxu1 %v8138_v6 }
  0xac   :  { %984 = vmatprep.subr.bf16.mxu0 %v8129_v22  ;;  %1025 = vmatprep.subr.bf16.mxu1 %v8131_v57 }
  0xaf   :  { %985 = vmatpush1.bf16.msra.mxu0 %v8128_v60  ;;  %1026 = vmatpush1.bf16.msra.mxu1 %v8130_v10 }
  0xb2   :  { %1003 = vmatmul.mubr.bf16.vlgmr.msra.gmra.mxu0 %v11056_v21  ;;  %1044 = vmatmul.mubr.bf16.vlgmr.msra.gmra.mxu1 %v11056_v21 }
 0x152   :  { %v922_v33 = vpop.f32.mrf.mxu0  ;;  %v963_v36 = vpop.f32.mrf.mxu1 }
 0x153   :  { %v923_v37 = vadd.f32 %v922_v33, %v531_v41  ;;  %v964_v24 = vadd.f32 %v963_v36, %v539_v44 }
 0x154   :  { %v924_v25 = vpop.f32.mrf.mxu0  ;;  %v965_v28 = vpop.f32.mrf.mxu1 }
 0x155   :  { %v1052_v29 = vmax.f32 %v923_v37, 0.0  ;;  %v1054_v16 = vmax.f32 %v964_v24, 0.0  ;;  %v925_v17 = vadd.f32 %v924_v25, %v535_v45  ;;  %v966_v20 = vadd.f32 %v965_v28, %v543_v32 }
 0x156   :  { %v926_v8 = vpop.f32.mrf.mxu0  ;;  %v967_v9 = vpop.f32.mrf.mxu1 }
 0x157   :  { %v11142_v12 = vpack.c.bf16 %v1052_v29, %v1052_v29  ;;  %v11144_v13 = vpack.c.bf16 %v1054_v16, %v1054_v16  ;;  %v1053_v21 = vmax.f32 %v925_v17, 0.0  ;;  %v1055_v15 = vmax.f32 %v966_v20, 0.0 }
 0x158   :  { %v927_v0 = vpop.f32.mrf.mxu0  ;;  %v968_v1 = vpop.f32.mrf.mxu1 }
 0x159   :  { %v11146_v4 = vpack.c.bf16 %v1053_v21, %v1053_v21  ;;  %v11148_v5 = vpack.c.bf16 %v1055_v15, %v1055_v15 }
 0x172   :  { %v1004_v3 = vpop.f32.mrf.mxu0  ;;  %v1045_v42 = vpop.f32.mrf.mxu1 }
 0x173   :  { %v1005_v43 = vadd.f32 %v1004_v3, %v547_v51  ;;  %v1046_v46 = vadd.f32 %v1045_v42, %v555_v54 }
 0x174   :  { %v1006_v47 = vpop.f32.mrf.mxu0  ;;  %v1047_v34 = vpop.f32.mrf.mxu1 }
 0x175   :  { %v1056_v35 = vmax.f32 %v1005_v43, 0.0  ;;  %v1058_v38 = vmax.f32 %v1046_v46, 0.0  ;;  %v1007_v39 = vadd.f32 %v1006_v47, %v551_v55  ;;  %v1048_v26 = vadd.f32 %v1047_v34, %v559_v63 }
 0x176   :  { %v1008_v27 = vpop.f32.mrf.mxu0  ;;  %v1049_v30 = vpop.f32.mrf.mxu1 }
 0x177   :  { %v11162_v31 = vpack.c.bf16 %v1056_v35, %v1056_v35  ;;  %v11164_v7 = vpack.c.bf16 %v1058_v38, %v1058_v38  ;;  %v1057_v2 = vmax.f32 %v1007_v39, 0.0  ;;  %v1059_v6 = vmax.f32 %v1048_v26, 0.0 }
 0x178   :  { %v1009_v18 = vpop.f32.mrf.mxu0  ;;  %v1050_v19 = vpop.f32.mrf.mxu1 }
 0x179   :  { %v11166_v22 = vpack.c.bf16 %v1057_v2, %v1057_v2  ;;  %v11168_v23 = vpack.c.bf16 %v1059_v6, %v1059_v6 }
 0x17a   :  { %10360 = dma.done.wait [#allocation11 + $0x1], 32768 }
 0x17b   :  { %10361 = vsyncadd [#allocation11 + $0x1], 4294934528  ;;  %2662 = vmatprep.mubr.bf16.mxu0 %v11146_v4  ;;  %2703 = vmatprep.mubr.bf16.mxu1 %v11148_v5  ;;  %v9436_v56 = vld [vmem:[#allocation3 + $0xe4] ss:$16 sps:$4 sm:$0xff]   ;;  %v9440_v60 = vld [vmem:[#allocation3 + $0xe0] ss:$16 sps:$4 sm:$0xff]  }
 0x17c   :  { %v9438_v57 = vld [vmem:[#allocation3 + $0x2e4] ss:$16 sps:$4 sm:$0xff]   ;;  %2630 = vmatprep.subr.bf16.mxu0 %v9436_v56  ;;  %v9441_v10 = vld [vmem:[#allocation3 + $0x2e0] ss:$16 sps:$4 sm:$0xff]  }
 0x17d   :  { %2671 = vmatprep.subr.bf16.mxu1 %v9438_v57  ;;  %v9442_v14 = vld [vmem:[#allocation3 + $0xc4] ss:$16 sps:$4 sm:$0xff]   ;;  %2631 = vmatpush1.bf16.msra.mxu0 %v9440_v60  ;;  %v9446_v41 = vld [vmem:[#allocation3 + $0xc0] ss:$16 sps:$4 sm:$0xff]  }
 0x17e   :  { %2672 = vmatpush1.bf16.msra.mxu1 %v9441_v10  ;;  %v9444_v53 = vld [vmem:[#allocation3 + $0x2c4] ss:$16 sps:$4 sm:$0xff]   ;;  %2632 = vmatprep.subr.bf16.mxu0 %v9442_v14  ;;  %v9447_v44 = vld [vmem:[#allocation3 + $0x2c0] ss:$16 sps:$4 sm:$0xff]  }
 0x17f   :  { %2673 = vmatprep.subr.bf16.mxu1 %v9444_v53  ;;  %v9448_v45 = vld [vmem:[#allocation3 + $0xa4] ss:$16 sps:$4 sm:$0xff]   ;;  %v9452_v33 = vld [vmem:[#allocation3 + $0xa0] ss:$16 sps:$4 sm:$0xff]  }
 0x180   :  { %v9450_v32 = vld [vmem:[#allocation3 + $0x2a4] ss:$16 sps:$4 sm:$0xff]   ;;  %v9453_v36 = vld [vmem:[#allocation3 + $0x2a0] ss:$16 sps:$4 sm:$0xff]  }
 0x181   :  { %2633 = vmatpush1.bf16.msra.mxu0 %v9446_v41  ;;  %v9454_v37 = vld [vmem:[#allocation3 + $0x84] ss:$16 sps:$4 sm:$0xff]   ;;  %v9458_v25 = vld [vmem:[#allocation3 + $0x80] ss:$16 sps:$4 sm:$0xff]  }
 0x182   :  { %2674 = vmatpush1.bf16.msra.mxu1 %v9447_v44  ;;  %2634 = vmatprep.subr.bf16.mxu0 %v9448_v45  ;;  %v9456_v24 = vld [vmem:[#allocation3 + $0x284] ss:$16 sps:$4 sm:$0xff]   ;;  %v9459_v28 = vld [vmem:[#allocation3 + $0x280] ss:$16 sps:$4 sm:$0xff]  }
 0x183   :  { %2675 = vmatprep.subr.bf16.mxu1 %v9450_v32  ;;  %v9460_v29 = vld [vmem:[#allocation3 + $0x64] ss:$16 sps:$4 sm:$0xff]   ;;  %v9464_v17 = vld [vmem:[#allocation3 + $0x60] ss:$16 sps:$4 sm:$0xff]  }
 0x184   :  { %v9462_v16 = vld [vmem:[#allocation3 + $0x264] ss:$16 sps:$4 sm:$0xff]   ;;  %v9465_v20 = vld [vmem:[#allocation3 + $0x260] ss:$16 sps:$4 sm:$0xff]  }
 0x185   :  { %2635 = vmatpush1.bf16.msra.mxu0 %v9452_v33  ;;  %v9466_v8 = vld [vmem:[#allocation3 + $0x44] ss:$16 sps:$4 sm:$0xff]   ;;  %v9470_v21 = vld [vmem:[#allocation3 + $0x40] ss:$16 sps:$4 sm:$0xff]  }
 0x186   :  { %2676 = vmatpush1.bf16.msra.mxu1 %v9453_v36  ;;  %2636 = vmatprep.subr.bf16.mxu0 %v9454_v37  ;;  %v9468_v9 = vld [vmem:[#allocation3 + $0x244] ss:$16 sps:$4 sm:$0xff]   ;;  %v9471_v15 = vld [vmem:[#allocation3 + $0x240] ss:$16 sps:$4 sm:$0xff]  }
 0x187   :  { %2677 = vmatprep.subr.bf16.mxu1 %v9456_v24  ;;  %v9472_v0 = vld [vmem:[#allocation3 + $0x24] ss:$16 sps:$4 sm:$0xff]   ;;  %v9476_v51 = vld [vmem:[#allocation3 + $0x20] ss:$16 sps:$4 sm:$0xff]  }
 0x188   :  { %v9474_v1 = vld [vmem:[#allocation3 + $0x224] ss:$16 sps:$4 sm:$0xff]   ;;  %v9477_v54 = vld [vmem:[#allocation3 + $0x220] ss:$16 sps:$4 sm:$0xff]  }
 0x189   :  { %2637 = vmatpush1.bf16.msra.mxu0 %v9458_v25  ;;  %v9478_v55 = vld [vmem:[#allocation3 + $0x4] ss:$16 sps:$4 sm:$0xff]   ;;  %v9482_v3 = vld [vmem:[#allocation3] ss:$16 sps:$4 sm:$0xff]  }
 0x18a   :  { %2678 = vmatpush1.bf16.msra.mxu1 %v9459_v28  ;;  %2638 = vmatprep.subr.bf16.mxu0 %v9460_v29  ;;  %v9480_v63 = vld [vmem:[#allocation3 + $0x204] ss:$16 sps:$4 sm:$0xff]   ;;  %v9483_v42 = vld [vmem:[#allocation3 + $0x200] ss:$16 sps:$4 sm:$0xff]  }
 0x18b   :  { %2679 = vmatprep.subr.bf16.mxu1 %v9462_v16  ;;  %v9484_v43 = vld [vmem:[#allocation3 + $0x1e4] ss:$16 sps:$4 sm:$0xff]   ;;  %v9488_v47 = vld [vmem:[#allocation3 + $0x1e0] ss:$16 sps:$4 sm:$0xff]  }
 0x18c   :  { %v9486_v46 = vld [vmem:[#allocation3 + $0x3e4] ss:$16 sps:$4 sm:$0xff]   ;;  %v9489_v34 = vld [vmem:[#allocation3 + $0x3e0] ss:$16 sps:$4 sm:$0xff]  }
 0x18d   :  { %2639 = vmatpush1.bf16.msra.mxu0 %v9464_v17  ;;  %v9490_v35 = vld [vmem:[#allocation3 + $0x1c4] ss:$16 sps:$4 sm:$0xff]   ;;  %v9494_v39 = vld [vmem:[#allocation3 + $0x1c0] ss:$16 sps:$4 sm:$0xff]  }
 0x18e   :  { %2680 = vmatpush1.bf16.msra.mxu1 %v9465_v20  ;;  %2640 = vmatprep.subr.bf16.mxu0 %v9466_v8  ;;  %v9492_v38 = vld [vmem:[#allocation3 + $0x3c4] ss:$16 sps:$4 sm:$0xff]   ;;  %v9495_v26 = vld [vmem:[#allocation3 + $0x3c0] ss:$16 sps:$4 sm:$0xff]  }
 0x18f   :  { %2681 = vmatprep.subr.bf16.mxu1 %v9468_v9  ;;  %v9496_v27 = vld [vmem:[#allocation3 + $0x1a4] ss:$16 sps:$4 sm:$0xff]   ;;  %v9500_v2 = vld [vmem:[#allocation3 + $0x1a0] ss:$16 sps:$4 sm:$0xff]  }
 0x190   :  { %v9498_v30 = vld [vmem:[#allocation3 + $0x3a4] ss:$16 sps:$4 sm:$0xff]   ;;  %v9501_v6 = vld [vmem:[#allocation3 + $0x3a0] ss:$16 sps:$4 sm:$0xff]  }
 0x191   :  { %2641 = vmatpush1.bf16.msra.mxu0 %v9470_v21  ;;  %v9502_v18 = vld [vmem:[#allocation3 + $0x184] ss:$16 sps:$4 sm:$0xff]   ;;  %v9506_v56 = vld [vmem:[#allocation3 + $0x180] ss:$16 sps:$4 sm:$0xff]  }
 0x192   :  { %2682 = vmatpush1.bf16.msra.mxu1 %v9471_v15  ;;  %2642 = vmatprep.subr.bf16.mxu0 %v9472_v0  ;;  %v9504_v19 = vld [vmem:[#allocation3 + $0x384] ss:$16 sps:$4 sm:$0xff]   ;;  %v9507_v57 = vld [vmem:[#allocation3 + $0x380] ss:$16 sps:$4 sm:$0xff]  }
 0x193   :  { %2683 = vmatprep.subr.bf16.mxu1 %v9474_v1  ;;  %v9508_v60 = vld [vmem:[#allocation3 + $0x164] ss:$16 sps:$4 sm:$0xff]   ;;  %v9512_v14 = vld [vmem:[#allocation3 + $0x160] ss:$16 sps:$4 sm:$0xff]  }
 0x194   :  { %v9510_v10 = vld [vmem:[#allocation3 + $0x364] ss:$16 sps:$4 sm:$0xff]   ;;  %v9513_v53 = vld [vmem:[#allocation3 + $0x360] ss:$16 sps:$4 sm:$0xff]  }
 0x195   :  { %2643 = vmatpush1.bf16.msra.mxu0 %v9476_v51  ;;  %v9514_v41 = vld [vmem:[#allocation3 + $0x144] ss:$16 sps:$4 sm:$0xff]   ;;  %v9518_v45 = vld [vmem:[#allocation3 + $0x140] ss:$16 sps:$4 sm:$0xff]  }
 0x196   :  { %2684 = vmatpush1.bf16.msra.mxu1 %v9477_v54  ;;  %2644 = vmatprep.subr.bf16.mxu0 %v9478_v55  ;;  %v9516_v44 = vld [vmem:[#allocation3 + $0x344] ss:$16 sps:$4 sm:$0xff]   ;;  %v9519_v32 = vld [vmem:[#allocation3 + $0x340] ss:$16 sps:$4 sm:$0xff]  }
 0x197   :  { %2685 = vmatprep.subr.bf16.mxu1 %v9480_v63  ;;  %v9520_v33 = vld [vmem:[#allocation3 + $0x124] ss:$16 sps:$4 sm:$0xff]   ;;  %v9524_v37 = vld [vmem:[#allocation3 + $0x120] ss:$16 sps:$4 sm:$0xff]  }
 0x198   :  { %v9522_v36 = vld [vmem:[#allocation3 + $0x324] ss:$16 sps:$4 sm:$0xff]   ;;  %v9525_v24 = vld [vmem:[#allocation3 + $0x320] ss:$16 sps:$4 sm:$0xff]  }
 0x199   :  { %2645 = vmatpush1.bf16.msra.mxu0 %v9482_v3  ;;  %v9526_v25 = vld [vmem:[#allocation3 + $0x104] ss:$16 sps:$4 sm:$0xff]   ;;  %v9530_v29 = vld [vmem:[#allocation3 + $0x100] ss:$16 sps:$4 sm:$0xff]  }
 0x19a   :  { %2686 = vmatpush1.bf16.msra.mxu1 %v9483_v42  ;;  %2646 = vmatprep.subr.bf16.mxu0 %v9484_v43  ;;  %v9528_v28 = vld [vmem:[#allocation3 + $0x304] ss:$16 sps:$4 sm:$0xff]   ;;  %v9531_v16 = vld [vmem:[#allocation3 + $0x300] ss:$16 sps:$4 sm:$0xff]  }
 0x19b   :  { %2687 = vmatprep.subr.bf16.mxu1 %v9486_v46  ;;  %v9534_v17 = vld [vmem:[#allocation3 + $0x4e4] ss:$16 sps:$4 sm:$0xff]   ;;  %v9532_v8 = vld [vmem:[#allocation3 + $0x4e0] ss:$16 sps:$4 sm:$0xff]  }
 0x19c   :  { %v9537_v20 = vld [vmem:[#allocation3 + $0x6e4] ss:$16 sps:$4 sm:$0xff]   ;;  %v9535_v9 = vld [vmem:[#allocation3 + $0x6e0] ss:$16 sps:$4 sm:$0xff]  }
 0x19d   :  { %2647 = vmatpush2.bf16.msra.mxu0 %v9488_v47  ;;  %v9540_v21 = vld [vmem:[#allocation3 + $0x4c4] ss:$16 sps:$4 sm:$0xff]   ;;  %v9538_v0 = vld [vmem:[#allocation3 + $0x4c0] ss:$16 sps:$4 sm:$0xff]  }
 0x19e   :  { %2688 = vmatpush2.bf16.msra.mxu1 %v9489_v34  ;;  %2648 = vmatprep.subr.bf16.mxu0 %v9490_v35  ;;  %v9543_v15 = vld [vmem:[#allocation3 + $0x6c4] ss:$16 sps:$4 sm:$0xff]   ;;  %v9541_v1 = vld [vmem:[#allocation3 + $0x6c0] ss:$16 sps:$4 sm:$0xff]  }
 0x19f   :  { %2689 = vmatprep.subr.bf16.mxu1 %v9492_v38  ;;  %v9546_v51 = vld [vmem:[#allocation3 + $0x4a4] ss:$16 sps:$4 sm:$0xff]   ;;  %v9544_v55 = vld [vmem:[#allocation3 + $0x4a0] ss:$16 sps:$4 sm:$0xff]  }
 0x1a0   :  { %v9549_v54 = vld [vmem:[#allocation3 + $0x6a4] ss:$16 sps:$4 sm:$0xff]   ;;  %v9547_v63 = vld [vmem:[#allocation3 + $0x6a0] ss:$16 sps:$4 sm:$0xff]  }
 0x1a1   :  { %2649 = vmatpush2.bf16.msra.mxu0 %v9494_v39  ;;  %v9552_v3 = vld [vmem:[#allocation3 + $0x484] ss:$16 sps:$4 sm:$0xff]   ;;  %v9550_v43 = vld [vmem:[#allocation3 + $0x480] ss:$16 sps:$4 sm:$0xff]  }
 0x1a2   :  { %2690 = vmatpush2.bf16.msra.mxu1 %v9495_v26  ;;  %2650 = vmatprep.subr.bf16.mxu0 %v9496_v27  ;;  %v9555_v42 = vld [vmem:[#allocation3 + $0x684] ss:$16 sps:$4 sm:$0xff]   ;;  %v9553_v46 = vld [vmem:[#allocation3 + $0x680] ss:$16 sps:$4 sm:$0xff]  }
 0x1a3   :  { %2691 = vmatprep.subr.bf16.mxu1 %v9498_v30  ;;  %v9558_v47 = vld [vmem:[#allocation3 + $0x464] ss:$16 sps:$4 sm:$0xff]   ;;  %v9556_v35 = vld [vmem:[#allocation3 + $0x460] ss:$16 sps:$4 sm:$0xff]  }
 0x1a4   :  { %v9561_v34 = vld [vmem:[#allocation3 + $0x664] ss:$16 sps:$4 sm:$0xff]   ;;  %v9559_v38 = vld [vmem:[#allocation3 + $0x660] ss:$16 sps:$4 sm:$0xff]  }
 0x1a5   :  { %2651 = vmatpush2.bf16.msra.mxu0 %v9500_v2  ;;  %v9564_v39 = vld [vmem:[#allocation3 + $0x444] ss:$16 sps:$4 sm:$0xff]   ;;  %v9562_v27 = vld [vmem:[#allocation3 + $0x440] ss:$16 sps:$4 sm:$0xff]  }
 0x1a6   :  { %2692 = vmatpush2.bf16.msra.mxu1 %v9501_v6  ;;  %2652 = vmatprep.subr.bf16.mxu0 %v9502_v18  ;;  %v9567_v26 = vld [vmem:[#allocation3 + $0x644] ss:$16 sps:$4 sm:$0xff]   ;;  %v9565_v30 = vld [vmem:[#allocation3 + $0x640] ss:$16 sps:$4 sm:$0xff]  }
 0x1a7   :  { %2693 = vmatprep.subr.bf16.mxu1 %v9504_v19  ;;  %v9570_v2 = vld [vmem:[#allocation3 + $0x424] ss:$16 sps:$4 sm:$0xff]   ;;  %v9568_v18 = vld [vmem:[#allocation3 + $0x420] ss:$16 sps:$4 sm:$0xff]  }
 0x1a8   :  { %v9573_v6 = vld [vmem:[#allocation3 + $0x624] ss:$16 sps:$4 sm:$0xff]   ;;  %v9571_v19 = vld [vmem:[#allocation3 + $0x620] ss:$16 sps:$4 sm:$0xff]  }
 0x1a9   :  { %2653 = vmatpush2.bf16.msra.mxu0 %v9506_v56  ;;  %v9576_v56 = vld [vmem:[#allocation3 + $0x404] ss:$16 sps:$4 sm:$0xff]  }
 0x1aa   :  { %2694 = vmatpush2.bf16.msra.mxu1 %v9507_v57  ;;  %2654 = vmatprep.subr.bf16.mxu0 %v9508_v60  ;;  %v9579_v57 = vld [vmem:[#allocation3 + $0x604] ss:$16 sps:$4 sm:$0xff]   ;;  %v9574_v60 = vld [vmem:[#allocation3 + $0x400] ss:$16 sps:$4 sm:$0xff]  }
 0x1ab   :  { %2695 = vmatprep.subr.bf16.mxu1 %v9510_v10  ;;  %v9577_v10 = vld [vmem:[#allocation3 + $0x600] ss:$16 sps:$4 sm:$0xff]  }
 0x1ad   :  { %2655 = vmatpush2.bf16.msra.mxu0 %v9512_v14  ;;  %v9582_v14 = vld [vmem:[#allocation3 + $0x5e4] ss:$16 sps:$4 sm:$0xff]  }
 0x1ae   :  { %2696 = vmatpush2.bf16.msra.mxu1 %v9513_v53  ;;  %2656 = vmatprep.subr.bf16.mxu0 %v9514_v41  ;;  %v9585_v53 = vld [vmem:[#allocation3 + $0x7e4] ss:$16 sps:$4 sm:$0xff]   ;;  %v9580_v41 = vld [vmem:[#allocation3 + $0x5e0] ss:$16 sps:$4 sm:$0xff]  }
 0x1af   :  { %2697 = vmatprep.subr.bf16.mxu1 %v9516_v44  ;;  %v9583_v44 = vld [vmem:[#allocation3 + $0x7e0] ss:$16 sps:$4 sm:$0xff]  }
 0x1b1   :  { %2657 = vmatpush2.bf16.msra.mxu0 %v9518_v45  ;;  %v9588_v45 = vld [vmem:[#allocation3 + $0x5c4] ss:$16 sps:$4 sm:$0xff]  }
 0x1b2   :  { %2698 = vmatpush2.bf16.msra.mxu1 %v9519_v32  ;;  %2658 = vmatprep.subr.bf16.mxu0 %v9520_v33  ;;  %v9591_v32 = vld [vmem:[#allocation3 + $0x7c4] ss:$16 sps:$4 sm:$0xff]   ;;  %v9586_v33 = vld [vmem:[#allocation3 + $0x5c0] ss:$16 sps:$4 sm:$0xff]  }
 0x1b3   :  { %2699 = vmatprep.subr.bf16.mxu1 %v9522_v36  ;;  %v9589_v36 = vld [vmem:[#allocation3 + $0x7c0] ss:$16 sps:$4 sm:$0xff]  }
 0x1b5   :  { %2659 = vmatpush2.bf16.msra.mxu0 %v9524_v37  ;;  %v9594_v37 = vld [vmem:[#allocation3 + $0x5a4] ss:$16 sps:$4 sm:$0xff]  }
 0x1b6   :  { %2700 = vmatpush2.bf16.msra.mxu1 %v9525_v24  ;;  %2660 = vmatprep.subr.bf16.mxu0 %v9526_v25  ;;  %v9597_v24 = vld [vmem:[#allocation3 + $0x7a4] ss:$16 sps:$4 sm:$0xff]   ;;  %v9592_v25 = vld [vmem:[#allocation3 + $0x5a0] ss:$16 sps:$4 sm:$0xff]  }
 0x1b7   :  { %2701 = vmatprep.subr.bf16.mxu1 %v9528_v28  ;;  %v9595_v28 = vld [vmem:[#allocation3 + $0x7a0] ss:$16 sps:$4 sm:$0xff]  }
 0x1b9   :  { %2661 = vmatpush2.bf16.msra.mxu0 %v9530_v29  ;;  %v9600_v29 = vld [vmem:[#allocation3 + $0x584] ss:$16 sps:$4 sm:$0xff]  }
 0x1ba   :  { %2702 = vmatpush2.bf16.msra.mxu1 %v9531_v16  ;;  %2712 = vmatprep.subr.bf16.mxu0 %v9534_v17  ;;  %v9603_v16 = vld [vmem:[#allocation3 + $0x784] ss:$16 sps:$4 sm:$0xff]   ;;  %v9598_v17 = vld [vmem:[#allocation3 + $0x580] ss:$16 sps:$4 sm:$0xff]  }
 0x1bb   :  { %2753 = vmatprep.subr.bf16.mxu1 %v9537_v20  ;;  %v9601_v20 = vld [vmem:[#allocation3 + $0x780] ss:$16 sps:$4 sm:$0xff]  }
 0x1bc   :  { %2663 = vmatmul.mubr.bf16.vlgmr.msra.gmra.mxu0 %v11142_v12 }
 0x1bd   :  { %2704 = vmatmul.mubr.bf16.vlgmr.msra.gmra.mxu1 %v11144_v13  ;;  %2713 = vmatpush1.bf16.msra.mxu0 %v9532_v8  ;;  %v9606_v8 = vld [vmem:[#allocation3 + $0x564] ss:$16 sps:$4 sm:$0xff]  }
 0x1be   :  { %2754 = vmatpush1.bf16.msra.mxu1 %v9535_v9  ;;  %2714 = vmatprep.subr.bf16.mxu0 %v9540_v21  ;;  %v9609_v9 = vld [vmem:[#allocation3 + $0x764] ss:$16 sps:$4 sm:$0xff]   ;;  %v9604_v21 = vld [vmem:[#allocation3 + $0x560] ss:$16 sps:$4 sm:$0xff]  }
 0x1bf   :  { %2755 = vmatprep.subr.bf16.mxu1 %v9543_v15  ;;  %2744 = vmatprep.mubr.bf16.mxu0 %v11166_v22  ;;  %v9607_v15 = vld [vmem:[#allocation3 + $0x760] ss:$16 sps:$4 sm:$0xff]  }
 0x1c0   :  { %2785 = vmatprep.mubr.bf16.mxu1 %v11168_v23 }
 0x1c1   :  { %2715 = vmatpush1.bf16.msra.mxu0 %v9538_v0  ;;  %v9612_v0 = vld [vmem:[#allocation3 + $0x544] ss:$16 sps:$4 sm:$0xff]  }
 0x1c2   :  { %2756 = vmatpush1.bf16.msra.mxu1 %v9541_v1  ;;  %2716 = vmatprep.subr.bf16.mxu0 %v9546_v51  ;;  %v9615_v1 = vld [vmem:[#allocation3 + $0x744] ss:$16 sps:$4 sm:$0xff]   ;;  %v9610_v51 = vld [vmem:[#allocation3 + $0x540] ss:$16 sps:$4 sm:$0xff]  }
 0x1c3   :  { %2757 = vmatprep.subr.bf16.mxu1 %v9549_v54  ;;  %v9613_v54 = vld [vmem:[#allocation3 + $0x740] ss:$16 sps:$4 sm:$0xff]  }
 0x1c5   :  { %2717 = vmatpush1.bf16.msra.mxu0 %v9544_v55  ;;  %v9618_v55 = vld [vmem:[#allocation3 + $0x524] ss:$16 sps:$4 sm:$0xff]  }
 0x1c6   :  { %2758 = vmatpush1.bf16.msra.mxu1 %v9547_v63  ;;  %2718 = vmatprep.subr.bf16.mxu0 %v9552_v3  ;;  %v9621_v63 = vld [vmem:[#allocation3 + $0x724] ss:$16 sps:$4 sm:$0xff]   ;;  %v9616_v3 = vld [vmem:[#allocation3 + $0x520] ss:$16 sps:$4 sm:$0xff]  }
 0x1c7   :  { %2759 = vmatprep.subr.bf16.mxu1 %v9555_v42  ;;  %v9619_v42 = vld [vmem:[#allocation3 + $0x720] ss:$16 sps:$4 sm:$0xff]  }
 0x1c9   :  { %2719 = vmatpush1.bf16.msra.mxu0 %v9550_v43  ;;  %v9624_v43 = vld [vmem:[#allocation3 + $0x504] ss:$16 sps:$4 sm:$0xff]  }
 0x1ca   :  { %2760 = vmatpush1.bf16.msra.mxu1 %v9553_v46  ;;  %2720 = vmatprep.subr.bf16.mxu0 %v9558_v47  ;;  %v9627_v46 = vld [vmem:[#allocation3 + $0x704] ss:$16 sps:$4 sm:$0xff]   ;;  %v9622_v47 = vld [vmem:[#allocation3 + $0x500] ss:$16 sps:$4 sm:$0xff]  }
 0x1cb   :  { %2761 = vmatprep.subr.bf16.mxu1 %v9561_v34  ;;  %v9625_v34 = vld [vmem:[#allocation3 + $0x700] ss:$16 sps:$4 sm:$0xff]  }
 0x1cd   :  { %2721 = vmatpush1.bf16.msra.mxu0 %v9556_v35  ;;  %v9630_v35 = vld [vmem:[#allocation3 + $0xec] ss:$16 sps:$4 sm:$0xff]  }
 0x1ce   :  { %2762 = vmatpush1.bf16.msra.mxu1 %v9559_v38  ;;  %2722 = vmatprep.subr.bf16.mxu0 %v9564_v39  ;;  %v9633_v38 = vld [vmem:[#allocation3 + $0x2ec] ss:$16 sps:$4 sm:$0xff]   ;;  %v9628_v39 = vld [vmem:[#allocation3 + $0xe8] ss:$16 sps:$4 sm:$0xff]  }
 0x1cf   :  { %2763 = vmatprep.subr.bf16.mxu1 %v9567_v26  ;;  %v9631_v26 = vld [vmem:[#allocation3 + $0x2e8] ss:$16 sps:$4 sm:$0xff]  }
 0x1d1   :  { %2723 = vmatpush1.bf16.msra.mxu0 %v9562_v27  ;;  %v9636_v27 = vld [vmem:[#allocation3 + $0xcc] ss:$16 sps:$4 sm:$0xff]  }
 0x1d2   :  { %2764 = vmatpush1.bf16.msra.mxu1 %v9565_v30  ;;  %2724 = vmatprep.subr.bf16.mxu0 %v9570_v2  ;;  %v9639_v30 = vld [vmem:[#allocation3 + $0x2cc] ss:$16 sps:$4 sm:$0xff]   ;;  %v9634_v2 = vld [vmem:[#allocation3 + $0xc8] ss:$16 sps:$4 sm:$0xff]  }
 0x1d3   :  { %2765 = vmatprep.subr.bf16.mxu1 %v9573_v6  ;;  %v9637_v6 = vld [vmem:[#allocation3 + $0x2c8] ss:$16 sps:$4 sm:$0xff]  }
 0x1d5   :  { %2725 = vmatpush1.bf16.msra.mxu0 %v9568_v18  ;;  %v9642_v18 = vld [vmem:[#allocation3 + $0xac] ss:$16 sps:$4 sm:$0xff]  }
 0x1d6   :  { %2766 = vmatpush1.bf16.msra.mxu1 %v9571_v19  ;;  %2726 = vmatprep.subr.bf16.mxu0 %v9576_v56  ;;  %v9645_v19 = vld [vmem:[#allocation3 + $0x2ac] ss:$16 sps:$4 sm:$0xff]   ;;  %v9640_v56 = vld [vmem:[#allocation3 + $0xa8] ss:$16 sps:$4 sm:$0xff]  }
 0x1d7   :  { %2767 = vmatprep.subr.bf16.mxu1 %v9579_v57  ;;  %v9643_v57 = vld [vmem:[#allocation3 + $0x2a8] ss:$16 sps:$4 sm:$0xff]  }
 0x1d9   :  { %2727 = vmatpush1.bf16.msra.mxu0 %v9574_v60  ;;  %v9648_v60 = vld [vmem:[#allocation3 + $0x8c] ss:$16 sps:$4 sm:$0xff]  }
 0x1da   :  { %2768 = vmatpush1.bf16.msra.mxu1 %v9577_v10  ;;  %2728 = vmatprep.subr.bf16.mxu0 %v9582_v14  ;;  %v9651_v10 = vld [vmem:[#allocation3 + $0x28c] ss:$16 sps:$4 sm:$0xff]   ;;  %v9646_v14 = vld [vmem:[#allocation3 + $0x88] ss:$16 sps:$4 sm:$0xff]  }
 0x1db   :  { %2769 = vmatprep.subr.bf16.mxu1 %v9585_v53  ;;  %v9649_v53 = vld [vmem:[#allocation3 + $0x288] ss:$16 sps:$4 sm:$0xff]  }
 0x1dd   :  { %2729 = vmatpush2.bf16.msra.mxu0 %v9580_v41  ;;  %v9654_v41 = vld [vmem:[#allocation3 + $0x6c] ss:$16 sps:$4 sm:$0xff]  }
 0x1de   :  { %2770 = vmatpush2.bf16.msra.mxu1 %v9583_v44  ;;  %2730 = vmatprep.subr.bf16.mxu0 %v9588_v45  ;;  %v9657_v44 = vld [vmem:[#allocation3 + $0x26c] ss:$16 sps:$4 sm:$0xff]   ;;  %v9652_v45 = vld [vmem:[#allocation3 + $0x68] ss:$16 sps:$4 sm:$0xff]  }
 0x1df   :  { %2771 = vmatprep.subr.bf16.mxu1 %v9591_v32  ;;  %v9663_v32 = vld [vmem:[#allocation3 + $0x24c] ss:$16 sps:$4 sm:$0xff]  }
 0x1e1   :  { %2731 = vmatpush2.bf16.msra.mxu0 %v9586_v33  ;;  %v9658_v33 = vld [vmem:[#allocation3 + $0x48] ss:$16 sps:$4 sm:$0xff]  }
 0x1e2   :  { %2772 = vmatpush2.bf16.msra.mxu1 %v9589_v36  ;;  %2732 = vmatprep.subr.bf16.mxu0 %v9594_v37  ;;  %v9661_v36 = vld [vmem:[#allocation3 + $0x248] ss:$16 sps:$4 sm:$0xff]   ;;  %v9666_v37 = vld [vmem:[#allocation3 + $0x2c] ss:$16 sps:$4 sm:$0xff]  }
 0x1e3   :  { %2773 = vmatprep.subr.bf16.mxu1 %v9597_v24  ;;  %v9669_v24 = vld [vmem:[#allocation3 + $0x22c] ss:$16 sps:$4 sm:$0xff]  }
 0x1e5   :  { %2733 = vmatpush2.bf16.msra.mxu0 %v9592_v25  ;;  %v9664_v25 = vld [vmem:[#allocation3 + $0x28] ss:$16 sps:$4 sm:$0xff]  }
 0x1e6   :  { %2774 = vmatpush2.bf16.msra.mxu1 %v9595_v28  ;;  %2734 = vmatprep.subr.bf16.mxu0 %v9600_v29  ;;  %v9667_v28 = vld [vmem:[#allocation3 + $0x228] ss:$16 sps:$4 sm:$0xff]   ;;  %v9672_v29 = vld [vmem:[#allocation3 + $0xc] ss:$16 sps:$4 sm:$0xff]  }
 0x1e7   :  { %2775 = vmatprep.subr.bf16.mxu1 %v9603_v16  ;;  %v9675_v16 = vld [vmem:[#allocation3 + $0x20c] ss:$16 sps:$4 sm:$0xff]  }
 0x1e9   :  { %2735 = vmatpush2.bf16.msra.mxu0 %v9598_v17  ;;  %v9670_v17 = vld [vmem:[#allocation3 + $0x8] ss:$16 sps:$4 sm:$0xff]  }
 0x1ea   :  { %2776 = vmatpush2.bf16.msra.mxu1 %v9601_v20  ;;  %2736 = vmatprep.subr.bf16.mxu0 %v9606_v8  ;;  %v9673_v20 = vld [vmem:[#allocation3 + $0x208] ss:$16 sps:$4 sm:$0xff]   ;;  %v9678_v8 = vld [vmem:[#allocation3 + $0x1ec] ss:$16 sps:$4 sm:$0xff]  }
 0x1eb   :  { %2777 = vmatprep.subr.bf16.mxu1 %v9609_v9  ;;  %v9681_v9 = vld [vmem:[#allocation3 + $0x3ec] ss:$16 sps:$4 sm:$0xff]  }
 0x1ed   :  { %2737 = vmatpush2.bf16.msra.mxu0 %v9604_v21  ;;  %v9676_v21 = vld [vmem:[#allocation3 + $0x1e8] ss:$16 sps:$4 sm:$0xff]  }
 0x1ee   :  { %2778 = vmatpush2.bf16.msra.mxu1 %v9607_v15  ;;  %2738 = vmatprep.subr.bf16.mxu0 %v9612_v0  ;;  %v9679_v15 = vld [vmem:[#allocation3 + $0x3e8] ss:$16 sps:$4 sm:$0xff]   ;;  %v9684_v0 = vld [vmem:[#allocation3 + $0x1cc] ss:$16 sps:$4 sm:$0xff]  }
 0x1ef   :  { %2779 = vmatprep.subr.bf16.mxu1 %v9615_v1  ;;  %v9687_v1 = vld [vmem:[#allocation3 + $0x3cc] ss:$16 sps:$4 sm:$0xff]  }
 0x1f1   :  { %2739 = vmatpush2.bf16.msra.mxu0 %v9610_v51  ;;  %v9682_v51 = vld [vmem:[#allocation3 + $0x1c8] ss:$16 sps:$4 sm:$0xff]  }
 0x1f2   :  { %2780 = vmatpush2.bf16.msra.mxu1 %v9613_v54  ;;  %2740 = vmatprep.subr.bf16.mxu0 %v9618_v55  ;;  %v9685_v54 = vld [vmem:[#allocation3 + $0x3c8] ss:$16 sps:$4 sm:$0xff]   ;;  %v9690_v55 = vld [vmem:[#allocation3 + $0x1ac] ss:$16 sps:$4 sm:$0xff]  }
 0x1f3   :  { %2781 = vmatprep.subr.bf16.mxu1 %v9621_v63  ;;  %v9693_v63 = vld [vmem:[#allocation3 + $0x3ac] ss:$16 sps:$4 sm:$0xff]  }
 0x1f5   :  { %2741 = vmatpush2.bf16.msra.mxu0 %v9616_v3  ;;  %v9688_v3 = vld [vmem:[#allocation3 + $0x1a8] ss:$16 sps:$4 sm:$0xff]  }
 0x1f6   :  { %2782 = vmatpush2.bf16.msra.mxu1 %v9619_v42  ;;  %2742 = vmatprep.subr.bf16.mxu0 %v9624_v43  ;;  %v9691_v42 = vld [vmem:[#allocation3 + $0x3a8] ss:$16 sps:$4 sm:$0xff]   ;;  %v9696_v43 = vld [vmem:[#allocation3 + $0x18c] ss:$16 sps:$4 sm:$0xff]  }
 0x1f7   :  { %2783 = vmatprep.subr.bf16.mxu1 %v9627_v46  ;;  %v9699_v46 = vld [vmem:[#allocation3 + $0x38c] ss:$16 sps:$4 sm:$0xff]  }
 0x1f9   :  { %2743 = vmatpush2.bf16.msra.mxu0 %v9622_v47  ;;  %v9694_v47 = vld [vmem:[#allocation3 + $0x188] ss:$16 sps:$4 sm:$0xff]  }
 0x1fa   :  { %2784 = vmatpush2.bf16.msra.mxu1 %v9625_v34  ;;  %2794 = vmatprep.subr.bf16.mxu0 %v9630_v35  ;;  %v9697_v34 = vld [vmem:[#allocation3 + $0x388] ss:$16 sps:$4 sm:$0xff]   ;;  %v9702_v35 = vld [vmem:[#allocation3 + $0x16c] ss:$16 sps:$4 sm:$0xff]  }
 0x1fb   :  { %2835 = vmatprep.subr.bf16.mxu1 %v9633_v38  ;;  %v9705_v38 = vld [vmem:[#allocation3 + $0x36c] ss:$16 sps:$4 sm:$0xff]  }
 0x1fc   :  { %2745 = vmatmul.mubr.bf16.vlgmr.msra.gmra.mxu0 %v11162_v31 }
 0x1fd   :  { %2786 = vmatmul.mubr.bf16.vlgmr.msra.gmra.mxu1 %v11164_v7  ;;  %2795 = vmatpush1.bf16.msra.mxu0 %v9628_v39  ;;  %v9700_v39 = vld [vmem:[#allocation3 + $0x168] ss:$16 sps:$4 sm:$0xff]  }
 0x1fe   :  { %2836 = vmatpush1.bf16.msra.mxu1 %v9631_v26  ;;  %2796 = vmatprep.subr.bf16.mxu0 %v9636_v27  ;;  %v9703_v26 = vld [vmem:[#allocation3 + $0x368] ss:$16 sps:$4 sm:$0xff]   ;;  %v9708_v27 = vld [vmem:[#allocation3 + $0x14c] ss:$16 sps:$4 sm:$0xff]  }
 0x1ff   :  { %2837 = vmatprep.subr.bf16.mxu1 %v9639_v30  ;;  %2826 = vmatprep.mubr.bf16.mxu0 %v11146_v4  ;;  %v9655_v4 = vld [vmem:[#allocation3 + $0x268] ss:$16 sps:$4 sm:$0xff]   ;;  %v9711_v30 = vld [vmem:[#allocation3 + $0x34c] ss:$16 sps:$4 sm:$0xff]  }
 0x200   :  { %2867 = vmatprep.mubr.bf16.mxu1 %v11148_v5  ;;  %v9660_v5 = vld [vmem:[#allocation3 + $0x4c] ss:$16 sps:$4 sm:$0xff]  }
 0x201   :  { %2797 = vmatpush1.bf16.msra.mxu0 %v9634_v2  ;;  %v9706_v2 = vld [vmem:[#allocation3 + $0x148] ss:$16 sps:$4 sm:$0xff]  }
 0x202   :  { %2838 = vmatpush1.bf16.msra.mxu1 %v9637_v6  ;;  %2798 = vmatprep.subr.bf16.mxu0 %v9642_v18  ;;  %v9709_v6 = vld [vmem:[#allocation3 + $0x348] ss:$16 sps:$4 sm:$0xff]   ;;  %v9714_v18 = vld [vmem:[#allocation3 + $0x12c] ss:$16 sps:$4 sm:$0xff]  }
 0x203   :  { %2839 = vmatprep.subr.bf16.mxu1 %v9645_v19  ;;  %v9717_v19 = vld [vmem:[#allocation3 + $0x32c] ss:$16 sps:$4 sm:$0xff]  }
 0x205   :  { %2799 = vmatpush1.bf16.msra.mxu0 %v9640_v56  ;;  %v9712_v56 = vld [vmem:[#allocation3 + $0x128] ss:$16 sps:$4 sm:$0xff]  }
 0x206   :  { %2840 = vmatpush1.bf16.msra.mxu1 %v9643_v57  ;;  %2800 = vmatprep.subr.bf16.mxu0 %v9648_v60  ;;  %v9715_v57 = vld [vmem:[#allocation3 + $0x328] ss:$16 sps:$4 sm:$0xff]   ;;  %v9720_v60 = vld [vmem:[#allocation3 + $0x10c] ss:$16 sps:$4 sm:$0xff]  }
 0x207   :  { %2841 = vmatprep.subr.bf16.mxu1 %v9651_v10  ;;  %v9723_v10 = vld [vmem:[#allocation3 + $0x30c] ss:$16 sps:$4 sm:$0xff]  }
 0x209   :  { %2801 = vmatpush1.bf16.msra.mxu0 %v9646_v14  ;;  %v9718_v14 = vld [vmem:[#allocation3 + $0x108] ss:$16 sps:$4 sm:$0xff]  }
 0x20a   :  { %2842 = vmatpush1.bf16.msra.mxu1 %v9649_v53  ;;  %2802 = vmatprep.subr.bf16.mxu0 %v9654_v41  ;;  %v9721_v53 = vld [vmem:[#allocation3 + $0x308] ss:$16 sps:$4 sm:$0xff]   ;;  %v9726_v41 = vld [vmem:[#allocation3 + $0x4ec] ss:$16 sps:$4 sm:$0xff]  }
 0x20b   :  { %2843 = vmatprep.subr.bf16.mxu1 %v9657_v44  ;;  %v9729_v44 = vld [vmem:[#allocation3 + $0x6ec] ss:$16 sps:$4 sm:$0xff]  }
 0x20d   :  { %2803 = vmatpush1.bf16.msra.mxu0 %v9652_v45  ;;  %v9724_v45 = vld [vmem:[#allocation3 + $0x4e8] ss:$16 sps:$4 sm:$0xff]  }
 0x20e   :  { %2844 = vmatpush1.bf16.msra.mxu1 %v9655_v4  ;;  %2804 = vmatprep.subr.bf16.mxu0 %v9660_v5  ;;  %v9727_v4 = vld [vmem:[#allocation3 + $0x6e8] ss:$16 sps:$4 sm:$0xff]   ;;  %v9732_v5 = vld [vmem:[#allocation3 + $0x4cc] ss:$16 sps:$4 sm:$0xff]  }
 0x20f   :  { %2845 = vmatprep.subr.bf16.mxu1 %v9663_v32  ;;  %v9735_v32 = vld [vmem:[#allocation3 + $0x6cc] ss:$16 sps:$4 sm:$0xff]  }
 0x211   :  { %2805 = vmatpush1.bf16.msra.mxu0 %v9658_v33  ;;  %v9730_v33 = vld [vmem:[#allocation3 + $0x4c8] ss:$16 sps:$4 sm:$0xff]  }
 0x212   :  { %2846 = vmatpush1.bf16.msra.mxu1 %v9661_v36  ;;  %2806 = vmatprep.subr.bf16.mxu0 %v9666_v37  ;;  %v9733_v36 = vld [vmem:[#allocation3 + $0x6c8] ss:$16 sps:$4 sm:$0xff]   ;;  %v9738_v37 = vld [vmem:[#allocation3 + $0x4ac] ss:$16 sps:$4 sm:$0xff]  }
 0x213   :  { %2847 = vmatprep.subr.bf16.mxu1 %v9669_v24  ;;  %v9741_v24 = vld [vmem:[#allocation3 + $0x6ac] ss:$16 sps:$4 sm:$0xff]  }
 0x215   :  { %2807 = vmatpush1.bf16.msra.mxu0 %v9664_v25  ;;  %v9736_v25 = vld [vmem:[#allocation3 + $0x4a8] ss:$16 sps:$4 sm:$0xff]  }
 0x216   :  { %2848 = vmatpush1.bf16.msra.mxu1 %v9667_v28  ;;  %2808 = vmatprep.subr.bf16.mxu0 %v9672_v29  ;;  %v9739_v28 = vld [vmem:[#allocation3 + $0x6a8] ss:$16 sps:$4 sm:$0xff]  }
 0x217   :  { %2849 = vmatprep.subr.bf16.mxu1 %v9675_v16  ;;  %v9742_v29 = vld [vmem:[#allocation3 + $0x488] ss:$16 sps:$4 sm:$0xff]  }
 0x218   :  { %v9745_v16 = vld [vmem:[#allocation3 + $0x688] ss:$16 sps:$4 sm:$0xff]  }
 0x219   :  { %2809 = vmatpush1.bf16.msra.mxu0 %v9670_v17  ;;  %v9750_v17 = vld [vmem:[#allocation3 + $0x46c] ss:$16 sps:$4 sm:$0xff]  }
 0x21a   :  { %2850 = vmatpush1.bf16.msra.mxu1 %v9673_v20  ;;  %2810 = vmatprep.subr.bf16.mxu0 %v9678_v8  ;;  %v9753_v20 = vld [vmem:[#allocation3 + $0x66c] ss:$16 sps:$4 sm:$0xff]  }
 0x21b   :  { %2851 = vmatprep.subr.bf16.mxu1 %v9681_v9  ;;  %v9756_v8 = vld [vmem:[#allocation3 + $0x44c] ss:$16 sps:$4 sm:$0xff]  }
 0x21c   :  { %v9759_v9 = vld [vmem:[#allocation3 + $0x64c] ss:$16 sps:$4 sm:$0xff]  }
 0x21d   :  { %2811 = vmatpush2.bf16.msra.mxu0 %v9676_v21  ;;  %v9754_v21 = vld [vmem:[#allocation3 + $0x448] ss:$16 sps:$4 sm:$0xff]  }
 0x21e   :  { %2852 = vmatpush2.bf16.msra.mxu1 %v9679_v15  ;;  %2812 = vmatprep.subr.bf16.mxu0 %v9684_v0  ;;  %v9757_v15 = vld [vmem:[#allocation3 + $0x648] ss:$16 sps:$4 sm:$0xff]   ;;  %v9762_v0 = vld [vmem:[#allocation3 + $0x42c] ss:$16 sps:$4 sm:$0xff]  }
 0x21f   :  { %2853 = vmatprep.subr.bf16.mxu1 %v9687_v1  ;;  %v9765_v1 = vld [vmem:[#allocation3 + $0x62c] ss:$16 sps:$4 sm:$0xff]  }
 0x221   :  { %2813 = vmatpush2.bf16.msra.mxu0 %v9682_v51  ;;  %v9760_v51 = vld [vmem:[#allocation3 + $0x428] ss:$16 sps:$4 sm:$0xff]  }
 0x222   :  { %2854 = vmatpush2.bf16.msra.mxu1 %v9685_v54  ;;  %2814 = vmatprep.subr.bf16.mxu0 %v9690_v55  ;;  %v9763_v54 = vld [vmem:[#allocation3 + $0x628] ss:$16 sps:$4 sm:$0xff]   ;;  %v9768_v55 = vld [vmem:[#allocation3 + $0x40c] ss:$16 sps:$4 sm:$0xff]  }
 0x223   :  { %2855 = vmatprep.subr.bf16.mxu1 %v9693_v63  ;;  %v9771_v63 = vld [vmem:[#allocation3 + $0x60c] ss:$16 sps:$4 sm:$0xff]  }
 0x225   :  { %2815 = vmatpush2.bf16.msra.mxu0 %v9688_v3  ;;  %v9766_v3 = vld [vmem:[#allocation3 + $0x408] ss:$16 sps:$4 sm:$0xff]  }
 0x226   :  { %2856 = vmatpush2.bf16.msra.mxu1 %v9691_v42  ;;  %2816 = vmatprep.subr.bf16.mxu0 %v9696_v43  ;;  %v9769_v42 = vld [vmem:[#allocation3 + $0x608] ss:$16 sps:$4 sm:$0xff]   ;;  %v9774_v43 = vld [vmem:[#allocation3 + $0x5ec] ss:$16 sps:$4 sm:$0xff]  }
 0x227   :  { %2857 = vmatprep.subr.bf16.mxu1 %v9699_v46  ;;  %v9777_v46 = vld [vmem:[#allocation3 + $0x7ec] ss:$16 sps:$4 sm:$0xff]  }
 0x229   :  { %2817 = vmatpush2.bf16.msra.mxu0 %v9694_v47  ;;  %v9772_v47 = vld [vmem:[#allocation3 + $0x5e8] ss:$16 sps:$4 sm:$0xff]  }
 0x22a   :  { %2858 = vmatpush2.bf16.msra.mxu1 %v9697_v34  ;;  %2818 = vmatprep.subr.bf16.mxu0 %v9702_v35  ;;  %v9775_v34 = vld [vmem:[#allocation3 + $0x7e8] ss:$16 sps:$4 sm:$0xff]   ;;  %v9780_v35 = vld [vmem:[#allocation3 + $0x5cc] ss:$16 sps:$4 sm:$0xff]  }
 0x22b   :  { %2859 = vmatprep.subr.bf16.mxu1 %v9705_v38  ;;  %v9783_v38 = vld [vmem:[#allocation3 + $0x7cc] ss:$16 sps:$4 sm:$0xff]  }
 0x22d   :  { %2819 = vmatpush2.bf16.msra.mxu0 %v9700_v39  ;;  %v9778_v39 = vld [vmem:[#allocation3 + $0x5c8] ss:$16 sps:$4 sm:$0xff]  }
 0x22e   :  { %2860 = vmatpush2.bf16.msra.mxu1 %v9703_v26  ;;  %2820 = vmatprep.subr.bf16.mxu0 %v9708_v27  ;;  %v9781_v26 = vld [vmem:[#allocation3 + $0x7c8] ss:$16 sps:$4 sm:$0xff]   ;;  %v9786_v27 = vld [vmem:[#allocation3 + $0x5ac] ss:$16 sps:$4 sm:$0xff]  }
 0x22f   :  { %2861 = vmatprep.subr.bf16.mxu1 %v9711_v30  ;;  %v9789_v30 = vld [vmem:[#allocation3 + $0x7ac] ss:$16 sps:$4 sm:$0xff]  }
 0x231   :  { %2821 = vmatpush2.bf16.msra.mxu0 %v9706_v2  ;;  %v9784_v2 = vld [vmem:[#allocation3 + $0x5a8] ss:$16 sps:$4 sm:$0xff]  }
 0x232   :  { %2862 = vmatpush2.bf16.msra.mxu1 %v9709_v6  ;;  %2822 = vmatprep.subr.bf16.mxu0 %v9714_v18  ;;  %v9787_v6 = vld [vmem:[#allocation3 + $0x7a8] ss:$16 sps:$4 sm:$0xff]   ;;  %v9792_v18 = vld [vmem:[#allocation3 + $0x58c] ss:$16 sps:$4 sm:$0xff]  }
 0x233   :  { %2863 = vmatprep.subr.bf16.mxu1 %v9717_v19  ;;  %v9795_v19 = vld [vmem:[#allocation3 + $0x78c] ss:$16 sps:$4 sm:$0xff]  }
 0x235   :  { %2823 = vmatpush2.bf16.msra.mxu0 %v9712_v56  ;;  %v9790_v56 = vld [vmem:[#allocation3 + $0x588] ss:$16 sps:$4 sm:$0xff]  }
 0x236   :  { %2864 = vmatpush2.bf16.msra.mxu1 %v9715_v57  ;;  %2824 = vmatprep.subr.bf16.mxu0 %v9720_v60  ;;  %v9793_v57 = vld [vmem:[#allocation3 + $0x788] ss:$16 sps:$4 sm:$0xff]   ;;  %v9798_v60 = vld [vmem:[#allocation3 + $0x56c] ss:$16 sps:$4 sm:$0xff]  }
 0x237   :  { %2865 = vmatprep.subr.bf16.mxu1 %v9723_v10  ;;  %v9801_v10 = vld [vmem:[#allocation3 + $0x76c] ss:$16 sps:$4 sm:$0xff]  }
 0x239   :  { %2825 = vmatpush2.bf16.msra.mxu0 %v9718_v14  ;;  %v9796_v14 = vld [vmem:[#allocation3 + $0x568] ss:$16 sps:$4 sm:$0xff]  }
 0x23a   :  { %2866 = vmatpush2.bf16.msra.mxu1 %v9721_v53  ;;  %2876 = vmatprep.subr.bf16.mxu0 %v9726_v41  ;;  %v9799_v53 = vld [vmem:[#allocation3 + $0x768] ss:$16 sps:$4 sm:$0xff]   ;;  %v9804_v41 = vld [vmem:[#allocation3 + $0x54c] ss:$16 sps:$4 sm:$0xff]  }
 0x23b   :  { %2917 = vmatprep.subr.bf16.mxu1 %v9729_v44  ;;  %v9807_v44 = vld [vmem:[#allocation3 + $0x74c] ss:$16 sps:$4 sm:$0xff]  }
 0x23c   :  { %2827 = vmatmul.mubr.bf16.vlgmr.msra.gmra.mxu0 %v11142_v12  ;;  %v9744_v12 = vld [vmem:[#allocation3 + $0x48c] ss:$16 sps:$4 sm:$0xff]  }
 0x23d   :  { %2868 = vmatmul.mubr.bf16.vlgmr.msra.gmra.mxu1 %v11144_v13  ;;  %2877 = vmatpush1.bf16.msra.mxu0 %v9724_v45  ;;  %v9747_v13 = vld [vmem:[#allocation3 + $0x68c] ss:$16 sps:$4 sm:$0xff]   ;;  %v9802_v45 = vld [vmem:[#allocation3 + $0x548] ss:$16 sps:$4 sm:$0xff]  }
 0x23e   :  { %2918 = vmatpush1.bf16.msra.mxu1 %v9727_v4  ;;  %2878 = vmatprep.subr.bf16.mxu0 %v9732_v5  ;;  %v9805_v4 = vld [vmem:[#allocation3 + $0x748] ss:$16 sps:$4 sm:$0xff]   ;;  %v9810_v5 = vld [vmem:[#allocation3 + $0x52c] ss:$16 sps:$4 sm:$0xff]  }
 0x23f   :  { %2919 = vmatprep.subr.bf16.mxu1 %v9735_v32  ;;  %2908 = vmatprep.mubr.bf16.mxu0 %v11166_v22  ;;  %v9748_v22 = vld [vmem:[#allocation3 + $0x468] ss:$16 sps:$4 sm:$0xff]   ;;  %v9813_v32 = vld [vmem:[#allocation3 + $0x72c] ss:$16 sps:$4 sm:$0xff]  }
 0x240   :  { %2949 = vmatprep.mubr.bf16.mxu1 %v11168_v23  ;;  %v9751_v23 = vld [vmem:[#allocation3 + $0x668] ss:$16 sps:$4 sm:$0xff]  }
 0x241   :  { %2879 = vmatpush1.bf16.msra.mxu0 %v9730_v33  ;;  %v9808_v33 = vld [vmem:[#allocation3 + $0x528] ss:$16 sps:$4 sm:$0xff]  }
 0x242   :  { %2920 = vmatpush1.bf16.msra.mxu1 %v9733_v36  ;;  %2880 = vmatprep.subr.bf16.mxu0 %v9738_v37  ;;  %v9811_v36 = vld [vmem:[#allocation3 + $0x728] ss:$16 sps:$4 sm:$0xff]   ;;  %v9816_v37 = vld [vmem:[#allocation3 + $0x50c] ss:$16 sps:$4 sm:$0xff]  }
 0x243   :  { %2921 = vmatprep.subr.bf16.mxu1 %v9741_v24  ;;  %v9819_v24 = vld [vmem:[#allocation3 + $0x70c] ss:$16 sps:$4 sm:$0xff]  }
 0x245   :  { %2881 = vmatpush1.bf16.msra.mxu0 %v9736_v25  ;;  %v9814_v25 = vld [vmem:[#allocation3 + $0x508] ss:$16 sps:$4 sm:$0xff]  }
 0x246   :  { %2922 = vmatpush1.bf16.msra.mxu1 %v9739_v28  ;;  %2882 = vmatprep.subr.bf16.mxu0 %v9744_v12  ;;  %v9817_v28 = vld [vmem:[#allocation3 + $0x708] ss:$16 sps:$4 sm:$0xff]  }
 0x247   :  { %2923 = vmatprep.subr.bf16.mxu1 %v9747_v13  ;;  %v1328_v12 = vld [vmem:[#allocation12 + $0x8] sm:$0xf] }
 0x248   :  { %v1333_v13 = vrot.slane %v1328_v12, %v11127_v49 }
 0x249   :  { %2883 = vmatpush1.bf16.msra.mxu0 %v9742_v29  ;;  %v1337_v29 = vrot.slane %v1328_v12, %v11133_v11 }
 0x24a   :  { %2924 = vmatpush1.bf16.msra.mxu1 %v9745_v16  ;;  %2884 = vmatprep.subr.bf16.mxu0 %v9750_v17 }
 0x24b   :  { %2925 = vmatprep.subr.bf16.mxu1 %v9753_v20 }
 0x24d   :  { %2885 = vmatpush1.bf16.msra.mxu0 %v9748_v22 }
 0x24e   :  { %2926 = vmatpush1.bf16.msra.mxu1 %v9751_v23  ;;  %2886 = vmatprep.subr.bf16.mxu0 %v9756_v8 }
 0x24f   :  { %2927 = vmatprep.subr.bf16.mxu1 %v9759_v9 }
 0x251   :  { %2887 = vmatpush1.bf16.msra.mxu0 %v9754_v21 }
 0x252   :  { %2928 = vmatpush1.bf16.msra.mxu1 %v9757_v15  ;;  %2888 = vmatprep.subr.bf16.mxu0 %v9762_v0 }
 0x253   :  { %2929 = vmatprep.subr.bf16.mxu1 %v9765_v1 }
 0x255   :  { %2889 = vmatpush1.bf16.msra.mxu0 %v9760_v51 }
 0x256   :  { %2930 = vmatpush1.bf16.msra.mxu1 %v9763_v54  ;;  %2890 = vmatprep.subr.bf16.mxu0 %v9768_v55 }
 0x257   :  { %2931 = vmatprep.subr.bf16.mxu1 %v9771_v63 }
 0x259   :  { %2891 = vmatpush1.bf16.msra.mxu0 %v9766_v3 }
 0x25a   :  { %2932 = vmatpush1.bf16.msra.mxu1 %v9769_v42  ;;  %2892 = vmatprep.subr.bf16.mxu0 %v9774_v43 }
 0x25b   :  { %2933 = vmatprep.subr.bf16.mxu1 %v9777_v46 }
 0x25d   :  { %2893 = vmatpush2.bf16.msra.mxu0 %v9772_v47 }
 0x25e   :  { %2934 = vmatpush2.bf16.msra.mxu1 %v9775_v34  ;;  %2894 = vmatprep.subr.bf16.mxu0 %v9780_v35 }
 0x25f   :  { %2935 = vmatprep.subr.bf16.mxu1 %v9783_v38 }
 0x261   :  { %2895 = vmatpush2.bf16.msra.mxu0 %v9778_v39 }
 0x262   :  { %2936 = vmatpush2.bf16.msra.mxu1 %v9781_v26  ;;  %2896 = vmatprep.subr.bf16.mxu0 %v9786_v27 }
 0x263   :  { %2937 = vmatprep.subr.bf16.mxu1 %v9789_v30 }
 0x265   :  { %2897 = vmatpush2.bf16.msra.mxu0 %v9784_v2 }
 0x266   :  { %2938 = vmatpush2.bf16.msra.mxu1 %v9787_v6  ;;  %2898 = vmatprep.subr.bf16.mxu0 %v9792_v18 }
 0x267   :  { %2939 = vmatprep.subr.bf16.mxu1 %v9795_v19 }
 0x269   :  { %2899 = vmatpush2.bf16.msra.mxu0 %v9790_v56 }
 0x26a   :  { %2940 = vmatpush2.bf16.msra.mxu1 %v9793_v57  ;;  %2900 = vmatprep.subr.bf16.mxu0 %v9798_v60 }
 0x26b   :  { %2941 = vmatprep.subr.bf16.mxu1 %v9801_v10  ;;  %v1341_v10 = vrot.slane %v1328_v12, %v11130_v52 }
 0x26d   :  { %2901 = vmatpush2.bf16.msra.mxu0 %v9796_v14  ;;  %v1345_v14 = vrot.slane %v1328_v12, %v11136_v40 }
 0x26e   :  { %2942 = vmatpush2.bf16.msra.mxu1 %v9799_v53  ;;  %2902 = vmatprep.subr.bf16.mxu0 %v9804_v41 }
 0x26f   :  { %2943 = vmatprep.subr.bf16.mxu1 %v9807_v44 }
 0x271   :  { %2903 = vmatpush2.bf16.msra.mxu0 %v9802_v45 }
 0x272   :  { %2944 = vmatpush2.bf16.msra.mxu1 %v9805_v4  ;;  %2904 = vmatprep.subr.bf16.mxu0 %v9810_v5 }
 0x273   :  { %2945 = vmatprep.subr.bf16.mxu1 %v9813_v32 }
 0x275   :  { %2905 = vmatpush2.bf16.msra.mxu0 %v9808_v33 }
 0x276   :  { %2946 = vmatpush2.bf16.msra.mxu1 %v9811_v36  ;;  %2906 = vmatprep.subr.bf16.mxu0 %v9816_v37 }
 0x277   :  { %2947 = vmatprep.subr.bf16.mxu1 %v9819_v24 }
 0x279   :  { %2907 = vmatpush2.bf16.msra.mxu0 %v9814_v25 }
 0x27a   :  { %2948 = vmatpush2.bf16.msra.mxu1 %v9817_v28 }
 0x27c   :  { %v2664_v16 = vpop.f32.mrf.mxu0  ;;  %2909 = vmatmul.mubr.bf16.vlgmr.msra.gmra.mxu0 %v11162_v31 }
 0x27d   :  { %v2705_v17 = vpop.f32.mrf.mxu1  ;;  %2950 = vmatmul.mubr.bf16.vlgmr.msra.gmra.mxu1 %v11164_v7  ;;  %v2665_v20 = vadd.f32 %v2664_v16, %v1333_v13 }
 0x27e   :  { %v2666_v22 = vpop.f32.mrf.mxu0 }
 0x27f   :  { %v2707_v23 = vpop.f32.mrf.mxu1  ;;  %v2706_v8 = vadd.f32 %v2705_v17, %v2665_v20  ;;  %v2667_v9 = vadd.f32 %v2666_v22, %v1337_v29 }
 0x280   :  { %v2668_v21 = vpop.f32.mrf.mxu0 }
 0x281   :  { %v2709_v15 = vpop.f32.mrf.mxu1  ;;  %v2708_v0 = vadd.f32 %v2707_v23, %v2667_v9 }
 0x282   :  { %v2669_v1 = vpop.f32.mrf.mxu0 }
 0x283   :  { %v2710_v51 = vpop.f32.mrf.mxu1 }
 0x2bc   :  { %v2746_v54 = vpop.f32.mrf.mxu0 }
 0x2bd   :  { %v2787_v55 = vpop.f32.mrf.mxu1  ;;  %v2747_v63 = vadd.f32 %v2746_v54, %v2706_v8 }
 0x2be   :  { %v2748_v3 = vpop.f32.mrf.mxu0 }
 0x2bf   :  { %v2789_v42 = vpop.f32.mrf.mxu1  ;;  %v2788_v43 = vadd.f32 %v2787_v55, %v2747_v63  ;;  %v2749_v46 = vadd.f32 %v2748_v3, %v2708_v0 }
 0x2c0   :  { %v2750_v31 = vpop.f32.mrf.mxu0 }
 0x2c1   :  { %v2791_v47 = vpop.f32.mrf.mxu1  ;;  %v2958_v7 = vmax.f32 %v2788_v43, 0.0  ;;  %v2790_v34 = vadd.f32 %v2789_v42, %v2749_v46 }
 0x2c2   :  { %v2751_v35 = vpop.f32.mrf.mxu0 }
 0x2c3   :  { %v2792_v38 = vpop.f32.mrf.mxu1  ;;  %v11188_v39 = vpack.c.bf16 %v2958_v7, %v2958_v7  ;;  %v2959_v26 = vmax.f32 %v2790_v34, 0.0 }
 0x2c5   :  { %v2963_v27 = vpack.c.bf16 %v2959_v26, %v2959_v26 }
 0x2fc   :  { %v2828_v30 = vpop.f32.mrf.mxu0 }
 0x2fd   :  { %v2869_v2 = vpop.f32.mrf.mxu1  ;;  %v2829_v53 = vadd.f32 %v2828_v30, %v1341_v10 }
 0x2fe   :  { %v2830_v6 = vpop.f32.mrf.mxu0 }
 0x2ff   :  { %v2871_v18 = vpop.f32.mrf.mxu1  ;;  %v2831_v41 = vadd.f32 %v2830_v6, %v1345_v14  ;;  %v2870_v44 = vadd.f32 %v2869_v2, %v2829_v53 }
 0x300   :  { %v2832_v19 = vpop.f32.mrf.mxu0 }
 0x301   :  { %v2873_v56 = vpop.f32.mrf.mxu1  ;;  %v2872_v5 = vadd.f32 %v2871_v18, %v2831_v41 }
 0x302   :  { %v2833_v57 = vpop.f32.mrf.mxu0 }
 0x303   :  { %v2874_v60 = vpop.f32.mrf.mxu1 }
 0x33c   :  { %v2910_v45 = vpop.f32.mrf.mxu0 }
 0x33d   :  { %v2951_v4 = vpop.f32.mrf.mxu1  ;;  %v2911_v32 = vadd.f32 %v2910_v45, %v2870_v44 }
 0x33e   :  { %v2912_v33 = vpop.f32.mrf.mxu0 }
 0x33f   :  { %v2953_v36 = vpop.f32.mrf.mxu1  ;;  %v2952_v37 = vadd.f32 %v2951_v4, %v2911_v32  ;;  %v2913_v24 = vadd.f32 %v2912_v33, %v2872_v5 }
 0x340   :  { %v2914_v25 = vpop.f32.mrf.mxu0 }
 0x341   :  { %v2955_v28 = vpop.f32.mrf.mxu1  ;;  %v2960_v13 = vmax.f32 %v2952_v37, 0.0  ;;  %v2954_v29 = vadd.f32 %v2953_v36, %v2913_v24 }
 0x342   :  { %v2915_v16 = vpop.f32.mrf.mxu0 }
 0x343   :  { %v2956_v17 = vpop.f32.mrf.mxu1  ;;  %v11192_v20 = vpack.c.bf16 %v2960_v13, %v2960_v13  ;;  %v2961_v12 = vmax.f32 %v2954_v29, 0.0 }
 0x345   :  { %v2965_v22 = vpack.c.bf16 %v2961_v12, %v2961_v12 }
 0x346   :  { %10362 = dma.done.wait [#allocation11 + $0x2], 8192 }
 0x347   :  { %10363 = vsyncadd [#allocation11 + $0x2], 4294959104  ;;  %3398 = vmatprep.mubr.bf16.mxu0 %v2963_v27  ;;  %3439 = vmatprep.mubr.bf16.mxu1 %v2965_v22  ;;  %v9820_v23 = vld [vmem:[#allocation4 + $0x74] ss:$8 sps:$4 sm:$0xff]   ;;  %v9824_v9 = vld [vmem:[#allocation4 + $0x70] ss:$8 sps:$4 sm:$0xff]  }
 0x348   :  { %v9822_v8 = vld [vmem:[#allocation4 + $0x174] ss:$8 sps:$4 sm:$0xff]   ;;  %3366 = vmatprep.subr.bf16.mxu0 %v9820_v23  ;;  %v9825_v21 = vld [vmem:[#allocation4 + $0x170] ss:$8 sps:$4 sm:$0xff]   ;;  %v9826_v15 = vld [vmem:[#allocation4 + $0x64] ss:$8 sps:$4 sm:$0xff]  }
 0x349   :  { %3407 = vmatprep.subr.bf16.mxu1 %v9822_v8  ;;  %3367 = vmatpush1.bf16.msra.mxu0 %v9824_v9  ;;  %v9828_v0 = vld [vmem:[#allocation4 + $0x164] ss:$8 sps:$4 sm:$0xff]   ;;  %v9830_v1 = vld [vmem:[#allocation4 + $0x60] ss:$8 sps:$4 sm:$0xff]   ;;  %v9832_v54 = vld [vmem:[#allocation4 + $0x54] ss:$8 sps:$4 sm:$0xff]  }
 0x34a   :  { %3408 = vmatpush1.bf16.msra.mxu1 %v9825_v21  ;;  %3368 = vmatprep.subr.bf16.mxu0 %v9826_v15  ;;  %v9831_v51 = vld [vmem:[#allocation4 + $0x160] ss:$8 sps:$4 sm:$0xff]   ;;  %v9834_v55 = vld [vmem:[#allocation4 + $0x154] ss:$8 sps:$4 sm:$0xff]   ;;  %v9836_v63 = vld [vmem:[#allocation4 + $0x50] ss:$8 sps:$4 sm:$0xff]  }
 0x34b   :  { %3409 = vmatprep.subr.bf16.mxu1 %v9828_v0  ;;  %v9837_v3 = vld [vmem:[#allocation4 + $0x150] ss:$8 sps:$4 sm:$0xff]   ;;  %v9838_v42 = vld [vmem:[#allocation4 + $0x44] ss:$8 sps:$4 sm:$0xff]   ;;  %v9842_v46 = vld [vmem:[#allocation4 + $0x40] ss:$8 sps:$4 sm:$0xff]  }
 0x34c   :  { %v9840_v43 = vld [vmem:[#allocation4 + $0x144] ss:$8 sps:$4 sm:$0xff]   ;;  %v9843_v31 = vld [vmem:[#allocation4 + $0x140] ss:$8 sps:$4 sm:$0xff]   ;;  %v9844_v47 = vld [vmem:[#allocation4 + $0x34] ss:$8 sps:$4 sm:$0xff]  }
 0x34d   :  { %3369 = vmatpush1.bf16.msra.mxu0 %v9830_v1  ;;  %v9846_v7 = vld [vmem:[#allocation4 + $0x134] ss:$8 sps:$4 sm:$0xff]   ;;  %v9848_v34 = vld [vmem:[#allocation4 + $0x30] ss:$8 sps:$4 sm:$0xff]   ;;  %v9850_v38 = vld [vmem:[#allocation4 + $0x24] ss:$8 sps:$4 sm:$0xff]  }
 0x34e   :  { %3410 = vmatpush1.bf16.msra.mxu1 %v9831_v51  ;;  %3370 = vmatprep.subr.bf16.mxu0 %v9832_v54  ;;  %v9849_v35 = vld [vmem:[#allocation4 + $0x130] ss:$8 sps:$4 sm:$0xff]   ;;  %v9852_v26 = vld [vmem:[#allocation4 + $0x124] ss:$8 sps:$4 sm:$0xff]   ;;  %v9854_v27 = vld [vmem:[#allocation4 + $0x20] ss:$8 sps:$4 sm:$0xff]  }
 0x34f   :  { %3411 = vmatprep.subr.bf16.mxu1 %v9834_v55  ;;  %v9855_v30 = vld [vmem:[#allocation4 + $0x120] ss:$8 sps:$4 sm:$0xff]   ;;  %v9856_v2 = vld [vmem:[#allocation4 + $0x14] ss:$8 sps:$4 sm:$0xff]   ;;  %v9860_v18 = vld [vmem:[#allocation4 + $0x10] ss:$8 sps:$4 sm:$0xff]  }
 0x350   :  { %v9858_v6 = vld [vmem:[#allocation4 + $0x114] ss:$8 sps:$4 sm:$0xff]   ;;  %v9861_v19 = vld [vmem:[#allocation4 + $0x110] ss:$8 sps:$4 sm:$0xff]   ;;  %v9862_v56 = vld [vmem:[#allocation4 + $0x4] ss:$8 sps:$4 sm:$0xff]  }
 0x351   :  { %3371 = vmatpush1.bf16.msra.mxu0 %v9836_v63  ;;  %v9864_v57 = vld [vmem:[#allocation4 + $0x104] ss:$8 sps:$4 sm:$0xff]   ;;  %v9866_v60 = vld [vmem:[#allocation4] ss:$8 sps:$4 sm:$0xff]   ;;  %v9868_v14 = vld [vmem:[#allocation4 + $0xf4] ss:$8 sps:$4 sm:$0xff]  }
 0x352   :  { %3412 = vmatpush1.bf16.msra.mxu1 %v9837_v3  ;;  %3372 = vmatprep.subr.bf16.mxu0 %v9838_v42  ;;  %v9867_v10 = vld [vmem:[#allocation4 + $0x100] ss:$8 sps:$4 sm:$0xff]   ;;  %v9870_v53 = vld [vmem:[#allocation4 + $0x1f4] ss:$8 sps:$4 sm:$0xff]   ;;  %v9872_v41 = vld [vmem:[#allocation4 + $0xf0] ss:$8 sps:$4 sm:$0xff]  }
 0x353   :  { %3413 = vmatprep.subr.bf16.mxu1 %v9840_v43  ;;  %v9873_v44 = vld [vmem:[#allocation4 + $0x1f0] ss:$8 sps:$4 sm:$0xff]   ;;  %v9874_v45 = vld [vmem:[#allocation4 + $0xe4] ss:$8 sps:$4 sm:$0xff]   ;;  %v9878_v5 = vld [vmem:[#allocation4 + $0xe0] ss:$8 sps:$4 sm:$0xff]  }
 0x354   :  { %v9876_v4 = vld [vmem:[#allocation4 + $0x1e4] ss:$8 sps:$4 sm:$0xff]   ;;  %v9879_v32 = vld [vmem:[#allocation4 + $0x1e0] ss:$8 sps:$4 sm:$0xff]   ;;  %v9880_v33 = vld [vmem:[#allocation4 + $0xd4] ss:$8 sps:$4 sm:$0xff]  }
 0x355   :  { %3373 = vmatpush1.bf16.msra.mxu0 %v9842_v46  ;;  %v9882_v36 = vld [vmem:[#allocation4 + $0x1d4] ss:$8 sps:$4 sm:$0xff]   ;;  %v9884_v37 = vld [vmem:[#allocation4 + $0xd0] ss:$8 sps:$4 sm:$0xff]   ;;  %v9886_v25 = vld [vmem:[#allocation4 + $0xc4] ss:$8 sps:$4 sm:$0xff]  }
 0x356   :  { %3414 = vmatpush1.bf16.msra.mxu1 %v9843_v31  ;;  %3374 = vmatprep.subr.bf16.mxu0 %v9844_v47  ;;  %v9885_v24 = vld [vmem:[#allocation4 + $0x1d0] ss:$8 sps:$4 sm:$0xff]   ;;  %v9888_v28 = vld [vmem:[#allocation4 + $0x1c4] ss:$8 sps:$4 sm:$0xff]   ;;  %v9890_v13 = vld [vmem:[#allocation4 + $0xc0] ss:$8 sps:$4 sm:$0xff]  }
 0x357   :  { %3415 = vmatprep.subr.bf16.mxu1 %v9846_v7  ;;  %v9891_v29 = vld [vmem:[#allocation4 + $0x1c0] ss:$8 sps:$4 sm:$0xff]   ;;  %v9892_v16 = vld [vmem:[#allocation4 + $0xb4] ss:$8 sps:$4 sm:$0xff]   ;;  %v9896_v12 = vld [vmem:[#allocation4 + $0xb0] ss:$8 sps:$4 sm:$0xff]  }
 0x358   :  { %v9894_v17 = vld [vmem:[#allocation4 + $0x1b4] ss:$8 sps:$4 sm:$0xff]   ;;  %v9897_v22 = vld [vmem:[#allocation4 + $0x1b0] ss:$8 sps:$4 sm:$0xff]   ;;  %v9898_v23 = vld [vmem:[#allocation4 + $0xa4] ss:$8 sps:$4 sm:$0xff]  }
 0x359   :  { %3375 = vmatpush1.bf16.msra.mxu0 %v9848_v34  ;;  %v9900_v8 = vld [vmem:[#allocation4 + $0x1a4] ss:$8 sps:$4 sm:$0xff]   ;;  %v9902_v9 = vld [vmem:[#allocation4 + $0xa0] ss:$8 sps:$4 sm:$0xff]   ;;  %v9904_v15 = vld [vmem:[#allocation4 + $0x94] ss:$8 sps:$4 sm:$0xff]  }
 0x35a   :  { %3416 = vmatpush1.bf16.msra.mxu1 %v9849_v35  ;;  %3376 = vmatprep.subr.bf16.mxu0 %v9850_v38  ;;  %v9903_v21 = vld [vmem:[#allocation4 + $0x1a0] ss:$8 sps:$4 sm:$0xff]   ;;  %v9906_v0 = vld [vmem:[#allocation4 + $0x194] ss:$8 sps:$4 sm:$0xff]   ;;  %v9908_v1 = vld [vmem:[#allocation4 + $0x90] ss:$8 sps:$4 sm:$0xff]  }
 0x35b   :  { %3417 = vmatprep.subr.bf16.mxu1 %v9852_v26  ;;  %v9909_v51 = vld [vmem:[#allocation4 + $0x190] ss:$8 sps:$4 sm:$0xff]   ;;  %v9910_v54 = vld [vmem:[#allocation4 + $0x84] ss:$8 sps:$4 sm:$0xff]   ;;  %v9914_v63 = vld [vmem:[#allocation4 + $0x80] ss:$8 sps:$4 sm:$0xff]  }
 0x35c   :  { %v9912_v55 = vld [vmem:[#allocation4 + $0x184] ss:$8 sps:$4 sm:$0xff]   ;;  %v9915_v3 = vld [vmem:[#allocation4 + $0x180] ss:$8 sps:$4 sm:$0xff]  }
 0x35d   :  { %3377 = vmatpush1.bf16.msra.mxu0 %v9854_v27  ;;  %v3034_v42 = vld [vmem:[#allocation12 + $0xc] sm:$0x3] }
 0x35e   :  { %3418 = vmatpush1.bf16.msra.mxu1 %v9855_v30  ;;  %3378 = vmatprep.subr.bf16.mxu0 %v9856_v2  ;;  %v3039_v43 = vrot.slane %v3034_v42, %v11127_v49  ;;  %v3043_v46 = vrot.slane %v3034_v42, %v11133_v11 }
 0x35f   :  { %3419 = vmatprep.subr.bf16.mxu1 %v9858_v6 }
 0x361   :  { %3379 = vmatpush1.bf16.msra.mxu0 %v9860_v18 }
 0x362   :  { %3420 = vmatpush1.bf16.msra.mxu1 %v9861_v19  ;;  %3380 = vmatprep.subr.bf16.mxu0 %v9862_v56 }
 0x363   :  { %3421 = vmatprep.subr.bf16.mxu1 %v9864_v57 }
 0x365   :  { %3381 = vmatpush1.bf16.msra.mxu0 %v9866_v60 }
 0x366   :  { %3422 = vmatpush1.bf16.msra.mxu1 %v9867_v10  ;;  %3382 = vmatprep.subr.bf16.mxu0 %v9868_v14 }
 0x367   :  { %3423 = vmatprep.subr.bf16.mxu1 %v9870_v53 }
 0x369   :  { %3383 = vmatpush2.bf16.msra.mxu0 %v9872_v41 }
 0x36a   :  { %3424 = vmatpush2.bf16.msra.mxu1 %v9873_v44  ;;  %3384 = vmatprep.subr.bf16.mxu0 %v9874_v45 }
 0x36b   :  { %3425 = vmatprep.subr.bf16.mxu1 %v9876_v4 }
 0x36d   :  { %3385 = vmatpush2.bf16.msra.mxu0 %v9878_v5 }
 0x36e   :  { %3426 = vmatpush2.bf16.msra.mxu1 %v9879_v32  ;;  %3386 = vmatprep.subr.bf16.mxu0 %v9880_v33 }
 0x36f   :  { %3427 = vmatprep.subr.bf16.mxu1 %v9882_v36 }
 0x371   :  { %3387 = vmatpush2.bf16.msra.mxu0 %v9884_v37 }
 0x372   :  { %3428 = vmatpush2.bf16.msra.mxu1 %v9885_v24  ;;  %3388 = vmatprep.subr.bf16.mxu0 %v9886_v25 }
 0x373   :  { %3429 = vmatprep.subr.bf16.mxu1 %v9888_v28 }
 0x375   :  { %3389 = vmatpush2.bf16.msra.mxu0 %v9890_v13 }
 0x376   :  { %3430 = vmatpush2.bf16.msra.mxu1 %v9891_v29  ;;  %3390 = vmatprep.subr.bf16.mxu0 %v9892_v16 }
 0x377   :  { %3431 = vmatprep.subr.bf16.mxu1 %v9894_v17 }
 0x379   :  { %3391 = vmatpush2.bf16.msra.mxu0 %v9896_v12 }
 0x37a   :  { %3432 = vmatpush2.bf16.msra.mxu1 %v9897_v22  ;;  %3392 = vmatprep.subr.bf16.mxu0 %v9898_v23 }
 0x37b   :  { %3433 = vmatprep.subr.bf16.mxu1 %v9900_v8 }
 0x37d   :  { %3393 = vmatpush2.bf16.msra.mxu0 %v9902_v9 }
 0x37e   :  { %3434 = vmatpush2.bf16.msra.mxu1 %v9903_v21  ;;  %3394 = vmatprep.subr.bf16.mxu0 %v9904_v15 }
 0x37f   :  { %3435 = vmatprep.subr.bf16.mxu1 %v9906_v0 }
 0x381   :  { %3395 = vmatpush2.bf16.msra.mxu0 %v9908_v1 }
 0x382   :  { %3436 = vmatpush2.bf16.msra.mxu1 %v9909_v51  ;;  %3396 = vmatprep.subr.bf16.mxu0 %v9910_v54 }
 0x383   :  { %3437 = vmatprep.subr.bf16.mxu1 %v9912_v55 }
 0x385   :  { %3397 = vmatpush2.bf16.msra.mxu0 %v9914_v63 }
 0x386   :  { %3438 = vmatpush2.bf16.msra.mxu1 %v9915_v3 }
 0x388   :  { %3399 = vmatmul.mubr.bf16.vlgmr.msra.gmra.mxu0 %v11188_v39 }
 0x389   :  { %3440 = vmatmul.mubr.bf16.vlgmr.msra.gmra.mxu1 %v11192_v20 }
 0x448   :  { %v3400_v31 = vpop.f32.mrf.mxu0 }
 0x449   :  { %v3441_v47 = vpop.f32.mrf.mxu1  ;;  %v3401_v7 = vadd.f32 %v3400_v31, %v3039_v43 }
 0x44a   :  { %v3402_v34 = vpop.f32.mrf.mxu0 }
 0x44b   :  { %v3443_v35 = vpop.f32.mrf.mxu1  ;;  %v3442_v38 = vadd.f32 %v3441_v47, %v3401_v7  ;;  %v3403_v26 = vadd.f32 %v3402_v34, %v3043_v46 }
 0x44c   :  { %v3404_v27 = vpop.f32.mrf.mxu0 }
 0x44d   :  { %v3445_v30 = vpop.f32.mrf.mxu1  ;;  %v3448_v2 = vmax.f32 %v3442_v38, 0.0  ;;  %v3444_v6 = vadd.f32 %v3443_v35, %v3403_v26 }
 0x44e   :  { %v3405_v18 = vpop.f32.mrf.mxu0 }
 0x44f   :  { %v3446_v39 = vpop.f32.mrf.mxu1  ;;  %v3450_v19 = vpack.c.bf16 %v3448_v2, %v3448_v2  ;;  %v3449_v20 = vmax.f32 %v3444_v6, 0.0 }
 0x451   :  { %v3451_v56 = vpack.c.bf16 %v3449_v20, %v3449_v20 }
 0x452   :  { %10364 = dma.done.wait [#allocation11 + $0x3], 2048 }
 0x453   :  { %10365 = vsyncadd [#allocation11 + $0x3], 4294965248  ;;  %3623 = vmatprep.mubr.bf16.mxu0 %v3451_v56  ;;  %v9916_v57 = vld [vmem:[#allocation5 + $0x78] sm:$0xff]   ;;  %v9918_v10 = vld [vmem:[#allocation5 + $0x70] sm:$0xff]  }
 0x454   :  { %v9917_v60 = vld [vmem:[#allocation5 + $0x38] sm:$0xff]   ;;  %9025 = vmatprep.subr.bf16.mxu0 %v9916_v57  ;;  %v9919_v14 = vld [vmem:[#allocation5 + $0x30] sm:$0xff]   ;;  %v9920_v53 = vld [vmem:[#allocation5 + $0x68] sm:$0xff]  }
 0x455   :  { %9026 = vmatpush3.bf16.msra.mxu0 %v9917_v60  ;;  %v9921_v41 = vld [vmem:[#allocation5 + $0x28] sm:$0xff]   ;;  %v9922_v44 = vld [vmem:[#allocation5 + $0x60] sm:$0xff]   ;;  %v9924_v4 = vld [vmem:[#allocation5 + $0x58] sm:$0xff]  }
 0x456   :  { %9027 = vmatprep.subr.bf16.mxu0 %v9918_v10  ;;  %v9923_v45 = vld [vmem:[#allocation5 + $0x20] sm:$0xff]   ;;  %v9925_v5 = vld [vmem:[#allocation5 + $0x18] sm:$0xff]   ;;  %v9926_v32 = vld [vmem:[#allocation5 + $0x50] sm:$0xff]  }
 0x457   :  { %v9927_v33 = vld [vmem:[#allocation5 + $0x10] sm:$0xff]   ;;  %v9928_v36 = vld [vmem:[#allocation5 + $0x48] sm:$0xff]   ;;  %v9930_v24 = vld [vmem:[#allocation5 + $0x40] sm:$0xff]  }
 0x458   :  { %v9929_v37 = vld [vmem:[#allocation5 + $0x8] sm:$0xff]   ;;  %v9931_v25 = vld [vmem:[#allocation5] sm:$0xff]  }
 0x459   :  { %9028 = vmatpush3.bf16.msra.mxu0 %v9919_v14  ;;  %v8508_v13 = vld [vmem:[#allocation12 + $0xe] ss:$0 sm:$0xff] }
 0x45a   :  { %9029 = vmatprep.subr.bf16.mxu0 %v9920_v53 }
 0x45d   :  { %9030 = vmatpush3.bf16.msra.mxu0 %v9921_v41 }
 0x45e   :  { %9031 = vmatprep.subr.bf16.mxu0 %v9922_v44 }
 0x461   :  { %9032 = vmatpush3.bf16.msra.mxu0 %v9923_v45 }
 0x462   :  { %9033 = vmatprep.subr.bf16.mxu0 %v9924_v4 }
 0x465   :  { %9034 = vmatpush3.bf16.msra.mxu0 %v9925_v5 }
 0x466   :  { %9035 = vmatprep.subr.bf16.mxu0 %v9926_v32 }
 0x469   :  { %9036 = vmatpush3.bf16.msra.mxu0 %v9927_v33 }
 0x46a   :  { %9037 = vmatprep.subr.bf16.mxu0 %v9928_v36 }
 0x46d   :  { %9038 = vmatpush3.bf16.msra.mxu0 %v9929_v37 }
 0x46e   :  { %9039 = vmatprep.subr.bf16.mxu0 %v9930_v24 }
 0x471   :  { %9040 = vmatpush3.bf16.msra.mxu0 %v9931_v25 }
 0x474   :  { %3624 = vmatmul.mubr.bf16.vlgmr.msra.gmra.mxu0 %v3450_v19 }
 0x534   :  { %v9041_v28 = vpop.f32.mrf.mxu0 }
 0x536   :  { %v9042_v29 = vpop.f32.mrf.mxu0 }
 0x537   :  { %v9043_v16 = vadd.f32 %v9042_v29, %v9041_v28 }
 0x538   :  { %v9044_v17 = vpop.f32.mrf.mxu0 }
 0x539   :  { %v3626_v12 = vadd.f32 %v9043_v16, %v8508_v13 }
 0x53a   :  { %v9045_v22 = vpop.f32.mrf.mxu0 }
 0x53b   :  { %v3631_v23 = vmax.f32 %v3626_v12, 0.0 }
 0x53d   :  { %v3632_v8 = vpack.c.bf16 %v3631_v23, %v3631_v23 }
 0x53e   :  { %10366 = dma.done.wait [#allocation11 + $0x4], 10240 }
 0x53f   :  { %10367 = vsyncadd [#allocation11 + $0x4], 4294957056  ;;  %v10385_v9 = vmov 0.0   ;;  %vm10386_vm0 = vmmov 0   ;;  %v9932_v21 = vld [vmem:[#allocation6 + $0x38] sm:$0xff]   ;;  %v9933_v15 = vld [vmem:[#allocation6 + $0x30] sm:$0xff]  }
 0x540   :  { %9225 = vmatprep.subr.bf16.mxu1 %v10385_v9  ;;  %9241 = vmatprep.mubr.msk.bf16.mxu1 %vm10386_vm0, %v10385_v9  ;;  %v9934_v0 = vld [vmem:[#allocation6 + $0x28] sm:$0xff]   ;;  %v9940_v1 = vld [vmem:[#allocation6 + $0x78] sm:$0xff]   ;;  %v9935_v51 = vld [vmem:[#allocation6 + $0x20] sm:$0xff]  }
 0x541   :  { %9245 = vmatprep.subr.bf16.mxu0 %v10385_v9  ;;  %9261 = vmatprep.mubr.msk.bf16.mxu0 %vm10386_vm0, %v10385_v9  ;;  %v9941_v54 = vld [vmem:[#allocation6 + $0x70] sm:$0xff]   ;;  %v9936_v55 = vld [vmem:[#allocation6 + $0x18] sm:$0xff]   ;;  %v9942_v63 = vld [vmem:[#allocation6 + $0x68] sm:$0xff]  }
 0x542   :  { %9226 = vmatpush3.bf16.msra.mxu1 %v9932_v21  ;;  %9246 = vmatpush3.bf16.msra.mxu0 %v9940_v1  ;;  %v9937_v3 = vld [vmem:[#allocation6 + $0x10] sm:$0xff]   ;;  %v9943_v42 = vld [vmem:[#allocation6 + $0x60] sm:$0xff]   ;;  %v9938_v43 = vld [vmem:[#allocation6 + $0x8] sm:$0xff]  }
 0x543   :  { %9227 = vmatprep.subr.bf16.mxu1 %v10385_v9  ;;  %9247 = vmatprep.subr.bf16.mxu0 %v10385_v9  ;;  %v9944_v46 = vld [vmem:[#allocation6 + $0x58] sm:$0xff]   ;;  %v9939_v31 = vld [vmem:[#allocation6] sm:$0xff]   ;;  %v9945_v47 = vld [vmem:[#allocation6 + $0x50] sm:$0xff]  }
 0x544   :  { %v9946_v7 = vld [vmem:[#allocation6 + $0x48] sm:$0xff]   ;;  %v9947_v34 = vld [vmem:[#allocation6 + $0x40] sm:$0xff]   ;;  %v9948_v35 = vld [vmem:[#allocation6 + $0xb8] sm:$0xff]  }
 0x545   :  { %v9949_v38 = vld [vmem:[#allocation6 + $0xb0] sm:$0xff]   ;;  %v9950_v26 = vld [vmem:[#allocation6 + $0xa8] sm:$0xff]   ;;  %v9951_v27 = vld [vmem:[#allocation6 + $0xa0] sm:$0xff]  }
 0x546   :  { %9228 = vmatpush3.bf16.msra.mxu1 %v9933_v15  ;;  %9248 = vmatpush3.bf16.msra.mxu0 %v9941_v54  ;;  %v9952_v30 = vld [vmem:[#allocation6 + $0x98] sm:$0xff]   ;;  %v9953_v2 = vld [vmem:[#allocation6 + $0x90] sm:$0xff]   ;;  %v8525_v6 = vld [vmem:[#allocation12 + $0xf] ss:$0 sm:$0xff] }
 0x547   :  { %9229 = vmatprep.subr.bf16.mxu1 %v10385_v9  ;;  %9249 = vmatprep.subr.bf16.mxu0 %v10385_v9  ;;  %v9954_v10 = vld [vmem:[#allocation6 + $0x88] sm:$0xff]   ;;  %v9955_v14 = vld [vmem:[#allocation6 + $0x80] sm:$0xff]   ;;  %v9956_v53 = vld [vmem:[#allocation6 + $0xf8] sm:$0xff]  }
 0x548   :  { %v9957_v41 = vld [vmem:[#allocation6 + $0xf0] sm:$0xff]   ;;  %v9958_v44 = vld [vmem:[#allocation6 + $0xe8] sm:$0xff]   ;;  %v9959_v45 = vld [vmem:[#allocation6 + $0xe0] sm:$0xff]  }
 0x549   :  { %v9960_v4 = vld [vmem:[#allocation6 + $0xd8] sm:$0xff]   ;;  %v9961_v5 = vld [vmem:[#allocation6 + $0xd0] sm:$0xff]   ;;  %v9962_v29 = vld [vmem:[#allocation6 + $0xc8] sm:$0xff]  }
 0x54a   :  { %9230 = vmatpush3.bf16.msra.mxu1 %v9934_v0  ;;  %9250 = vmatpush3.bf16.msra.mxu0 %v9942_v63  ;;  %v8534_v32 = vld [vmem:[#allocation12 + $0x10] ss:$0 sm:$0xff]  ;;  %v9963_v16 = vld [vmem:[#allocation6 + $0xc0] sm:$0xff]   ;;  %v9964_v17 = vld [vmem:[#allocation6 + $0x138] sm:$0xff]  }
 0x54b   :  { %9231 = vmatprep.subr.bf16.mxu1 %v10385_v9  ;;  %9251 = vmatprep.subr.bf16.mxu0 %v10385_v9  ;;  %v9965_v12 = vld [vmem:[#allocation6 + $0x130] sm:$0xff]   ;;  %v9966_v22 = vld [vmem:[#allocation6 + $0x128] sm:$0xff]   ;;  %v9967_v23 = vld [vmem:[#allocation6 + $0x120] sm:$0xff]  }
 0x54c   :  { %v9969_v21 = vld [vmem:[#allocation6 + $0x110] sm:$0xff]  }
 0x54d   :  { %v8543_v15 = vld [vmem:[#allocation12 + $0x11] ss:$0 sm:$0xff] }
 0x54e   :  { %9232 = vmatpush3.bf16.msra.mxu1 %v9935_v51  ;;  %9252 = vmatpush3.bf16.msra.mxu0 %v9943_v42  ;;  %v9970_v42 = vld [vmem:[#allocation6 + $0x108] sm:$0xff]  }
 0x54f   :  { %9233 = vmatprep.subr.bf16.mxu1 %v10385_v9  ;;  %9253 = vmatprep.subr.bf16.mxu0 %v10385_v9 }
 0x552   :  { %9234 = vmatpush3.bf16.msra.mxu1 %v9936_v55  ;;  %9254 = vmatpush3.bf16.msra.mxu0 %v9944_v46  ;;  %v9972_v46 = vld [vmem:[#allocation6 + $0x178] sm:$0xff]  }
 0x553   :  { %9235 = vmatprep.subr.bf16.mxu1 %v10385_v9  ;;  %9255 = vmatprep.subr.bf16.mxu0 %v10385_v9 }
 0x556   :  { %9236 = vmatpush3.bf16.msra.mxu1 %v9937_v3  ;;  %9256 = vmatpush3.bf16.msra.mxu0 %v9945_v47  ;;  %v9974_v47 = vld [vmem:[#allocation6 + $0x168] sm:$0xff]  }
 0x557   :  { %9237 = vmatprep.subr.bf16.mxu1 %v10385_v9  ;;  %9257 = vmatprep.subr.bf16.mxu0 %v10385_v9 }
 0x55a   :  { %9238 = vmatpush3.bf16.msra.mxu1 %v9938_v43  ;;  %9258 = vmatpush3.bf16.msra.mxu0 %v9946_v7  ;;  %v9971_v43 = vld [vmem:[#allocation6 + $0x100] sm:$0xff]  }
 0x55b   :  { %9239 = vmatprep.subr.bf16.mxu1 %v10385_v9  ;;  %9259 = vmatprep.subr.bf16.mxu0 %v10385_v9  ;;  %v9975_v7 = vld [vmem:[#allocation6 + $0x160] sm:$0xff]  }
 0x55e   :  { %9240 = vmatpush3.bf16.msra.mxu1 %v9939_v31  ;;  %9260 = vmatpush3.bf16.msra.mxu0 %v9947_v34  ;;  %v9973_v31 = vld [vmem:[#allocation6 + $0x170] sm:$0xff]   ;;  %v9976_v34 = vld [vmem:[#allocation6 + $0x158] sm:$0xff]  }
 0x55f   :  { %9265 = vmatprep.subr.bf16.mxu1 %v10385_v9  ;;  %9285 = vmatprep.subr.bf16.mxu0 %v10385_v9 }
 0x561   :  { %9242 = vmatmul.mubr.bf16.vlgmr.msra.gmra.mxu1 %v3632_v8  ;;  %v9968_v8 = vld [vmem:[#allocation6 + $0x118] sm:$0xff]  }
 0x562   :  { %9281 = vmatprep.mubr.msk.bf16.mxu1 %vm10386_vm0, %v10385_v9  ;;  %9266 = vmatpush3.bf16.msra.mxu1 %v9948_v35  ;;  %v9977_v35 = vld [vmem:[#allocation6 + $0x150] sm:$0xff]  }
 0x563   :  { %9267 = vmatprep.subr.bf16.mxu1 %v10385_v9 }
 0x566   :  { %9268 = vmatpush3.bf16.msra.mxu1 %v9949_v38  ;;  %v8552_v38 = vld [vmem:[#allocation12 + $0x12] ss:$0 sm:$0xff] }
 0x567   :  { %9269 = vmatprep.subr.bf16.mxu1 %v10385_v9 }
 0x56a   :  { %9270 = vmatpush3.bf16.msra.mxu1 %v9950_v26 }
 0x56b   :  { %9271 = vmatprep.subr.bf16.mxu1 %v10385_v9 }
 0x56e   :  { %9272 = vmatpush3.bf16.msra.mxu1 %v9951_v27 }
 0x56f   :  { %9273 = vmatprep.subr.bf16.mxu1 %v10385_v9 }
 0x572   :  { %9274 = vmatpush3.bf16.msra.mxu1 %v9952_v30 }
 0x573   :  { %9275 = vmatprep.subr.bf16.mxu1 %v10385_v9 }
 0x576   :  { %9276 = vmatpush3.bf16.msra.mxu1 %v9953_v2 }
 0x577   :  { %9277 = vmatprep.subr.bf16.mxu1 %v10385_v9 }
 0x57a   :  { %9278 = vmatpush3.bf16.msra.mxu1 %v9954_v10  ;;  %v9983_v10 = vld [vmem:[#allocation6 + $0x1a0] sm:$0xff]  }
 0x57b   :  { %9279 = vmatprep.subr.bf16.mxu1 %v10385_v9 }
 0x57e   :  { %9280 = vmatpush3.bf16.msra.mxu1 %v9955_v14  ;;  %v9984_v14 = vld [vmem:[#allocation6 + $0x198] sm:$0xff]  }
 0x57f   :  { %9305 = vmatprep.subr.bf16.mxu1 %v10385_v9 }
 0x621   :  { %v3743_v18 = vpop.f32.mrf.mxu1 }
 0x622   :  { %v3744_v39 = vadd.f32 %v8525_v6, %v3743_v18 }
 0x623   :  { %v9243_v19 = vpop.f32.mrf.mxu1 }
 0x624   :  { %v3749_v20 = vmax.f32 %v3744_v39, 0.0  ;;  %v9978_v19 = vld [vmem:[#allocation6 + $0x148] sm:$0xff]  }
 0x625   :  { %v3746_v56 = vpop.f32.mrf.mxu1 }
 0x626   :  { %v3750_v57 = vpack.c.bf16 %v3749_v20, %v3749_v20  ;;  %v9979_v20 = vld [vmem:[#allocation6 + $0x140] sm:$0xff]   ;;  %v9980_v56 = vld [vmem:[#allocation6 + $0x1b8] sm:$0xff]  }
 0x627   :  { %v9244_v60 = vpop.f32.mrf.mxu1 }
 0x628   :  { %9262 = vmatmul.mubr.bf16.vlgmr.msra.gmra.mxu0 %v3750_v57  ;;  %v9981_v57 = vld [vmem:[#allocation6 + $0x1b0] sm:$0xff]   ;;  %v9982_v60 = vld [vmem:[#allocation6 + $0x1a8] sm:$0xff]  }
 0x629   :  { %9301 = vmatprep.mubr.msk.bf16.mxu0 %vm10386_vm0, %v10385_v9  ;;  %9286 = vmatpush3.bf16.msra.mxu0 %v9956_v53  ;;  %v9985_v53 = vld [vmem:[#allocation6 + $0x190] sm:$0xff]  }
 0x62a   :  { %9287 = vmatprep.subr.bf16.mxu0 %v10385_v9 }
 0x62d   :  { %9288 = vmatpush3.bf16.msra.mxu0 %v9957_v41  ;;  %v8561_v41 = vld [vmem:[#allocation12 + $0x13] ss:$0 sm:$0xff] }
 0x62e   :  { %9289 = vmatprep.subr.bf16.mxu0 %v10385_v9 }
 0x631   :  { %9290 = vmatpush3.bf16.msra.mxu0 %v9958_v44 }
 0x632   :  { %9291 = vmatprep.subr.bf16.mxu0 %v10385_v9 }
 0x635   :  { %9292 = vmatpush3.bf16.msra.mxu0 %v9959_v45 }
 0x636   :  { %9293 = vmatprep.subr.bf16.mxu0 %v10385_v9 }
 0x639   :  { %9294 = vmatpush3.bf16.msra.mxu0 %v9960_v4 }
 0x63a   :  { %9295 = vmatprep.subr.bf16.mxu0 %v10385_v9 }
 0x63d   :  { %9296 = vmatpush3.bf16.msra.mxu0 %v9961_v5 }
 0x63e   :  { %9297 = vmatprep.subr.bf16.mxu0 %v10385_v9 }
 0x641   :  { %9298 = vmatpush3.bf16.msra.mxu0 %v9962_v29  ;;  %v9991_v29 = vld [vmem:[#allocation6 + $0x1e0] sm:$0xff]  }
 0x642   :  { %9299 = vmatprep.subr.bf16.mxu0 %v10385_v9 }
 0x645   :  { %9300 = vmatpush3.bf16.msra.mxu0 %v9963_v16  ;;  %v9992_v16 = vld [vmem:[#allocation6 + $0x1d8] sm:$0xff]  }
 0x646   :  { %9325 = vmatprep.subr.bf16.mxu0 %v10385_v9 }
 0x6e8   :  { %v3857_v33 = vpop.f32.mrf.mxu0 }
 0x6e9   :  { %v3858_v36 = vadd.f32 %v8534_v32, %v3857_v33 }
 0x6ea   :  { %v9263_v37 = vpop.f32.mrf.mxu0 }
 0x6eb   :  { %v3863_v24 = vmax.f32 %v3858_v36, 0.0  ;;  %v9986_v37 = vld [vmem:[#allocation6 + $0x188] sm:$0xff]  }
 0x6ec   :  { %v3860_v25 = vpop.f32.mrf.mxu0 }
 0x6ed   :  { %v3864_v28 = vpack.c.bf16 %v3863_v24, %v3863_v24  ;;  %v9987_v24 = vld [vmem:[#allocation6 + $0x180] sm:$0xff]   ;;  %v9988_v25 = vld [vmem:[#allocation6 + $0x1f8] sm:$0xff]  }
 0x6ee   :  { %v9264_v13 = vpop.f32.mrf.mxu0 }
 0x6ef   :  { %9282 = vmatmul.mubr.bf16.vlgmr.msra.gmra.mxu1 %v3864_v28  ;;  %v9989_v28 = vld [vmem:[#allocation6 + $0x1f0] sm:$0xff]   ;;  %v9990_v13 = vld [vmem:[#allocation6 + $0x1e8] sm:$0xff]  }
 0x6f0   :  { %9321 = vmatprep.mubr.msk.bf16.mxu1 %vm10386_vm0, %v10385_v9  ;;  %9306 = vmatpush3.bf16.msra.mxu1 %v9964_v17  ;;  %v9993_v17 = vld [vmem:[#allocation6 + $0x1d0] sm:$0xff]  }
 0x6f1   :  { %9307 = vmatprep.subr.bf16.mxu1 %v10385_v9 }
 0x6f4   :  { %9308 = vmatpush3.bf16.msra.mxu1 %v9965_v12  ;;  %v8570_v12 = vld [vmem:[#allocation12 + $0x14] ss:$0 sm:$0xff] }
 0x6f5   :  { %9309 = vmatprep.subr.bf16.mxu1 %v10385_v9 }
 0x6f8   :  { %9310 = vmatpush3.bf16.msra.mxu1 %v9966_v22 }
 0x6f9   :  { %9311 = vmatprep.subr.bf16.mxu1 %v10385_v9 }
 0x6fc   :  { %9312 = vmatpush3.bf16.msra.mxu1 %v9967_v23 }
 0x6fd   :  { %9313 = vmatprep.subr.bf16.mxu1 %v10385_v9 }
 0x700   :  { %9314 = vmatpush3.bf16.msra.mxu1 %v9968_v8 }
 0x701   :  { %9315 = vmatprep.subr.bf16.mxu1 %v10385_v9 }
 0x704   :  { %9316 = vmatpush3.bf16.msra.mxu1 %v9969_v21 }
 0x705   :  { %9317 = vmatprep.subr.bf16.mxu1 %v10385_v9 }
 0x708   :  { %9318 = vmatpush3.bf16.msra.mxu1 %v9970_v42  ;;  %v9999_v42 = vld [vmem:[#allocation6 + $0x220] sm:$0xff]  }
 0x709   :  { %9319 = vmatprep.subr.bf16.mxu1 %v10385_v9 }
 0x70c   :  { %9320 = vmatpush3.bf16.msra.mxu1 %v9971_v43  ;;  %v10000_v43 = vld [vmem:[#allocation6 + $0x218] sm:$0xff]  }
 0x70d   :  { %9345 = vmatprep.subr.bf16.mxu1 %v10385_v9 }
 0x7af   :  { %v3971_v0 = vpop.f32.mrf.mxu1 }
 0x7b0   :  { %v3972_v1 = vadd.f32 %v8543_v15, %v3971_v0 }
 0x7b1   :  { %v9283_v51 = vpop.f32.mrf.mxu1 }
 0x7b2   :  { %v3977_v54 = vmax.f32 %v3972_v1, 0.0  ;;  %v9994_v51 = vld [vmem:[#allocation6 + $0x1c8] sm:$0xff]  }
 0x7b3   :  { %v3974_v55 = vpop.f32.mrf.mxu1 }
 0x7b4   :  { %v3978_v63 = vpack.c.bf16 %v3977_v54, %v3977_v54  ;;  %v9995_v54 = vld [vmem:[#allocation6 + $0x1c0] sm:$0xff]   ;;  %v9996_v55 = vld [vmem:[#allocation6 + $0x238] sm:$0xff]  }
 0x7b5   :  { %v9284_v3 = vpop.f32.mrf.mxu1 }
 0x7b6   :  { %9302 = vmatmul.mubr.bf16.vlgmr.msra.gmra.mxu0 %v3978_v63  ;;  %v9997_v63 = vld [vmem:[#allocation6 + $0x230] sm:$0xff]   ;;  %v9998_v3 = vld [vmem:[#allocation6 + $0x228] sm:$0xff]  }
 0x7b7   :  { %9341 = vmatprep.mubr.msk.bf16.mxu0 %vm10386_vm0, %v10385_v9  ;;  %9326 = vmatpush3.bf16.msra.mxu0 %v9972_v46  ;;  %v10001_v46 = vld [vmem:[#allocation6 + $0x210] sm:$0xff]  }
 0x7b8   :  { %9327 = vmatprep.subr.bf16.mxu0 %v10385_v9 }
 0x7bb   :  { %9328 = vmatpush3.bf16.msra.mxu0 %v9973_v31  ;;  %v8579_v31 = vld [vmem:[#allocation12 + $0x15] ss:$0 sm:$0xff] }
 0x7bc   :  { %9329 = vmatprep.subr.bf16.mxu0 %v10385_v9 }
 0x7bf   :  { %9330 = vmatpush3.bf16.msra.mxu0 %v9974_v47 }
 0x7c0   :  { %9331 = vmatprep.subr.bf16.mxu0 %v10385_v9 }
 0x7c3   :  { %9332 = vmatpush3.bf16.msra.mxu0 %v9975_v7 }
 0x7c4   :  { %9333 = vmatprep.subr.bf16.mxu0 %v10385_v9 }
 0x7c7   :  { %9334 = vmatpush3.bf16.msra.mxu0 %v9976_v34 }
 0x7c8   :  { %9335 = vmatprep.subr.bf16.mxu0 %v10385_v9 }
 0x7cb   :  { %9336 = vmatpush3.bf16.msra.mxu0 %v9977_v35 }
 0x7cc   :  { %9337 = vmatprep.subr.bf16.mxu0 %v10385_v9 }
 0x7cf   :  { %9338 = vmatpush3.bf16.msra.mxu0 %v9978_v19  ;;  %v10007_v19 = vld [vmem:[#allocation6 + $0x260] sm:$0xff]  }
 0x7d0   :  { %9339 = vmatprep.subr.bf16.mxu0 %v10385_v9 }
 0x7d3   :  { %9340 = vmatpush3.bf16.msra.mxu0 %v9979_v20  ;;  %v10008_v20 = vld [vmem:[#allocation6 + $0x258] sm:$0xff]  }
 0x7d4   :  { %9365 = vmatprep.subr.bf16.mxu0 %v10385_v9 }
 0x876   :  { %v4085_v26 = vpop.f32.mrf.mxu0 }
 0x877   :  { %v4086_v27 = vadd.f32 %v8552_v38, %v4085_v26 }
 0x878   :  { %v9303_v30 = vpop.f32.mrf.mxu0 }
 0x879   :  { %v4091_v2 = vmax.f32 %v4086_v27, 0.0  ;;  %v10002_v30 = vld [vmem:[#allocation6 + $0x208] sm:$0xff]  }
 0x87a   :  { %v4088_v6 = vpop.f32.mrf.mxu0 }
 0x87b   :  { %v4092_v18 = vpack.c.bf16 %v4091_v2, %v4091_v2  ;;  %v10003_v2 = vld [vmem:[#allocation6 + $0x200] sm:$0xff]   ;;  %v10004_v6 = vld [vmem:[#allocation6 + $0x278] sm:$0xff]  }
 0x87c   :  { %v9304_v39 = vpop.f32.mrf.mxu0 }
 0x87d   :  { %9322 = vmatmul.mubr.bf16.vlgmr.msra.gmra.mxu1 %v4092_v18  ;;  %v10005_v18 = vld [vmem:[#allocation6 + $0x270] sm:$0xff]   ;;  %v10006_v39 = vld [vmem:[#allocation6 + $0x268] sm:$0xff]  }
 0x87e   :  { %9361 = vmatprep.mubr.msk.bf16.mxu1 %vm10386_vm0, %v10385_v9  ;;  %9346 = vmatpush3.bf16.msra.mxu1 %v9980_v56  ;;  %v10009_v56 = vld [vmem:[#allocation6 + $0x250] sm:$0xff]  }
 0x87f   :  { %9347 = vmatprep.subr.bf16.mxu1 %v10385_v9 }
 0x882   :  { %9348 = vmatpush3.bf16.msra.mxu1 %v9981_v57  ;;  %v8588_v57 = vld [vmem:[#allocation12 + $0x16] ss:$0 sm:$0xff] }
 0x883   :  { %9349 = vmatprep.subr.bf16.mxu1 %v10385_v9 }
 0x886   :  { %9350 = vmatpush3.bf16.msra.mxu1 %v9982_v60 }
 0x887   :  { %9351 = vmatprep.subr.bf16.mxu1 %v10385_v9 }
 0x88a   :  { %9352 = vmatpush3.bf16.msra.mxu1 %v9983_v10 }
 0x88b   :  { %9353 = vmatprep.subr.bf16.mxu1 %v10385_v9 }
 0x88e   :  { %9354 = vmatpush3.bf16.msra.mxu1 %v9984_v14 }
 0x88f   :  { %9355 = vmatprep.subr.bf16.mxu1 %v10385_v9 }
 0x892   :  { %9356 = vmatpush3.bf16.msra.mxu1 %v9985_v53 }
 0x893   :  { %9357 = vmatprep.subr.bf16.mxu1 %v10385_v9 }
 0x896   :  { %9358 = vmatpush3.bf16.msra.mxu1 %v9986_v37 }
 0x897   :  { %9359 = vmatprep.subr.bf16.mxu1 %v10385_v9 }
 0x89a   :  { %9360 = vmatpush3.bf16.msra.mxu1 %v9987_v24 }
 0x89b   :  { %9385 = vmatprep.subr.bf16.mxu1 %v10385_v9 }
 0x93d   :  { %v4199_v44 = vpop.f32.mrf.mxu1 }
 0x93e   :  { %v4200_v45 = vadd.f32 %v8561_v41, %v4199_v44 }
 0x93f   :  { %v9323_v4 = vpop.f32.mrf.mxu1 }
 0x940   :  { %v4205_v5 = vmax.f32 %v4200_v45, 0.0  ;;  %v10010_v4 = vld [vmem:[#allocation6 + $0x248] sm:$0xff]  }
 0x941   :  { %v4202_v32 = vpop.f32.mrf.mxu1 }
 0x942   :  { %v4206_v33 = vpack.c.bf16 %v4205_v5, %v4205_v5  ;;  %v10011_v5 = vld [vmem:[#allocation6 + $0x240] sm:$0xff]   ;;  %v8597_v32 = vld [vmem:[#allocation12 + $0x17] ss:$0 sm:$0xff] }
 0x943   :  { %v9324_v36 = vpop.f32.mrf.mxu1 }
 0x944   :  { %9342 = vmatmul.mubr.bf16.vlgmr.msra.gmra.mxu0 %v4206_v33 }
 0x945   :  { %9381 = vmatprep.mubr.msk.bf16.mxu0 %vm10386_vm0, %v10385_v9  ;;  %9366 = vmatpush3.bf16.msra.mxu0 %v9988_v25 }
 0x946   :  { %9367 = vmatprep.subr.bf16.mxu0 %v10385_v9 }
 0x949   :  { %9368 = vmatpush3.bf16.msra.mxu0 %v9989_v28 }
 0x94a   :  { %9369 = vmatprep.subr.bf16.mxu0 %v10385_v9 }
 0x94d   :  { %9370 = vmatpush3.bf16.msra.mxu0 %v9990_v13 }
 0x94e   :  { %9371 = vmatprep.subr.bf16.mxu0 %v10385_v9 }
 0x951   :  { %9372 = vmatpush3.bf16.msra.mxu0 %v9991_v29  ;;  %v8606_v29 = vld [vmem:[#allocation12 + $0x18] ss:$0 sm:$0xff] }
 0x952   :  { %9373 = vmatprep.subr.bf16.mxu0 %v10385_v9 }
 0x955   :  { %9374 = vmatpush3.bf16.msra.mxu0 %v9992_v16 }
 0x956   :  { %9375 = vmatprep.subr.bf16.mxu0 %v10385_v9 }
 0x959   :  { %9376 = vmatpush3.bf16.msra.mxu0 %v9993_v17 }
 0x95a   :  { %9377 = vmatprep.subr.bf16.mxu0 %v10385_v9 }
 0x95d   :  { %9378 = vmatpush3.bf16.msra.mxu0 %v9994_v51 }
 0x95e   :  { %9379 = vmatprep.subr.bf16.mxu0 %v10385_v9 }
 0x961   :  { %9380 = vmatpush3.bf16.msra.mxu0 %v9995_v54 }
 0x962   :  { %9405 = vmatprep.subr.bf16.mxu0 %v10385_v9 }
 0xa04   :  { %v4313_v22 = vpop.f32.mrf.mxu0 }
 0xa05   :  { %v4314_v23 = vadd.f32 %v8570_v12, %v4313_v22 }
 0xa06   :  { %v9343_v8 = vpop.f32.mrf.mxu0 }
 0xa07   :  { %v4319_v21 = vmax.f32 %v4314_v23, 0.0 }
 0xa08   :  { %v4316_v15 = vpop.f32.mrf.mxu0 }
 0xa09   :  { %v4320_v0 = vpack.c.bf16 %v4319_v21, %v4319_v21 }
 0xa0a   :  { %v9344_v1 = vpop.f32.mrf.mxu0 }
 0xa0b   :  { %9362 = vmatmul.mubr.bf16.vlgmr.msra.gmra.mxu1 %v4320_v0 }
 0xa0c   :  { %9401 = vmatprep.mubr.msk.bf16.mxu1 %vm10386_vm0, %v10385_v9  ;;  %9386 = vmatpush3.bf16.msra.mxu1 %v9996_v55 }
 0xa0d   :  { %9387 = vmatprep.subr.bf16.mxu1 %v10385_v9 }
 0xa10   :  { %9388 = vmatpush3.bf16.msra.mxu1 %v9997_v63 }
 0xa11   :  { %9389 = vmatprep.subr.bf16.mxu1 %v10385_v9 }
 0xa14   :  { %9390 = vmatpush3.bf16.msra.mxu1 %v9998_v3 }
 0xa15   :  { %9391 = vmatprep.subr.bf16.mxu1 %v10385_v9 }
 0xa18   :  { %9392 = vmatpush3.bf16.msra.mxu1 %v9999_v42 }
 0xa19   :  { %9393 = vmatprep.subr.bf16.mxu1 %v10385_v9 }
 0xa1c   :  { %9394 = vmatpush3.bf16.msra.mxu1 %v10000_v43 }
 0xa1d   :  { %9395 = vmatprep.subr.bf16.mxu1 %v10385_v9 }
 0xa20   :  { %9396 = vmatpush3.bf16.msra.mxu1 %v10001_v46 }
 0xa21   :  { %9397 = vmatprep.subr.bf16.mxu1 %v10385_v9 }
 0xa24   :  { %9398 = vmatpush3.bf16.msra.mxu1 %v10002_v30 }
 0xa25   :  { %9399 = vmatprep.subr.bf16.mxu1 %v10385_v9 }
 0xa28   :  { %9400 = vmatpush3.bf16.msra.mxu1 %v10003_v2 }
 0xacb   :  { %v4427_v47 = vpop.f32.mrf.mxu1 }
 0xacc   :  { %v4428_v7 = vadd.f32 %v8579_v31, %v4427_v47 }
 0xacd   :  { %v9363_v34 = vpop.f32.mrf.mxu1 }
 0xace   :  { %v4433_v35 = vmax.f32 %v4428_v7, 0.0 }
 0xacf   :  { %v4430_v38 = vpop.f32.mrf.mxu1 }
 0xad0   :  { %v4434_v26 = vpack.c.bf16 %v4433_v35, %v4433_v35 }
 0xad1   :  { %v9364_v27 = vpop.f32.mrf.mxu1 }
 0xad2   :  { %9382 = vmatmul.mubr.bf16.vlgmr.msra.gmra.mxu0 %v4434_v26 }
 0xad3   :  { %9421 = vmatprep.mubr.msk.bf16.mxu0 %vm10386_vm0, %v10385_v9  ;;  %9406 = vmatpush3.bf16.msra.mxu0 %v10004_v6 }
 0xad4   :  { %9407 = vmatprep.subr.bf16.mxu0 %v10385_v9 }
 0xad7   :  { %9408 = vmatpush3.bf16.msra.mxu0 %v10005_v18 }
 0xad8   :  { %9409 = vmatprep.subr.bf16.mxu0 %v10385_v9 }
 0xadb   :  { %9410 = vmatpush3.bf16.msra.mxu0 %v10006_v39 }
 0xadc   :  { %9411 = vmatprep.subr.bf16.mxu0 %v10385_v9 }
 0xadf   :  { %9412 = vmatpush3.bf16.msra.mxu0 %v10007_v19 }
 0xae0   :  { %9413 = vmatprep.subr.bf16.mxu0 %v10385_v9 }
 0xae3   :  { %9414 = vmatpush3.bf16.msra.mxu0 %v10008_v20 }
 0xae4   :  { %9415 = vmatprep.subr.bf16.mxu0 %v10385_v9 }
 0xae7   :  { %9416 = vmatpush3.bf16.msra.mxu0 %v10009_v56 }
 0xae8   :  { %9417 = vmatprep.subr.bf16.mxu0 %v10385_v9 }
 0xaeb   :  { %9418 = vmatpush3.bf16.msra.mxu0 %v10010_v4 }
 0xaec   :  { %9419 = vmatprep.subr.bf16.mxu0 %v10385_v9 }
 0xaef   :  { %9420 = vmatpush3.bf16.msra.mxu0 %v10011_v5 }
 0xb92   :  { %v4541_v60 = vpop.f32.mrf.mxu0 }
 0xb93   :  { %v4542_v10 = vadd.f32 %v8588_v57, %v4541_v60 }
 0xb94   :  { %v9383_v14 = vpop.f32.mrf.mxu0 }
 0xb95   :  { %v4547_v53 = vmax.f32 %v4542_v10, 0.0 }
 0xb96   :  { %v4544_v41 = vpop.f32.mrf.mxu0 }
 0xb97   :  { %v4548_v44 = vpack.c.bf16 %v4547_v53, %v4547_v53 }
 0xb98   :  { %v9384_v45 = vpop.f32.mrf.mxu0 }
 0xb99   :  { %9402 = vmatmul.mubr.bf16.vlgmr.msra.gmra.mxu1 %v4548_v44 }
 0xc59   :  { %v4655_v33 = vpop.f32.mrf.mxu1 }
 0xc5a   :  { %v4656_v36 = vadd.f32 %v8597_v32, %v4655_v33 }
 0xc5b   :  { %v9403_v37 = vpop.f32.mrf.mxu1 }
 0xc5c   :  { %v4661_v24 = vmax.f32 %v4656_v36, 0.0 }
 0xc5d   :  { %v4658_v25 = vpop.f32.mrf.mxu1 }
 0xc5e   :  { %v4662_v28 = vpack.c.bf16 %v4661_v24, %v4661_v24 }
 0xc5f   :  { %v9404_v13 = vpop.f32.mrf.mxu1 }
 0xc60   :  { %9422 = vmatmul.mubr.bf16.vlgmr.msra.gmra.mxu0 %v4662_v28 }
 0xd20   :  { %v4769_v16 = vpop.f32.mrf.mxu0 }
 0xd21   :  { %v4770_v17 = vadd.f32 %v8606_v29, %v4769_v16 }
 0xd22   :  { %v9423_v12 = vpop.f32.mrf.mxu0 }
 0xd23   :  { %v4775_v22 = vmax.f32 %v4770_v17, 0.0 }
 0xd24   :  { %v4772_v23 = vpop.f32.mrf.mxu0 }
 0xd25   :  { %v4776_v8 = vpack.c.bf16 %v4775_v22, %v4775_v22 }
 0xd26   :  { %v9424_v21 = vpop.f32.mrf.mxu0 }
 0xd27   :  { %10368 = dma.done.wait [#allocation11 + $0x5], 2048 }
 0xd28   :  { %10369 = vsyncadd [#allocation11 + $0x5], 4294965248  ;;  %4920 = vmatprep.mubr.bf16.mxu1 %v10384_v61  ;;  %v10012_v9 = vld [vmem:[#allocation7 + $0x74] ss:$8 sps:$4 sm:$0xff]   ;;  %v10014_v15 = vld [vmem:[#allocation7 + $0x70] ss:$8 sps:$4 sm:$0xff]  }
 0xd29   :  { %4888 = vmatprep.subr.bf16.mxu1 %v10012_v9  ;;  %v10015_v0 = vld [vmem:[#allocation7 + $0x64] ss:$8 sps:$4 sm:$0xff]   ;;  %v10017_v1 = vld [vmem:[#allocation7 + $0x60] ss:$8 sps:$4 sm:$0xff]   ;;  %v10018_v51 = vld [vmem:[#allocation7 + $0x54] ss:$8 sps:$4 sm:$0xff]  }
 0xd2a   :  { %4889 = vmatpush1.bf16.msra.mxu1 %v10014_v15  ;;  %v10020_v54 = vld [vmem:[#allocation7 + $0x50] ss:$8 sps:$4 sm:$0xff]   ;;  %v10021_v55 = vld [vmem:[#allocation7 + $0x44] ss:$8 sps:$4 sm:$0xff]   ;;  %v10023_v63 = vld [vmem:[#allocation7 + $0x40] ss:$8 sps:$4 sm:$0xff]  }
 0xd2b   :  { %4890 = vmatprep.subr.bf16.mxu1 %v10015_v0  ;;  %v10024_v3 = vld [vmem:[#allocation7 + $0x34] ss:$8 sps:$4 sm:$0xff]   ;;  %v10026_v42 = vld [vmem:[#allocation7 + $0x30] ss:$8 sps:$4 sm:$0xff]   ;;  %v10027_v61 = vld [vmem:[#allocation7 + $0x24] ss:$8 sps:$4 sm:$0xff]  }
 0xd2c   :  { %v10029_v43 = vld [vmem:[#allocation7 + $0x20] ss:$8 sps:$4 sm:$0xff]   ;;  %v10030_v46 = vld [vmem:[#allocation7 + $0x14] ss:$8 sps:$4 sm:$0xff]   ;;  %v10032_v31 = vld [vmem:[#allocation7 + $0x10] ss:$8 sps:$4 sm:$0xff]  }
 0xd2d   :  { %v10033_v47 = vld [vmem:[#allocation7 + $0x4] ss:$8 sps:$4 sm:$0xff]   ;;  %v10035_v7 = vld [vmem:[#allocation7] ss:$8 sps:$4 sm:$0xff]   ;;  %v4796_v34 = vld [vmem:[#allocation12 + $0x19] sm:$0x3] }
 0xd2e   :  { %4891 = vmatpush1.bf16.msra.mxu1 %v10017_v1  ;;  %v4801_v35 = vrot.slane %v4796_v34, %v11127_v49  ;;  %v4805_v38 = vrot.slane %v4796_v34, %v11133_v11 }
 0xd2f   :  { %4892 = vmatprep.subr.bf16.mxu1 %v10018_v51 }
 0xd32   :  { %4893 = vmatpush1.bf16.msra.mxu1 %v10020_v54 }
 0xd33   :  { %4894 = vmatprep.subr.bf16.mxu1 %v10021_v55 }
 0xd36   :  { %4895 = vmatpush1.bf16.msra.mxu1 %v10023_v63 }
 0xd37   :  { %4896 = vmatprep.subr.bf16.mxu1 %v10024_v3 }
 0xd3a   :  { %4897 = vmatpush1.bf16.msra.mxu1 %v10026_v42 }
 0xd3b   :  { %4898 = vmatprep.subr.bf16.mxu1 %v10027_v61 }
 0xd3e   :  { %4899 = vmatpush1.bf16.msra.mxu1 %v10029_v43 }
 0xd3f   :  { %4900 = vmatprep.subr.bf16.mxu1 %v10030_v46 }
 0xd42   :  { %4901 = vmatpush1.bf16.msra.mxu1 %v10032_v31 }
 0xd43   :  { %4902 = vmatprep.subr.bf16.mxu1 %v10033_v47 }
 0xd46   :  { %4903 = vmatpush1.bf16.msra.mxu1 %v10035_v7 }
 0xd49   :  { %4921 = vmatmul.mubr.bf16.vlgmr.msra.gmra.mxu1 %v4776_v8 }
 0xe09   :  { %v4922_v26 = vpop.f32.mrf.mxu1 }
 0xe0a   :  { %v4923_v27 = vadd.f32 %v4922_v26, %v4801_v35 }
 0xe0b   :  { %v4924_v30 = vpop.f32.mrf.mxu1 }
 0xe0c   :  { %v4929_v2 = vmax.f32 %v4923_v27, 0.0  ;;  %v4925_v6 = vadd.f32 %v4924_v30, %v4805_v38 }
 0xe0d   :  { %v4926_v18 = vpop.f32.mrf.mxu1 }
 0xe0e   :  { %v11301_v39 = vpack.c.bf16 %v4929_v2, %v4929_v2  ;;  %v4930_v19 = vmax.f32 %v4925_v6, 0.0 }
 0xe0f   :  { %v4927_v20 = vpop.f32.mrf.mxu1 }
 0xe10   :  { %v4932_v56 = vpack.c.bf16 %v4930_v19, %v4930_v19 }
 0xe11   :  { %10370 = dma.done.wait [#allocation11 + $0x6], 8192 }
 0xe12   :  { %10371 = vsyncadd [#allocation11 + $0x6], 4294959104  ;;  %5374 = vmatprep.mubr.bf16.mxu0 %v4932_v56  ;;  %5415 = vmatprep.mubr.bf16.mxu1 %v4932_v56  ;;  %v10036_v57 = vld [vmem:[#allocation8 + $0xe4] ss:$16 sps:$4 sm:$0xff]   ;;  %v10038_v60 = vld [vmem:[#allocation8 + $0xec] ss:$16 sps:$4 sm:$0xff]  }
 0xe13   :  { %5342 = vmatprep.subr.bf16.mxu0 %v10036_v57  ;;  %v10040_v10 = vld [vmem:[#allocation8 + $0xe0] ss:$16 sps:$4 sm:$0xff]   ;;  %v10041_v14 = vld [vmem:[#allocation8 + $0xe8] ss:$16 sps:$4 sm:$0xff]   ;;  %5383 = vmatprep.subr.bf16.mxu1 %v10038_v60  ;;  %v10042_v53 = vld [vmem:[#allocation8 + $0xc4] ss:$16 sps:$4 sm:$0xff]  }
 0xe14   :  { %5343 = vmatpush1.bf16.msra.mxu0 %v10040_v10  ;;  %5384 = vmatpush1.bf16.msra.mxu1 %v10041_v14  ;;  %v10044_v41 = vld [vmem:[#allocation8 + $0xcc] ss:$16 sps:$4 sm:$0xff]   ;;  %v10046_v44 = vld [vmem:[#allocation8 + $0xc0] ss:$16 sps:$4 sm:$0xff]   ;;  %v10047_v45 = vld [vmem:[#allocation8 + $0xc8] ss:$16 sps:$4 sm:$0xff]  }
 0xe15   :  { %5344 = vmatprep.subr.bf16.mxu0 %v10042_v53  ;;  %5385 = vmatprep.subr.bf16.mxu1 %v10044_v41  ;;  %v10048_v4 = vld [vmem:[#allocation8 + $0xa4] ss:$16 sps:$4 sm:$0xff]   ;;  %v10050_v5 = vld [vmem:[#allocation8 + $0xac] ss:$16 sps:$4 sm:$0xff]   ;;  %v10052_v32 = vld [vmem:[#allocation8 + $0xa0] ss:$16 sps:$4 sm:$0xff]  }
 0xe16   :  { %v10053_v33 = vld [vmem:[#allocation8 + $0xa8] ss:$16 sps:$4 sm:$0xff]   ;;  %v10054_v36 = vld [vmem:[#allocation8 + $0x84] ss:$16 sps:$4 sm:$0xff]   ;;  %v10056_v37 = vld [vmem:[#allocation8 + $0x8c] ss:$16 sps:$4 sm:$0xff]  }
 0xe17   :  { %v10058_v24 = vld [vmem:[#allocation8 + $0x80] ss:$16 sps:$4 sm:$0xff]   ;;  %v10059_v25 = vld [vmem:[#allocation8 + $0x88] ss:$16 sps:$4 sm:$0xff]   ;;  %v10060_v28 = vld [vmem:[#allocation8 + $0x64] ss:$16 sps:$4 sm:$0xff]  }
 0xe18   :  { %5345 = vmatpush1.bf16.msra.mxu0 %v10046_v44  ;;  %5386 = vmatpush1.bf16.msra.mxu1 %v10047_v45  ;;  %v10062_v13 = vld [vmem:[#allocation8 + $0x6c] ss:$16 sps:$4 sm:$0xff]   ;;  %v10064_v29 = vld [vmem:[#allocation8 + $0x60] ss:$16 sps:$4 sm:$0xff]   ;;  %v10065_v16 = vld [vmem:[#allocation8 + $0x68] ss:$16 sps:$4 sm:$0xff]  }
 0xe19   :  { %5346 = vmatprep.subr.bf16.mxu0 %v10048_v4  ;;  %5387 = vmatprep.subr.bf16.mxu1 %v10050_v5  ;;  %v10066_v17 = vld [vmem:[#allocation8 + $0x44] ss:$16 sps:$4 sm:$0xff]   ;;  %v10068_v12 = vld [vmem:[#allocation8 + $0x4c] ss:$16 sps:$4 sm:$0xff]   ;;  %v10070_v22 = vld [vmem:[#allocation8 + $0x40] ss:$16 sps:$4 sm:$0xff]  }
 0xe1a   :  { %v10071_v23 = vld [vmem:[#allocation8 + $0x48] ss:$16 sps:$4 sm:$0xff]   ;;  %v10072_v8 = vld [vmem:[#allocation8 + $0x24] ss:$16 sps:$4 sm:$0xff]   ;;  %v10074_v21 = vld [vmem:[#allocation8 + $0x2c] ss:$16 sps:$4 sm:$0xff]  }
 0xe1b   :  { %v10076_v9 = vld [vmem:[#allocation8 + $0x20] ss:$16 sps:$4 sm:$0xff]   ;;  %v10077_v15 = vld [vmem:[#allocation8 + $0x28] ss:$16 sps:$4 sm:$0xff]   ;;  %v10078_v0 = vld [vmem:[#allocation8 + $0x4] ss:$16 sps:$4 sm:$0xff]  }
 0xe1c   :  { %5347 = vmatpush1.bf16.msra.mxu0 %v10052_v32  ;;  %5388 = vmatpush1.bf16.msra.mxu1 %v10053_v33  ;;  %v10080_v1 = vld [vmem:[#allocation8 + $0xc] ss:$16 sps:$4 sm:$0xff]   ;;  %v10082_v51 = vld [vmem:[#allocation8] ss:$16 sps:$4 sm:$0xff]   ;;  %v10083_v54 = vld [vmem:[#allocation8 + $0x8] ss:$16 sps:$4 sm:$0xff]  }
 0xe1d   :  { %5348 = vmatprep.subr.bf16.mxu0 %v10054_v36  ;;  %5389 = vmatprep.subr.bf16.mxu1 %v10056_v37  ;;  %v10084_v55 = vld [vmem:[#allocation8 + $0x1e4] ss:$16 sps:$4 sm:$0xff]   ;;  %v10086_v63 = vld [vmem:[#allocation8 + $0x1ec] ss:$16 sps:$4 sm:$0xff]   ;;  %v10088_v3 = vld [vmem:[#allocation8 + $0x1e0] ss:$16 sps:$4 sm:$0xff]  }
 0xe1e   :  { %v10089_v42 = vld [vmem:[#allocation8 + $0x1e8] ss:$16 sps:$4 sm:$0xff]   ;;  %v10090_v61 = vld [vmem:[#allocation8 + $0x1c4] ss:$16 sps:$4 sm:$0xff]   ;;  %v10092_v43 = vld [vmem:[#allocation8 + $0x1cc] ss:$16 sps:$4 sm:$0xff]  }
 0xe1f   :  { %v10094_v46 = vld [vmem:[#allocation8 + $0x1c0] ss:$16 sps:$4 sm:$0xff]   ;;  %v10095_v31 = vld [vmem:[#allocation8 + $0x1c8] ss:$16 sps:$4 sm:$0xff]   ;;  %v10096_v47 = vld [vmem:[#allocation8 + $0x1a4] ss:$16 sps:$4 sm:$0xff]  }
 0xe20   :  { %5349 = vmatpush1.bf16.msra.mxu0 %v10058_v24  ;;  %5390 = vmatpush1.bf16.msra.mxu1 %v10059_v25  ;;  %v10098_v7 = vld [vmem:[#allocation8 + $0x1ac] ss:$16 sps:$4 sm:$0xff]   ;;  %v10100_v34 = vld [vmem:[#allocation8 + $0x1a0] ss:$16 sps:$4 sm:$0xff]   ;;  %v10101_v35 = vld [vmem:[#allocation8 + $0x1a8] ss:$16 sps:$4 sm:$0xff]  }
 0xe21   :  { %5350 = vmatprep.subr.bf16.mxu0 %v10060_v28  ;;  %5391 = vmatprep.subr.bf16.mxu1 %v10062_v13  ;;  %v10102_v38 = vld [vmem:[#allocation8 + $0x184] ss:$16 sps:$4 sm:$0xff]   ;;  %v10104_v26 = vld [vmem:[#allocation8 + $0x18c] ss:$16 sps:$4 sm:$0xff]   ;;  %v10106_v27 = vld [vmem:[#allocation8 + $0x180] ss:$16 sps:$4 sm:$0xff]  }
 0xe22   :  { %v10107_v30 = vld [vmem:[#allocation8 + $0x188] ss:$16 sps:$4 sm:$0xff]   ;;  %v10108_v2 = vld [vmem:[#allocation8 + $0x164] ss:$16 sps:$4 sm:$0xff]   ;;  %v10110_v6 = vld [vmem:[#allocation8 + $0x16c] ss:$16 sps:$4 sm:$0xff]  }
 0xe23   :  { %v10112_v18 = vld [vmem:[#allocation8 + $0x160] ss:$16 sps:$4 sm:$0xff]   ;;  %v10113_v19 = vld [vmem:[#allocation8 + $0x168] ss:$16 sps:$4 sm:$0xff]   ;;  %v10114_v20 = vld [vmem:[#allocation8 + $0x144] ss:$16 sps:$4 sm:$0xff]  }
 0xe24   :  { %5351 = vmatpush1.bf16.msra.mxu0 %v10064_v29  ;;  %5392 = vmatpush1.bf16.msra.mxu1 %v10065_v16  ;;  %v10116_v56 = vld [vmem:[#allocation8 + $0x14c] ss:$16 sps:$4 sm:$0xff]   ;;  %v10118_v57 = vld [vmem:[#allocation8 + $0x140] ss:$16 sps:$4 sm:$0xff]   ;;  %v10119_v60 = vld [vmem:[#allocation8 + $0x148] ss:$16 sps:$4 sm:$0xff]  }
 0xe25   :  { %5352 = vmatprep.subr.bf16.mxu0 %v10066_v17  ;;  %5393 = vmatprep.subr.bf16.mxu1 %v10068_v12  ;;  %v10120_v10 = vld [vmem:[#allocation8 + $0x124] ss:$16 sps:$4 sm:$0xff]   ;;  %v10122_v14 = vld [vmem:[#allocation8 + $0x12c] ss:$16 sps:$4 sm:$0xff]   ;;  %v10124_v53 = vld [vmem:[#allocation8 + $0x120] ss:$16 sps:$4 sm:$0xff]  }
 0xe26   :  { %v10125_v41 = vld [vmem:[#allocation8 + $0x128] ss:$16 sps:$4 sm:$0xff]   ;;  %v10126_v44 = vld [vmem:[#allocation8 + $0x104] ss:$16 sps:$4 sm:$0xff]   ;;  %v10128_v45 = vld [vmem:[#allocation8 + $0x10c] ss:$16 sps:$4 sm:$0xff]  }
 0xe27   :  { %v10130_v4 = vld [vmem:[#allocation8 + $0x100] ss:$16 sps:$4 sm:$0xff]   ;;  %v10131_v5 = vld [vmem:[#allocation8 + $0x108] ss:$16 sps:$4 sm:$0xff]  }
 0xe28   :  { %5353 = vmatpush1.bf16.msra.mxu0 %v10070_v22  ;;  %5394 = vmatpush1.bf16.msra.mxu1 %v10071_v23  ;;  %v5000_v32 = vld [vmem:[#allocation12 + $0x1b] sm:$0xf] }
 0xe29   :  { %5354 = vmatprep.subr.bf16.mxu0 %v10072_v8  ;;  %5395 = vmatprep.subr.bf16.mxu1 %v10074_v21  ;;  %v5005_v33 = vrot.slane %v5000_v32, %v11127_v49  ;;  %v5013_v36 = vrot.slane %v5000_v32, %v11130_v52  ;;  %v5009_v37 = vrot.slane %v5000_v32, %v11133_v11 }
 0xe2a   :  { %v5017_v24 = vrot.slane %v5000_v32, %v11136_v40 }
 0xe2c   :  { %5355 = vmatpush1.bf16.msra.mxu0 %v10076_v9  ;;  %5396 = vmatpush1.bf16.msra.mxu1 %v10077_v15 }
 0xe2d   :  { %5356 = vmatprep.subr.bf16.mxu0 %v10078_v0  ;;  %5397 = vmatprep.subr.bf16.mxu1 %v10080_v1 }
 0xe30   :  { %5357 = vmatpush1.bf16.msra.mxu0 %v10082_v51  ;;  %5398 = vmatpush1.bf16.msra.mxu1 %v10083_v54 }
 0xe31   :  { %5358 = vmatprep.subr.bf16.mxu0 %v10084_v55  ;;  %5399 = vmatprep.subr.bf16.mxu1 %v10086_v63 }
 0xe34   :  { %5359 = vmatpush2.bf16.msra.mxu0 %v10088_v3  ;;  %5400 = vmatpush2.bf16.msra.mxu1 %v10089_v42 }
 0xe35   :  { %5360 = vmatprep.subr.bf16.mxu0 %v10090_v61  ;;  %5401 = vmatprep.subr.bf16.mxu1 %v10092_v43 }
 0xe38   :  { %5361 = vmatpush2.bf16.msra.mxu0 %v10094_v46  ;;  %5402 = vmatpush2.bf16.msra.mxu1 %v10095_v31 }
 0xe39   :  { %5362 = vmatprep.subr.bf16.mxu0 %v10096_v47  ;;  %5403 = vmatprep.subr.bf16.mxu1 %v10098_v7 }
 0xe3c   :  { %5363 = vmatpush2.bf16.msra.mxu0 %v10100_v34  ;;  %5404 = vmatpush2.bf16.msra.mxu1 %v10101_v35 }
 0xe3d   :  { %5364 = vmatprep.subr.bf16.mxu0 %v10102_v38  ;;  %5405 = vmatprep.subr.bf16.mxu1 %v10104_v26 }
 0xe40   :  { %5365 = vmatpush2.bf16.msra.mxu0 %v10106_v27  ;;  %5406 = vmatpush2.bf16.msra.mxu1 %v10107_v30 }
 0xe41   :  { %5366 = vmatprep.subr.bf16.mxu0 %v10108_v2  ;;  %5407 = vmatprep.subr.bf16.mxu1 %v10110_v6 }
 0xe44   :  { %5367 = vmatpush2.bf16.msra.mxu0 %v10112_v18  ;;  %5408 = vmatpush2.bf16.msra.mxu1 %v10113_v19 }
 0xe45   :  { %5368 = vmatprep.subr.bf16.mxu0 %v10114_v20  ;;  %5409 = vmatprep.subr.bf16.mxu1 %v10116_v56 }
 0xe48   :  { %5369 = vmatpush2.bf16.msra.mxu0 %v10118_v57  ;;  %5410 = vmatpush2.bf16.msra.mxu1 %v10119_v60 }
 0xe49   :  { %5370 = vmatprep.subr.bf16.mxu0 %v10120_v10  ;;  %5411 = vmatprep.subr.bf16.mxu1 %v10122_v14 }
 0xe4c   :  { %5371 = vmatpush2.bf16.msra.mxu0 %v10124_v53  ;;  %5412 = vmatpush2.bf16.msra.mxu1 %v10125_v41 }
 0xe4d   :  { %5372 = vmatprep.subr.bf16.mxu0 %v10126_v44  ;;  %5413 = vmatprep.subr.bf16.mxu1 %v10128_v45 }
 0xe50   :  { %5373 = vmatpush2.bf16.msra.mxu0 %v10130_v4  ;;  %5414 = vmatpush2.bf16.msra.mxu1 %v10131_v5 }
 0xe53   :  { %5375 = vmatmul.mubr.bf16.vlgmr.msra.gmra.mxu0 %v11301_v39  ;;  %5416 = vmatmul.mubr.bf16.vlgmr.msra.gmra.mxu1 %v11301_v39 }
 0xf13   :  { %v5376_v25 = vpop.f32.mrf.mxu0  ;;  %v5417_v28 = vpop.f32.mrf.mxu1 }
 0xf14   :  { %v5377_v13 = vadd.f32 %v5376_v25, %v5005_v33  ;;  %v5418_v29 = vadd.f32 %v5417_v28, %v5013_v36 }
 0xf15   :  { %v5378_v16 = vpop.f32.mrf.mxu0  ;;  %v5419_v17 = vpop.f32.mrf.mxu1 }
 0xf16   :  { %v5424_v12 = vmax.f32 %v5377_v13, 0.0  ;;  %v5426_v22 = vmax.f32 %v5418_v29, 0.0  ;;  %v5379_v23 = vadd.f32 %v5378_v16, %v5009_v37  ;;  %v5420_v8 = vadd.f32 %v5419_v17, %v5017_v24 }
 0xf17   :  { %v5380_v39 = vpop.f32.mrf.mxu0  ;;  %v5421_v21 = vpop.f32.mrf.mxu1 }
 0xf18   :  { %v11309_v9 = vpack.c.bf16 %v5424_v12, %v5424_v12  ;;  %v11311_v15 = vpack.c.bf16 %v5426_v22, %v5426_v22  ;;  %v5425_v0 = vmax.f32 %v5379_v23, 0.0  ;;  %v5427_v1 = vmax.f32 %v5420_v8, 0.0 }
 0xf19   :  { %v5381_v51 = vpop.f32.mrf.mxu0  ;;  %v5422_v54 = vpop.f32.mrf.mxu1 }
 0xf1a   :  { %v11313_v55 = vpack.c.bf16 %v5425_v0, %v5425_v0  ;;  %v11315_v63 = vpack.c.bf16 %v5427_v1, %v5427_v1 }
 0xf1b   :  { %10372 = dma.done.wait [#allocation11 + $0x7], 32768 }
 0xf1c   :  { %10373 = vsyncadd [#allocation11 + $0x7], 4294934528  ;;  %7045 = vmatprep.mubr.bf16.mxu0 %v11313_v55  ;;  %7086 = vmatprep.mubr.bf16.mxu1 %v11315_v63  ;;  %v5491_v3 = vld [vmem:[#allocation9 + $0x1c0] sm:$0xff] }
 0xf1d   :  { %v5495_v42 = vld [vmem:[#allocation9 + $0x1e0] sm:$0xff] }
 0xf1e   :  { %v5619_v61 = vld [vmem:[#allocation9 + $0x5c0] sm:$0xff]  ;;  %v8752_v43 = vcombine.high %v5491_v3, %v5495_v42  ;;  %v8751_v31 = vcombine.low %v5491_v3, %v5495_v42 }
 0xf1f   :  { %v5623_v46 = vld [vmem:[#allocation9 + $0x5e0] sm:$0xff] }
 0xf20   :  { %v5483_v47 = vld [vmem:[#allocation9 + $0x180] sm:$0xff]  ;;  %v8880_v34 = vcombine.high %v5619_v61, %v5623_v46  ;;  %v8879_v35 = vcombine.low %v5619_v61, %v5623_v46  ;;  %7013 = vmatprep.subr.bf16.mxu0 %v8752_v43 }
 0xf21   :  { %v5487_v7 = vld [vmem:[#allocation9 + $0x1a0] sm:$0xff]  ;;  %7014 = vmatpush1.bf16.msra.mxu0 %v8751_v31 }
 0xf22   :  { %v8744_v38 = vcombine.high %v5483_v47, %v5487_v7  ;;  %v5611_v26 = vld [vmem:[#allocation9 + $0x580] sm:$0xff]  ;;  %7054 = vmatprep.subr.bf16.mxu1 %v8880_v34  ;;  %v8743_v20 = vcombine.low %v5483_v47, %v5487_v7 }
 0xf23   :  { %v5615_v27 = vld [vmem:[#allocation9 + $0x5a0] sm:$0xff]  ;;  %7055 = vmatpush1.bf16.msra.mxu1 %v8879_v35 }
 0xf24   :  { %v5475_v30 = vld [vmem:[#allocation9 + $0x140] sm:$0xff]  ;;  %v8872_v2 = vcombine.high %v5611_v26, %v5615_v27  ;;  %7015 = vmatprep.subr.bf16.mxu0 %v8744_v38  ;;  %v8871_v56 = vcombine.low %v5611_v26, %v5615_v27 }
 0xf25   :  { %v5479_v6 = vld [vmem:[#allocation9 + $0x160] sm:$0xff]  ;;  %7016 = vmatpush1.bf16.msra.mxu0 %v8743_v20 }
 0xf26   :  { %v5603_v18 = vld [vmem:[#allocation9 + $0x540] sm:$0xff]  ;;  %v8736_v57 = vcombine.high %v5475_v30, %v5479_v6  ;;  %7056 = vmatprep.subr.bf16.mxu1 %v8872_v2  ;;  %v8735_v44 = vcombine.low %v5475_v30, %v5479_v6 }
 0xf27   :  { %v5607_v19 = vld [vmem:[#allocation9 + $0x560] sm:$0xff]  ;;  %7057 = vmatpush1.bf16.msra.mxu1 %v8871_v56 }
 0xf28   :  { %v8864_v60 = vcombine.high %v5603_v18, %v5607_v19  ;;  %v5467_v10 = vld [vmem:[#allocation9 + $0x100] sm:$0xff]  ;;  %7017 = vmatprep.subr.bf16.mxu0 %v8736_v57  ;;  %v8863_v45 = vcombine.low %v5603_v18, %v5607_v19 }
 0xf29   :  { %v5471_v14 = vld [vmem:[#allocation9 + $0x120] sm:$0xff]  ;;  %7018 = vmatpush1.bf16.msra.mxu0 %v8735_v44 }
 0xf2a   :  { %v5595_v53 = vld [vmem:[#allocation9 + $0x500] sm:$0xff]  ;;  %v8728_v4 = vcombine.high %v5467_v10, %v5471_v14  ;;  %7058 = vmatprep.subr.bf16.mxu1 %v8864_v60  ;;  %v8727_v24 = vcombine.low %v5467_v10, %v5471_v14 }
 0xf2b   :  { %v5599_v41 = vld [vmem:[#allocation9 + $0x520] sm:$0xff]  ;;  %7059 = vmatpush1.bf16.msra.mxu1 %v8863_v45 }
 0xf2c   :  { %v8856_v5 = vcombine.high %v5595_v53, %v5599_v41  ;;  %v5459_v32 = vld [vmem:[#allocation9 + $0xc0] sm:$0xff]  ;;  %7019 = vmatprep.subr.bf16.mxu0 %v8728_v4  ;;  %v8855_v25 = vcombine.low %v5595_v53, %v5599_v41 }
 0xf2d   :  { %v5463_v33 = vld [vmem:[#allocation9 + $0xe0] sm:$0xff]  ;;  %7020 = vmatpush1.bf16.msra.mxu0 %v8727_v24 }
 0xf2e   :  { %v5587_v36 = vld [vmem:[#allocation9 + $0x4c0] sm:$0xff]  ;;  %v8720_v28 = vcombine.high %v5459_v32, %v5463_v33  ;;  %7060 = vmatprep.subr.bf16.mxu1 %v8856_v5  ;;  %v8719_v22 = vcombine.low %v5459_v32, %v5463_v33 }
 0xf2f   :  { %v5591_v37 = vld [vmem:[#allocation9 + $0x4e0] sm:$0xff]  ;;  %7061 = vmatpush1.bf16.msra.mxu1 %v8855_v25 }
 0xf30   :  { %v8848_v13 = vcombine.high %v5587_v36, %v5591_v37  ;;  %v5451_v29 = vld [vmem:[#allocation9 + $0x80] sm:$0xff]  ;;  %7021 = vmatprep.subr.bf16.mxu0 %v8720_v28  ;;  %v8847_v23 = vcombine.low %v5587_v36, %v5591_v37 }
 0xf31   :  { %v5455_v16 = vld [vmem:[#allocation9 + $0xa0] sm:$0xff]  ;;  %7022 = vmatpush1.bf16.msra.mxu0 %v8719_v22 }
 0xf32   :  { %v5579_v17 = vld [vmem:[#allocation9 + $0x480] sm:$0xff]  ;;  %v8712_v8 = vcombine.high %v5451_v29, %v5455_v16  ;;  %7062 = vmatprep.subr.bf16.mxu1 %v8848_v13  ;;  %v8711_v54 = vcombine.low %v5451_v29, %v5455_v16 }
 0xf33   :  { %v5583_v12 = vld [vmem:[#allocation9 + $0x4a0] sm:$0xff]  ;;  %7063 = vmatpush1.bf16.msra.mxu1 %v8847_v23 }
 0xf34   :  { %v8840_v39 = vcombine.high %v5579_v17, %v5583_v12  ;;  %v5443_v21 = vld [vmem:[#allocation9 + $0x40] sm:$0xff]  ;;  %7023 = vmatprep.subr.bf16.mxu0 %v8712_v8  ;;  %v8839_v3 = vcombine.low %v5579_v17, %v5583_v12 }
 0xf35   :  { %v5447_v0 = vld [vmem:[#allocation9 + $0x60] sm:$0xff]  ;;  %7024 = vmatpush1.bf16.msra.mxu0 %v8711_v54 }
 0xf36   :  { %v5571_v1 = vld [vmem:[#allocation9 + $0x440] sm:$0xff]  ;;  %v8704_v42 = vcombine.high %v5443_v21, %v5447_v0  ;;  %7064 = vmatprep.subr.bf16.mxu1 %v8840_v39  ;;  %v8703_v7 = vcombine.low %v5443_v21, %v5447_v0 }
 0xf37   :  { %v5575_v51 = vld [vmem:[#allocation9 + $0x460] sm:$0xff]  ;;  %7065 = vmatpush1.bf16.msra.mxu1 %v8839_v3 }
 0xf38   :  { %v8832_v61 = vcombine.high %v5571_v1, %v5575_v51  ;;  %v5435_v43 = vld [vmem:[#allocation9] sm:$0xff]  ;;  %7025 = vmatprep.subr.bf16.mxu0 %v8704_v42  ;;  %v8831_v34 = vcombine.low %v5571_v1, %v5575_v51 }
 0xf39   :  { %v5439_v46 = vld [vmem:[#allocation9 + $0x20] sm:$0xff]  ;;  %7026 = vmatpush1.bf16.msra.mxu0 %v8703_v7 }
 0xf3a   :  { %v5563_v31 = vld [vmem:[#allocation9 + $0x400] sm:$0xff]  ;;  %v8696_v35 = vcombine.high %v5435_v43, %v5439_v46  ;;  %7066 = vmatprep.subr.bf16.mxu1 %v8832_v61  ;;  %v8695_v6 = vcombine.low %v5435_v43, %v5439_v46 }
 0xf3b   :  { %v5567_v47 = vld [vmem:[#allocation9 + $0x420] sm:$0xff]  ;;  %7067 = vmatpush1.bf16.msra.mxu1 %v8831_v34 }
 0xf3c   :  { %v8824_v38 = vcombine.high %v5563_v31, %v5567_v47  ;;  %v5555_v26 = vld [vmem:[#allocation9 + $0x3c0] sm:$0xff]  ;;  %7027 = vmatprep.subr.bf16.mxu0 %v8696_v35  ;;  %v8823_v18 = vcombine.low %v5563_v31, %v5567_v47 }
 0xf3d   :  { %v5559_v27 = vld [vmem:[#allocation9 + $0x3e0] sm:$0xff]  ;;  %7028 = vmatpush1.bf16.msra.mxu0 %v8695_v6 }
 0xf3e   :  { %v5683_v30 = vld [vmem:[#allocation9 + $0x7c0] sm:$0xff]  ;;  %v8816_v19 = vcombine.high %v5555_v26, %v5559_v27  ;;  %7068 = vmatprep.subr.bf16.mxu1 %v8824_v38  ;;  %v8815_v14 = vcombine.low %v5555_v26, %v5559_v27 }
 0xf3f   :  { %v5687_v2 = vld [vmem:[#allocation9 + $0x7e0] sm:$0xff]  ;;  %7069 = vmatpush1.bf16.msra.mxu1 %v8823_v18 }
 0xf40   :  { %v8944_v20 = vcombine.high %v5683_v30, %v5687_v2  ;;  %v5547_v56 = vld [vmem:[#allocation9 + $0x380] sm:$0xff]  ;;  %7029 = vmatprep.subr.bf16.mxu0 %v8816_v19  ;;  %v8943_v53 = vcombine.low %v5683_v30, %v5687_v2 }
 0xf41   :  { %v5551_v57 = vld [vmem:[#allocation9 + $0x3a0] sm:$0xff]  ;;  %7030 = vmatpush2.bf16.msra.mxu0 %v8815_v14 }
 0xf42   :  { %v5675_v60 = vld [vmem:[#allocation9 + $0x780] sm:$0xff]  ;;  %v8808_v41 = vcombine.high %v5547_v56, %v5551_v57  ;;  %7070 = vmatprep.subr.bf16.mxu1 %v8944_v20  ;;  %v8807_v33 = vcombine.low %v5547_v56, %v5551_v57 }
 0xf43   :  { %v5679_v10 = vld [vmem:[#allocation9 + $0x7a0] sm:$0xff]  ;;  %7071 = vmatpush2.bf16.msra.mxu1 %v8943_v53  ;;  %v5492_v53 = vld [vmem:[#allocation9 + $0x1c8] sm:$0xff] }
 0xf44   :  { %v8936_v44 = vcombine.high %v5675_v60, %v5679_v10  ;;  %v5539_v45 = vld [vmem:[#allocation9 + $0x340] sm:$0xff]  ;;  %7031 = vmatprep.subr.bf16.mxu0 %v8808_v41  ;;  %v8935_v36 = vcombine.low %v5675_v60, %v5679_v10  ;;  %v5496_v41 = vld [vmem:[#allocation9 + $0x1e8] sm:$0xff] }
 0xf45   :  { %v5543_v4 = vld [vmem:[#allocation9 + $0x360] sm:$0xff]  ;;  %7032 = vmatpush2.bf16.msra.mxu0 %v8807_v33 }
 0xf46   :  { %v5667_v5 = vld [vmem:[#allocation9 + $0x740] sm:$0xff]  ;;  %v8800_v37 = vcombine.high %v5539_v45, %v5543_v4  ;;  %7072 = vmatprep.subr.bf16.mxu1 %v8936_v44  ;;  %v8799_v16 = vcombine.low %v5539_v45, %v5543_v4  ;;  %v5620_v44 = vld [vmem:[#allocation9 + $0x5c8] sm:$0xff] }
 0xf47   :  { %v5671_v32 = vld [vmem:[#allocation9 + $0x760] sm:$0xff]  ;;  %7073 = vmatpush2.bf16.msra.mxu1 %v8935_v36  ;;  %v5624_v45 = vld [vmem:[#allocation9 + $0x5e8] sm:$0xff] }
 0xf48   :  { %v8928_v24 = vcombine.high %v5667_v5, %v5671_v32  ;;  %v5531_v25 = vld [vmem:[#allocation9 + $0x300] sm:$0xff]  ;;  %7033 = vmatprep.subr.bf16.mxu0 %v8800_v37  ;;  %v8927_v17 = vcombine.low %v5667_v5, %v5671_v32  ;;  %v8754_v32 = vcombine.high %v5492_v53, %v5496_v41  ;;  %v8882_v33 = vcombine.high %v5620_v44, %v5624_v45  ;;  %v5484_v36 = vld [vmem:[#allocation9 + $0x188] sm:$0xff] }
 0xf49   :  { %v5535_v28 = vld [vmem:[#allocation9 + $0x320] sm:$0xff]  ;;  %7034 = vmatpush2.bf16.msra.mxu0 %v8799_v16  ;;  %v5488_v37 = vld [vmem:[#allocation9 + $0x1a8] sm:$0xff] }
 0xf4a   :  { %v5659_v13 = vld [vmem:[#allocation9 + $0x700] sm:$0xff]  ;;  %v8792_v12 = vcombine.high %v5531_v25, %v5535_v28  ;;  %7074 = vmatprep.subr.bf16.mxu1 %v8928_v24  ;;  %v8791_v0 = vcombine.low %v5531_v25, %v5535_v28  ;;  %v5612_v24 = vld [vmem:[#allocation9 + $0x588] sm:$0xff]  ;;  %v8753_v28 = vcombine.low %v5492_v53, %v5496_v41 }
 0xf4b   :  { %v5663_v29 = vld [vmem:[#allocation9 + $0x720] sm:$0xff]  ;;  %7075 = vmatpush2.bf16.msra.mxu1 %v8927_v17  ;;  %v5616_v25 = vld [vmem:[#allocation9 + $0x5a8] sm:$0xff] }
 0xf4c   :  { %v8920_v22 = vcombine.high %v5659_v13, %v5663_v29  ;;  %v5523_v23 = vld [vmem:[#allocation9 + $0x2c0] sm:$0xff]  ;;  %7035 = vmatprep.subr.bf16.mxu0 %v8792_v12  ;;  %v8919_v1 = vcombine.low %v5659_v13, %v5663_v29  ;;  %v8881_v13 = vcombine.low %v5620_v44, %v5624_v45  ;;  %v8746_v29 = vcombine.high %v5484_v36, %v5488_v37  ;;  %v5476_v17 = vld [vmem:[#allocation9 + $0x148] sm:$0xff] }
 0xf4d   :  { %v5527_v8 = vld [vmem:[#allocation9 + $0x2e0] sm:$0xff]  ;;  %7036 = vmatpush2.bf16.msra.mxu0 %v8791_v0  ;;  %v8874_v16 = vcombine.high %v5612_v24, %v5616_v25  ;;  %v5480_v12 = vld [vmem:[#allocation9 + $0x168] sm:$0xff] }
 0xf4e   :  { %v5651_v39 = vld [vmem:[#allocation9 + $0x6c0] sm:$0xff]  ;;  %v8784_v51 = vcombine.high %v5523_v23, %v5527_v8  ;;  %7076 = vmatprep.subr.bf16.mxu1 %v8920_v22  ;;  %v8783_v46 = vcombine.low %v5523_v23, %v5527_v8  ;;  %v5604_v22 = vld [vmem:[#allocation9 + $0x548] sm:$0xff]  ;;  %v8745_v8 = vcombine.low %v5484_v36, %v5488_v37 }
 0xf4f   :  { %v5655_v21 = vld [vmem:[#allocation9 + $0x6e0] sm:$0xff]  ;;  %7077 = vmatpush2.bf16.msra.mxu1 %v8919_v1  ;;  %v5608_v23 = vld [vmem:[#allocation9 + $0x568] sm:$0xff] }
 0xf50   :  { %v8912_v54 = vcombine.high %v5651_v39, %v5655_v21  ;;  %v5515_v3 = vld [vmem:[#allocation9 + $0x280] sm:$0xff]  ;;  %7037 = vmatprep.subr.bf16.mxu0 %v8784_v51  ;;  %v8911_v31 = vcombine.low %v5651_v39, %v5655_v21  ;;  %v8873_v39 = vcombine.low %v5612_v24, %v5616_v25  ;;  %v8738_v21 = vcombine.high %v5476_v17, %v5480_v12  ;;  %v5468_v1 = vld [vmem:[#allocation9 + $0x108] sm:$0xff] }
 0xf51   :  { %v5519_v42 = vld [vmem:[#allocation9 + $0x2a0] sm:$0xff]  ;;  %7038 = vmatpush2.bf16.msra.mxu0 %v8783_v46  ;;  %v8866_v0 = vcombine.high %v5604_v22, %v5608_v23  ;;  %v5472_v51 = vld [vmem:[#allocation9 + $0x128] sm:$0xff] }
 0xf52   :  { %v5643_v61 = vld [vmem:[#allocation9 + $0x680] sm:$0xff]  ;;  %v8776_v47 = vcombine.high %v5515_v3, %v5519_v42  ;;  %7078 = vmatprep.subr.bf16.mxu1 %v8912_v54  ;;  %v8775_v27 = vcombine.low %v5515_v3, %v5519_v42  ;;  %v5596_v54 = vld [vmem:[#allocation9 + $0x508] sm:$0xff]  ;;  %v8737_v42 = vcombine.low %v5476_v17, %v5480_v12 }
 0xf53   :  { %v5647_v43 = vld [vmem:[#allocation9 + $0x6a0] sm:$0xff]  ;;  %7079 = vmatpush2.bf16.msra.mxu1 %v8911_v31  ;;  %v5600_v3 = vld [vmem:[#allocation9 + $0x528] sm:$0xff] }
 0xf54   :  { %v8904_v7 = vcombine.high %v5643_v61, %v5647_v43  ;;  %v5507_v34 = vld [vmem:[#allocation9 + $0x240] sm:$0xff]  ;;  %7039 = vmatprep.subr.bf16.mxu0 %v8776_v47  ;;  %v8903_v30 = vcombine.low %v5643_v61, %v5647_v43  ;;  %v8865_v61 = vcombine.low %v5604_v22, %v5608_v23  ;;  %v8730_v43 = vcombine.high %v5468_v1, %v5472_v51  ;;  %v5460_v31 = vld [vmem:[#allocation9 + $0xc8] sm:$0xff] }
 0xf55   :  { %v5511_v35 = vld [vmem:[#allocation9 + $0x260] sm:$0xff]  ;;  %7040 = vmatpush2.bf16.msra.mxu0 %v8775_v27  ;;  %v8858_v46 = vcombine.high %v5596_v54, %v5600_v3  ;;  %v5464_v47 = vld [vmem:[#allocation9 + $0xe8] sm:$0xff] }
 0xf56   :  { %v5635_v38 = vld [vmem:[#allocation9 + $0x640] sm:$0xff]  ;;  %v8768_v2 = vcombine.high %v5507_v34, %v5511_v35  ;;  %7080 = vmatprep.subr.bf16.mxu1 %v8904_v7  ;;  %v8767_v57 = vcombine.low %v5507_v34, %v5511_v35  ;;  %v5588_v7 = vld [vmem:[#allocation9 + $0x4c8] sm:$0xff]  ;;  %v8729_v35 = vcombine.low %v5468_v1, %v5472_v51 }
 0xf57   :  { %v5639_v26 = vld [vmem:[#allocation9 + $0x660] sm:$0xff]  ;;  %7081 = vmatpush2.bf16.msra.mxu1 %v8903_v30  ;;  %v5592_v34 = vld [vmem:[#allocation9 + $0x4e8] sm:$0xff] }
 0xf58   :  { %v8896_v6 = vcombine.high %v5635_v38, %v5639_v26  ;;  %v5499_v18 = vld [vmem:[#allocation9 + $0x200] sm:$0xff]  ;;  %7041 = vmatprep.subr.bf16.mxu0 %v8768_v2  ;;  %v8895_v60 = vcombine.low %v5635_v38, %v5639_v26  ;;  %v8857_v38 = vcombine.low %v5596_v54, %v5600_v3  ;;  %v8722_v26 = vcombine.high %v5460_v31, %v5464_v47  ;;  %v5452_v30 = vld [vmem:[#allocation9 + $0x88] sm:$0xff] }
 0xf59   :  { %v5503_v19 = vld [vmem:[#allocation9 + $0x220] sm:$0xff]  ;;  %7042 = vmatpush2.bf16.msra.mxu0 %v8767_v57  ;;  %v8850_v27 = vcombine.high %v5588_v7, %v5592_v34  ;;  %v5456_v2 = vld [vmem:[#allocation9 + $0xa8] sm:$0xff] }
 0xf5a   :  { %v5627_v20 = vld [vmem:[#allocation9 + $0x600] sm:$0xff]  ;;  %v8760_v10 = vcombine.high %v5499_v18, %v5503_v19  ;;  %7082 = vmatprep.subr.bf16.mxu1 %v8896_v6  ;;  %v8759_v4 = vcombine.low %v5499_v18, %v5503_v19  ;;  %v5580_v6 = vld [vmem:[#allocation9 + $0x488] sm:$0xff]  ;;  %v8721_v19 = vcombine.low %v5460_v31, %v5464_v47  ;;  %v8713_v41 = vcombine.low %v5452_v30, %v5456_v2 }
 0xf5b   :  { %v5631_v56 = vld [vmem:[#allocation9 + $0x620] sm:$0xff]  ;;  %7083 = vmatpush2.bf16.msra.mxu1 %v8895_v60  ;;  %v5584_v18 = vld [vmem:[#allocation9 + $0x4a8] sm:$0xff] }
 0xf5c   :  { %v8888_v14 = vcombine.high %v5627_v20, %v5631_v56  ;;  %7043 = vmatprep.subr.bf16.mxu0 %v8760_v10  ;;  %v8887_v5 = vcombine.low %v5627_v20, %v5631_v56  ;;  %v8849_v20 = vcombine.low %v5588_v7, %v5592_v34  ;;  %v8714_v56 = vcombine.high %v5452_v30, %v5456_v2  ;;  %v5444_v60 = vld [vmem:[#allocation9 + $0x48] sm:$0xff] }
 0xf5d   :  { %7044 = vmatpush2.bf16.msra.mxu0 %v8759_v4  ;;  %v8842_v57 = vcombine.high %v5580_v6, %v5584_v18  ;;  %v5448_v10 = vld [vmem:[#allocation9 + $0x68] sm:$0xff]  ;;  %v8841_v44 = vcombine.low %v5580_v6, %v5584_v18 }
 0xf5e   :  { %7084 = vmatprep.subr.bf16.mxu1 %v8888_v14  ;;  %7095 = vmatprep.subr.bf16.mxu0 %v8754_v32  ;;  %v5572_v14 = vld [vmem:[#allocation9 + $0x448] sm:$0xff]  ;;  %v8706_v45 = vcombine.high %v5444_v60, %v5448_v10  ;;  %v8705_v37 = vcombine.low %v5444_v60, %v5448_v10 }
 0xf5f   :  { %7085 = vmatpush2.bf16.msra.mxu1 %v8887_v5  ;;  %v5576_v53 = vld [vmem:[#allocation9 + $0x468] sm:$0xff] }
 0xf60   :  { %7136 = vmatprep.subr.bf16.mxu1 %v8882_v33  ;;  %7046 = vmatmul.mubr.bf16.vlgmr.msra.gmra.mxu0 %v11309_v9  ;;  %v8834_v4 = vcombine.high %v5572_v14, %v5576_v53  ;;  %v5436_v5 = vld [vmem:[#allocation9 + $0x8] sm:$0xff]  ;;  %v8833_v24 = vcombine.low %v5572_v14, %v5576_v53 }
 0xf61   :  { %7096 = vmatpush1.bf16.msra.mxu0 %v8753_v28  ;;  %7127 = vmatprep.mubr.bf16.mxu0 %v11313_v55  ;;  %v5440_v32 = vld [vmem:[#allocation9 + $0x28] sm:$0xff] }
 0xf62   :  { %7087 = vmatmul.mubr.bf16.vlgmr.msra.gmra.mxu1 %v11311_v15  ;;  %7097 = vmatprep.subr.bf16.mxu0 %v8746_v29  ;;  %v5564_v33 = vld [vmem:[#allocation9 + $0x408] sm:$0xff]  ;;  %v8698_v25 = vcombine.high %v5436_v5, %v5440_v32  ;;  %v8697_v12 = vcombine.low %v5436_v5, %v5440_v32 }
 0xf63   :  { %7137 = vmatpush1.bf16.msra.mxu1 %v8881_v13  ;;  %7168 = vmatprep.mubr.bf16.mxu1 %v11315_v63  ;;  %v5568_v36 = vld [vmem:[#allocation9 + $0x428] sm:$0xff] }
 0xf64   :  { %7138 = vmatprep.subr.bf16.mxu1 %v8874_v16  ;;  %v8826_v28 = vcombine.high %v5564_v33, %v5568_v36  ;;  %v5556_v13 = vld [vmem:[#allocation9 + $0x3c8] sm:$0xff]  ;;  %v8825_v22 = vcombine.low %v5564_v33, %v5568_v36 }
 0xf65   :  { %7098 = vmatpush1.bf16.msra.mxu0 %v8745_v8  ;;  %v5560_v29 = vld [vmem:[#allocation9 + $0x3e8] sm:$0xff] }
 0xf66   :  { %7099 = vmatprep.subr.bf16.mxu0 %v8738_v21  ;;  %v5684_v16 = vld [vmem:[#allocation9 + $0x7c8] sm:$0xff]  ;;  %v8818_v23 = vcombine.high %v5556_v13, %v5560_v29  ;;  %v8817_v51 = vcombine.low %v5556_v13, %v5560_v29 }
 0xf67   :  { %7139 = vmatpush1.bf16.msra.mxu1 %v8873_v39  ;;  %v5688_v17 = vld [vmem:[#allocation9 + $0x7e8] sm:$0xff] }
 0xf68   :  { %7140 = vmatprep.subr.bf16.mxu1 %v8866_v0  ;;  %v8946_v8 = vcombine.high %v5684_v16, %v5688_v17  ;;  %v5548_v39 = vld [vmem:[#allocation9 + $0x388] sm:$0xff]  ;;  %v8945_v54 = vcombine.low %v5684_v16, %v5688_v17 }
 0xf69   :  { %7100 = vmatpush1.bf16.msra.mxu0 %v8737_v42  ;;  %v5552_v21 = vld [vmem:[#allocation9 + $0x3a8] sm:$0xff] }
 0xf6a   :  { %7101 = vmatprep.subr.bf16.mxu0 %v8730_v43  ;;  %v5676_v0 = vld [vmem:[#allocation9 + $0x788] sm:$0xff]  ;;  %v8810_v3 = vcombine.high %v5548_v39, %v5552_v21  ;;  %v8809_v47 = vcombine.low %v5548_v39, %v5552_v21 }
 0xf6b   :  { %7141 = vmatpush1.bf16.msra.mxu1 %v8865_v61  ;;  %v5680_v1 = vld [vmem:[#allocation9 + $0x7a8] sm:$0xff] }
 0xf6c   :  { %7142 = vmatprep.subr.bf16.mxu1 %v8858_v46  ;;  %v8938_v42 = vcombine.high %v5676_v0, %v5680_v1  ;;  %v5540_v61 = vld [vmem:[#allocation9 + $0x348] sm:$0xff]  ;;  %v8937_v7 = vcombine.low %v5676_v0, %v5680_v1 }
 0xf6d   :  { %7102 = vmatpush1.bf16.msra.mxu0 %v8729_v35  ;;  %v5544_v43 = vld [vmem:[#allocation9 + $0x368] sm:$0xff] }
 0xf6e   :  { %7103 = vmatprep.subr.bf16.mxu0 %v8722_v26  ;;  %v5668_v46 = vld [vmem:[#allocation9 + $0x748] sm:$0xff]  ;;  %v8802_v34 = vcombine.high %v5540_v61, %v5544_v43  ;;  %v8801_v2 = vcombine.low %v5540_v61, %v5544_v43  ;;  %v5625_v61 = vld [vmem:[#allocation9 + $0x5f0] sm:$0xff] }
 0xf6f   :  { %7143 = vmatpush1.bf16.msra.mxu1 %v8857_v38  ;;  %v5672_v31 = vld [vmem:[#allocation9 + $0x768] sm:$0xff] }
 0xf70   :  { %7144 = vmatprep.subr.bf16.mxu1 %v8850_v27  ;;  %v8930_v35 = vcombine.high %v5668_v46, %v5672_v31  ;;  %v5532_v38 = vld [vmem:[#allocation9 + $0x308] sm:$0xff]  ;;  %v8929_v6 = vcombine.low %v5668_v46, %v5672_v31 }
 0xf71   :  { %7104 = vmatpush1.bf16.msra.mxu0 %v8721_v19  ;;  %v5536_v26 = vld [vmem:[#allocation9 + $0x328] sm:$0xff] }
 0xf72   :  { %7105 = vmatprep.subr.bf16.mxu0 %v8714_v56  ;;  %v5660_v27 = vld [vmem:[#allocation9 + $0x708] sm:$0xff]  ;;  %v8794_v18 = vcombine.high %v5532_v38, %v5536_v26  ;;  %v8793_v10 = vcombine.low %v5532_v38, %v5536_v26  ;;  %v5617_v38 = vld [vmem:[#allocation9 + $0x5b0] sm:$0xff] }
 0xf73   :  { %7145 = vmatpush1.bf16.msra.mxu1 %v8849_v20  ;;  %v5664_v30 = vld [vmem:[#allocation9 + $0x728] sm:$0xff] }
 0xf74   :  { %7146 = vmatprep.subr.bf16.mxu1 %v8842_v57  ;;  %v8922_v19 = vcombine.high %v5660_v27, %v5664_v30  ;;  %v5524_v20 = vld [vmem:[#allocation9 + $0x2c8] sm:$0xff]  ;;  %v8921_v14 = vcombine.low %v5660_v27, %v5664_v30 }
 0xf75   :  { %7106 = vmatpush1.bf16.msra.mxu0 %v8713_v41  ;;  %v5528_v56 = vld [vmem:[#allocation9 + $0x2e8] sm:$0xff] }
 0xf76   :  { %7107 = vmatprep.subr.bf16.mxu0 %v8706_v45  ;;  %v5652_v57 = vld [vmem:[#allocation9 + $0x6c8] sm:$0xff]  ;;  %v8786_v53 = vcombine.high %v5524_v20, %v5528_v56  ;;  %v8785_v32 = vcombine.low %v5524_v20, %v5528_v56  ;;  %v5609_v20 = vld [vmem:[#allocation9 + $0x570] sm:$0xff] }
 0xf77   :  { %7147 = vmatpush1.bf16.msra.mxu1 %v8841_v44  ;;  %v5656_v60 = vld [vmem:[#allocation9 + $0x6e8] sm:$0xff] }
 0xf78   :  { %7148 = vmatprep.subr.bf16.mxu1 %v8834_v4  ;;  %v8914_v41 = vcombine.high %v5652_v57, %v5656_v60  ;;  %v5516_v44 = vld [vmem:[#allocation9 + $0x288] sm:$0xff]  ;;  %v8913_v33 = vcombine.low %v5652_v57, %v5656_v60 }
 0xf79   :  { %7108 = vmatpush1.bf16.msra.mxu0 %v8705_v37  ;;  %v5520_v45 = vld [vmem:[#allocation9 + $0x2a8] sm:$0xff] }
 0xf7a   :  { %7109 = vmatprep.subr.bf16.mxu0 %v8698_v25  ;;  %v5644_v4 = vld [vmem:[#allocation9 + $0x688] sm:$0xff]  ;;  %v8778_v36 = vcombine.high %v5516_v44, %v5520_v45  ;;  %v8777_v29 = vcombine.low %v5516_v44, %v5520_v45  ;;  %v5601_v44 = vld [vmem:[#allocation9 + $0x530] sm:$0xff] }
 0xf7b   :  { %7149 = vmatpush1.bf16.msra.mxu1 %v8833_v24  ;;  %v5648_v5 = vld [vmem:[#allocation9 + $0x6a8] sm:$0xff] }
 0xf7c   :  { %7150 = vmatprep.subr.bf16.mxu1 %v8826_v28  ;;  %v8906_v37 = vcombine.high %v5644_v4, %v5648_v5  ;;  %v5508_v24 = vld [vmem:[#allocation9 + $0x248] sm:$0xff]  ;;  %v8905_v16 = vcombine.low %v5644_v4, %v5648_v5 }
 0xf7d   :  { %7110 = vmatpush1.bf16.msra.mxu0 %v8697_v12  ;;  %v5512_v25 = vld [vmem:[#allocation9 + $0x268] sm:$0xff] }
 0xf7e   :  { %7111 = vmatprep.subr.bf16.mxu0 %v8818_v23  ;;  %v5636_v28 = vld [vmem:[#allocation9 + $0x648] sm:$0xff]  ;;  %v8770_v17 = vcombine.high %v5508_v24, %v5512_v25  ;;  %v8769_v21 = vcombine.low %v5508_v24, %v5512_v25  ;;  %v5593_v24 = vld [vmem:[#allocation9 + $0x4f0] sm:$0xff] }
 0xf7f   :  { %7151 = vmatpush1.bf16.msra.mxu1 %v8825_v22  ;;  %v5640_v13 = vld [vmem:[#allocation9 + $0x668] sm:$0xff] }
 0xf80   :  { %7152 = vmatprep.subr.bf16.mxu1 %v8946_v8  ;;  %v8898_v12 = vcombine.high %v5636_v28, %v5640_v13  ;;  %v5500_v22 = vld [vmem:[#allocation9 + $0x208] sm:$0xff]  ;;  %v8897_v0 = vcombine.low %v5636_v28, %v5640_v13 }
 0xf81   :  { %7112 = vmatpush2.bf16.msra.mxu0 %v8817_v51  ;;  %v5504_v23 = vld [vmem:[#allocation9 + $0x228] sm:$0xff] }
 0xf82   :  { %7113 = vmatprep.subr.bf16.mxu0 %v8810_v3  ;;  %v5628_v8 = vld [vmem:[#allocation9 + $0x608] sm:$0xff]  ;;  %v8762_v1 = vcombine.high %v5500_v22, %v5504_v23  ;;  %v5497_v3 = vld [vmem:[#allocation9 + $0x1f0] sm:$0xff]  ;;  %v8761_v43 = vcombine.low %v5500_v22, %v5504_v23 }
 0xf83   :  { %7153 = vmatpush2.bf16.msra.mxu1 %v8945_v54  ;;  %v5632_v39 = vld [vmem:[#allocation9 + $0x628] sm:$0xff]  ;;  %v5493_v54 = vld [vmem:[#allocation9 + $0x1d0] sm:$0xff] }
 0xf84   :  { %7154 = vmatprep.subr.bf16.mxu1 %v8938_v42  ;;  %v8890_v51 = vcombine.high %v5628_v8, %v5632_v39  ;;  %v5621_v42 = vld [vmem:[#allocation9 + $0x5d0] sm:$0xff]  ;;  %v8889_v46 = vcombine.low %v5628_v8, %v5632_v39  ;;  %v8756_v31 = vcombine.high %v5493_v54, %v5497_v3  ;;  %v8755_v26 = vcombine.low %v5493_v54, %v5497_v3 }
 0xf85   :  { %7114 = vmatpush2.bf16.msra.mxu0 %v8809_v47  ;;  %v8884_v47 = vcombine.high %v5621_v42, %v5625_v61  ;;  %v8883_v27 = vcombine.low %v5621_v42, %v5625_v61  ;;  %v5585_v22 = vld [vmem:[#allocation9 + $0x4b0] sm:$0xff] }
 0xf86   :  { %7115 = vmatprep.subr.bf16.mxu0 %v8802_v34  ;;  %v5489_v34 = vld [vmem:[#allocation9 + $0x1b0] sm:$0xff] }
 0xf87   :  { %7155 = vmatpush2.bf16.msra.mxu1 %v8937_v7  ;;  %v5485_v7 = vld [vmem:[#allocation9 + $0x190] sm:$0xff] }
 0xf88   :  { %7156 = vmatprep.subr.bf16.mxu1 %v8930_v35  ;;  %v5613_v35 = vld [vmem:[#allocation9 + $0x590] sm:$0xff]  ;;  %v8748_v30 = vcombine.high %v5485_v7, %v5489_v34  ;;  %v8747_v56 = vcombine.low %v5485_v7, %v5489_v34 }
 0xf89   :  { %7116 = vmatpush2.bf16.msra.mxu0 %v8801_v2  ;;  %v8876_v2 = vcombine.high %v5613_v35, %v5617_v38  ;;  %v8875_v57 = vcombine.low %v5613_v35, %v5617_v38  ;;  %v5577_v54 = vld [vmem:[#allocation9 + $0x470] sm:$0xff] }
 0xf8a   :  { %7117 = vmatprep.subr.bf16.mxu0 %v8794_v18  ;;  %v5481_v18 = vld [vmem:[#allocation9 + $0x170] sm:$0xff] }
 0xf8b   :  { %7157 = vmatpush2.bf16.msra.mxu1 %v8929_v6  ;;  %v5477_v6 = vld [vmem:[#allocation9 + $0x150] sm:$0xff] }
 0xf8c   :  { %7158 = vmatprep.subr.bf16.mxu1 %v8922_v19  ;;  %v5605_v19 = vld [vmem:[#allocation9 + $0x550] sm:$0xff]  ;;  %v8740_v60 = vcombine.high %v5477_v6, %v5481_v18  ;;  %v8739_v45 = vcombine.low %v5477_v6, %v5481_v18 }
 0xf8d   :  { %7118 = vmatpush2.bf16.msra.mxu0 %v8793_v10  ;;  %v8868_v10 = vcombine.high %v5605_v19, %v5609_v20  ;;  %v8867_v4 = vcombine.low %v5605_v19, %v5609_v20  ;;  %v5569_v7 = vld [vmem:[#allocation9 + $0x430] sm:$0xff] }
 0xf8e   :  { %7119 = vmatprep.subr.bf16.mxu0 %v8786_v53  ;;  %v5473_v53 = vld [vmem:[#allocation9 + $0x130] sm:$0xff] }
 0xf8f   :  { %7159 = vmatpush2.bf16.msra.mxu1 %v8921_v14  ;;  %v5469_v14 = vld [vmem:[#allocation9 + $0x110] sm:$0xff] }
 0xf90   :  { %7160 = vmatprep.subr.bf16.mxu1 %v8914_v41  ;;  %v5597_v41 = vld [vmem:[#allocation9 + $0x510] sm:$0xff]  ;;  %v8732_v5 = vcombine.high %v5469_v14, %v5473_v53  ;;  %v8731_v25 = vcombine.low %v5469_v14, %v5473_v53 }
 0xf91   :  { %7120 = vmatpush2.bf16.msra.mxu0 %v8785_v32  ;;  %v8860_v32 = vcombine.high %v5597_v41, %v5601_v44  ;;  %v8859_v28 = vcombine.low %v5597_v41, %v5601_v44  ;;  %v5689_v6 = vld [vmem:[#allocation9 + $0x7f0] sm:$0xff] }
 0xf92   :  { %7121 = vmatprep.subr.bf16.mxu0 %v8778_v36  ;;  %v5465_v36 = vld [vmem:[#allocation9 + $0xf0] sm:$0xff] }
 0xf93   :  { %7161 = vmatpush2.bf16.msra.mxu1 %v8913_v33  ;;  %v5461_v33 = vld [vmem:[#allocation9 + $0xd0] sm:$0xff] }
 0xf94   :  { %7162 = vmatprep.subr.bf16.mxu1 %v8906_v37  ;;  %v5589_v37 = vld [vmem:[#allocation9 + $0x4d0] sm:$0xff]  ;;  %v8724_v13 = vcombine.high %v5461_v33, %v5465_v36  ;;  %v8723_v23 = vcombine.low %v5461_v33, %v5465_v36 }
 0xf95   :  { %7122 = vmatpush2.bf16.msra.mxu0 %v8777_v29  ;;  %v8852_v29 = vcombine.high %v5589_v37, %v5593_v24  ;;  %v8851_v8 = vcombine.low %v5589_v37, %v5593_v24  ;;  %v5681_v14 = vld [vmem:[#allocation9 + $0x7b0] sm:$0xff] }
 0xf96   :  { %7123 = vmatprep.subr.bf16.mxu0 %v8770_v17  ;;  %v5457_v17 = vld [vmem:[#allocation9 + $0xb0] sm:$0xff] }
 0xf97   :  { %7163 = vmatpush2.bf16.msra.mxu1 %v8905_v16  ;;  %v5453_v16 = vld [vmem:[#allocation9 + $0x90] sm:$0xff] }
 0xf98   :  { %7164 = vmatprep.subr.bf16.mxu1 %v8898_v12  ;;  %v5581_v12 = vld [vmem:[#allocation9 + $0x490] sm:$0xff]  ;;  %v8716_v39 = vcombine.high %v5453_v16, %v5457_v17  ;;  %v8715_v3 = vcombine.low %v5453_v16, %v5457_v17 }
 0xf99   :  { %7124 = vmatpush2.bf16.msra.mxu0 %v8769_v21  ;;  %v8844_v21 = vcombine.high %v5581_v12, %v5585_v22  ;;  %v8843_v42 = vcombine.low %v5581_v12, %v5585_v22  ;;  %v5673_v33 = vld [vmem:[#allocation9 + $0x770] sm:$0xff] }
 0xf9a   :  { %7125 = vmatprep.subr.bf16.mxu0 %v8762_v1  ;;  %v5449_v1 = vld [vmem:[#allocation9 + $0x70] sm:$0xff] }
 0xf9b   :  { %7165 = vmatpush2.bf16.msra.mxu1 %v8897_v0  ;;  %v5445_v0 = vld [vmem:[#allocation9 + $0x50] sm:$0xff] }
 0xf9c   :  { %7166 = vmatprep.subr.bf16.mxu1 %v8890_v51  ;;  %v5573_v51 = vld [vmem:[#allocation9 + $0x450] sm:$0xff]  ;;  %v8708_v61 = vcombine.high %v5445_v0, %v5449_v1  ;;  %v8707_v34 = vcombine.low %v5445_v0, %v5449_v1 }
 0xf9d   :  { %7126 = vmatpush2.bf16.msra.mxu0 %v8761_v43  ;;  %v8836_v43 = vcombine.high %v5573_v51, %v5577_v54  ;;  %v8835_v35 = vcombine.low %v5573_v51, %v5577_v54  ;;  %v5665_v16 = vld [vmem:[#allocation9 + $0x730] sm:$0xff] }
 0xf9e   :  { %7177 = vmatprep.subr.bf16.mxu0 %v8756_v31  ;;  %v5441_v31 = vld [vmem:[#allocation9 + $0x30] sm:$0xff] }
 0xf9f   :  { %7167 = vmatpush2.bf16.msra.mxu1 %v8889_v46  ;;  %v5437_v46 = vld [vmem:[#allocation9 + $0x10] sm:$0xff] }
 0xfa0   :  { %7218 = vmatprep.subr.bf16.mxu1 %v8884_v47  ;;  %7128 = vmatmul.mubr.bf16.vlgmr.msra.gmra.mxu0 %v11309_v9  ;;  %v5565_v47 = vld [vmem:[#allocation9 + $0x410] sm:$0xff]  ;;  %v8700_v38 = vcombine.high %v5437_v46, %v5441_v31  ;;  %v8699_v18 = vcombine.low %v5437_v46, %v5441_v31 }
 0xfa1   :  { %7178 = vmatpush1.bf16.msra.mxu0 %v8755_v26  ;;  %7209 = vmatprep.mubr.bf16.mxu0 %v11313_v55  ;;  %v8828_v26 = vcombine.high %v5565_v47, %v5569_v7  ;;  %v8827_v19 = vcombine.low %v5565_v47, %v5569_v7  ;;  %v5657_v0 = vld [vmem:[#allocation9 + $0x6f0] sm:$0xff] }
 0xfa2   :  { %7169 = vmatmul.mubr.bf16.vlgmr.msra.gmra.mxu1 %v11311_v15  ;;  %7179 = vmatprep.subr.bf16.mxu0 %v8748_v30  ;;  %v5561_v30 = vld [vmem:[#allocation9 + $0x3f0] sm:$0xff] }
 0xfa3   :  { %7219 = vmatpush1.bf16.msra.mxu1 %v8883_v27  ;;  %7250 = vmatprep.mubr.bf16.mxu1 %v11315_v63  ;;  %v5557_v27 = vld [vmem:[#allocation9 + $0x3d0] sm:$0xff] }
 0xfa4   :  { %7220 = vmatprep.subr.bf16.mxu1 %v8876_v2  ;;  %v5685_v2 = vld [vmem:[#allocation9 + $0x7d0] sm:$0xff]  ;;  %v8820_v20 = vcombine.high %v5557_v27, %v5561_v30  ;;  %v8819_v53 = vcombine.low %v5557_v27, %v5561_v30 }
 0xfa5   :  { %7180 = vmatpush1.bf16.msra.mxu0 %v8747_v56  ;;  %v8948_v56 = vcombine.high %v5685_v2, %v5689_v6  ;;  %v8947_v41 = vcombine.low %v5685_v2, %v5689_v6  ;;  %v5649_v46 = vld [vmem:[#allocation9 + $0x6b0] sm:$0xff] }
 0xfa6   :  { %7181 = vmatprep.subr.bf16.mxu0 %v8740_v60  ;;  %v5553_v60 = vld [vmem:[#allocation9 + $0x3b0] sm:$0xff] }
 0xfa7   :  { %7221 = vmatpush1.bf16.msra.mxu1 %v8875_v57  ;;  %v5549_v57 = vld [vmem:[#allocation9 + $0x390] sm:$0xff] }
 0xfa8   :  { %7222 = vmatprep.subr.bf16.mxu1 %v8868_v10  ;;  %v5677_v10 = vld [vmem:[#allocation9 + $0x790] sm:$0xff]  ;;  %v8812_v44 = vcombine.high %v5549_v57, %v5553_v60  ;;  %v8811_v36 = vcombine.low %v5549_v57, %v5553_v60 }
 0xfa9   :  { %7182 = vmatpush1.bf16.msra.mxu0 %v8739_v45  ;;  %v8940_v45 = vcombine.high %v5677_v10, %v5681_v14  ;;  %v8939_v37 = vcombine.low %v5677_v10, %v5681_v14  ;;  %v5641_v27 = vld [vmem:[#allocation9 + $0x670] sm:$0xff] }
 0xfaa   :  { %7183 = vmatprep.subr.bf16.mxu0 %v8732_v5  ;;  %v5545_v5 = vld [vmem:[#allocation9 + $0x370] sm:$0xff] }
 0xfab   :  { %7223 = vmatpush1.bf16.msra.mxu1 %v8867_v4  ;;  %v5541_v4 = vld [vmem:[#allocation9 + $0x350] sm:$0xff] }
 0xfac   :  { %7224 = vmatprep.subr.bf16.mxu1 %v8860_v32  ;;  %v5669_v32 = vld [vmem:[#allocation9 + $0x750] sm:$0xff]  ;;  %v8804_v24 = vcombine.high %v5541_v4, %v5545_v5  ;;  %v8803_v17 = vcombine.low %v5541_v4, %v5545_v5  ;;  %v5626_v4 = vld [vmem:[#allocation9 + $0x5f8] sm:$0xff] }
 0xfad   :  { %7184 = vmatpush1.bf16.msra.mxu0 %v8731_v25  ;;  %v8932_v25 = vcombine.high %v5669_v32, %v5673_v33  ;;  %v8931_v12 = vcombine.low %v5669_v32, %v5673_v33  ;;  %v5633_v57 = vld [vmem:[#allocation9 + $0x630] sm:$0xff] }
 0xfae   :  { %7185 = vmatprep.subr.bf16.mxu0 %v8724_v13  ;;  %v5537_v13 = vld [vmem:[#allocation9 + $0x330] sm:$0xff] }
 0xfaf   :  { %7225 = vmatpush1.bf16.msra.mxu1 %v8859_v28  ;;  %v5533_v28 = vld [vmem:[#allocation9 + $0x310] sm:$0xff] }
 0xfb0   :  { %7226 = vmatprep.subr.bf16.mxu1 %v8852_v29  ;;  %v5661_v29 = vld [vmem:[#allocation9 + $0x710] sm:$0xff]  ;;  %v8796_v22 = vcombine.high %v5533_v28, %v5537_v13  ;;  %v8795_v1 = vcombine.low %v5533_v28, %v5537_v13  ;;  %v5618_v28 = vld [vmem:[#allocation9 + $0x5b8] sm:$0xff] }
 0xfb1   :  { %7186 = vmatpush1.bf16.msra.mxu0 %v8723_v23  ;;  %v8924_v23 = vcombine.high %v5661_v29, %v5665_v16  ;;  %v8923_v51 = vcombine.low %v5661_v29, %v5665_v16 }
 0xfb2   :  { %7187 = vmatprep.subr.bf16.mxu0 %v8716_v39  ;;  %v5529_v39 = vld [vmem:[#allocation9 + $0x2f0] sm:$0xff] }
 0xfb3   :  { %7227 = vmatpush1.bf16.msra.mxu1 %v8851_v8  ;;  %v5525_v8 = vld [vmem:[#allocation9 + $0x2d0] sm:$0xff] }
 0xfb4   :  { %7228 = vmatprep.subr.bf16.mxu1 %v8844_v21  ;;  %v5653_v21 = vld [vmem:[#allocation9 + $0x6d0] sm:$0xff]  ;;  %v8788_v54 = vcombine.high %v5525_v8, %v5529_v39  ;;  %v8787_v31 = vcombine.low %v5525_v8, %v5529_v39  ;;  %v5610_v8 = vld [vmem:[#allocation9 + $0x578] sm:$0xff] }
 0xfb5   :  { %7188 = vmatpush1.bf16.msra.mxu0 %v8715_v3  ;;  %v8916_v3 = vcombine.high %v5653_v21, %v5657_v0  ;;  %v8915_v47 = vcombine.low %v5653_v21, %v5657_v0 }
 0xfb6   :  { %7189 = vmatprep.subr.bf16.mxu0 %v8708_v61  ;;  %v5521_v61 = vld [vmem:[#allocation9 + $0x2b0] sm:$0xff] }
 0xfb7   :  { %7229 = vmatpush1.bf16.msra.mxu1 %v8843_v42  ;;  %v5517_v42 = vld [vmem:[#allocation9 + $0x290] sm:$0xff] }
 0xfb8   :  { %7230 = vmatprep.subr.bf16.mxu1 %v8836_v43  ;;  %v5645_v43 = vld [vmem:[#allocation9 + $0x690] sm:$0xff]  ;;  %v8780_v7 = vcombine.high %v5517_v42, %v5521_v61  ;;  %v8779_v30 = vcombine.low %v5517_v42, %v5521_v61  ;;  %v5602_v42 = vld [vmem:[#allocation9 + $0x538] sm:$0xff] }
 0xfb9   :  { %7190 = vmatpush1.bf16.msra.mxu0 %v8707_v34  ;;  %v8908_v34 = vcombine.high %v5645_v43, %v5649_v46  ;;  %v8907_v2 = vcombine.low %v5645_v43, %v5649_v46 }
 0xfba   :  { %7191 = vmatprep.subr.bf16.mxu0 %v8700_v38  ;;  %v5513_v38 = vld [vmem:[#allocation9 + $0x270] sm:$0xff] }
 0xfbb   :  { %7231 = vmatpush1.bf16.msra.mxu1 %v8835_v35  ;;  %v5509_v35 = vld [vmem:[#allocation9 + $0x250] sm:$0xff] }
 0xfbc   :  { %7232 = vmatprep.subr.bf16.mxu1 %v8828_v26  ;;  %v5637_v26 = vld [vmem:[#allocation9 + $0x650] sm:$0xff]  ;;  %v8772_v6 = vcombine.high %v5509_v35, %v5513_v38  ;;  %v8771_v60 = vcombine.low %v5509_v35, %v5513_v38  ;;  %v5594_v35 = vld [vmem:[#allocation9 + $0x4f8] sm:$0xff] }
 0xfbd   :  { %7192 = vmatpush1.bf16.msra.mxu0 %v8699_v18  ;;  %v8900_v18 = vcombine.high %v5637_v26, %v5641_v27  ;;  %v8899_v10 = vcombine.low %v5637_v26, %v5641_v27  ;;  %v5454_v27 = vld [vmem:[#allocation9 + $0x98] sm:$0xff] }
 0xfbe   :  { %7193 = vmatprep.subr.bf16.mxu0 %v8820_v20  ;;  %v5505_v20 = vld [vmem:[#allocation9 + $0x230] sm:$0xff] }
 0xfbf   :  { %7233 = vmatpush1.bf16.msra.mxu1 %v8827_v19  ;;  %v5501_v19 = vld [vmem:[#allocation9 + $0x210] sm:$0xff] }
 0xfc0   :  { %7234 = vmatprep.subr.bf16.mxu1 %v8948_v56  ;;  %v5629_v56 = vld [vmem:[#allocation9 + $0x610] sm:$0xff]  ;;  %v8764_v14 = vcombine.high %v5501_v19, %v5505_v20  ;;  %v8763_v5 = vcombine.low %v5501_v19, %v5505_v20 }
 0xfc1   :  { %7194 = vmatpush2.bf16.msra.mxu0 %v8819_v53  ;;  %v8892_v53 = vcombine.high %v5629_v56, %v5633_v57  ;;  %v8891_v32 = vcombine.low %v5629_v56, %v5633_v57  ;;  %v5446_v57 = vld [vmem:[#allocation9 + $0x58] sm:$0xff] }
 0xfc2   :  { %7195 = vmatprep.subr.bf16.mxu0 %v8812_v44  ;;  %v5498_v44 = vld [vmem:[#allocation9 + $0x1f8] sm:$0xff] }
 0xfc3   :  { %7235 = vmatpush2.bf16.msra.mxu1 %v8947_v41  ;;  %v5494_v41 = vld [vmem:[#allocation9 + $0x1d8] sm:$0xff] }
 0xfc4   :  { %7236 = vmatprep.subr.bf16.mxu1 %v8940_v45  ;;  %v5622_v45 = vld [vmem:[#allocation9 + $0x5d8] sm:$0xff]  ;;  %v8758_v33 = vcombine.high %v5494_v41, %v5498_v44  ;;  %v8757_v13 = vcombine.low %v5494_v41, %v5498_v44 }
 0xfc5   :  { %7196 = vmatpush2.bf16.msra.mxu0 %v8811_v36  ;;  %v8886_v36 = vcombine.high %v5622_v45, %v5626_v4  ;;  %v8885_v29 = vcombine.low %v5622_v45, %v5626_v4  ;;  %v5438_v4 = vld [vmem:[#allocation9 + $0x18] sm:$0xff] }
 0xfc6   :  { %7197 = vmatprep.subr.bf16.mxu0 %v8804_v24  ;;  %v5490_v24 = vld [vmem:[#allocation9 + $0x1b8] sm:$0xff] }
 0xfc7   :  { %7237 = vmatpush2.bf16.msra.mxu1 %v8939_v37  ;;  %v5486_v37 = vld [vmem:[#allocation9 + $0x198] sm:$0xff] }
 0xfc8   :  { %7238 = vmatprep.subr.bf16.mxu1 %v8932_v25  ;;  %v5614_v25 = vld [vmem:[#allocation9 + $0x598] sm:$0xff]  ;;  %v8750_v16 = vcombine.high %v5486_v37, %v5490_v24  ;;  %v8749_v39 = vcombine.low %v5486_v37, %v5490_v24 }
 0xfc9   :  { %7198 = vmatpush2.bf16.msra.mxu0 %v8803_v17  ;;  %v8878_v17 = vcombine.high %v5614_v25, %v5618_v28  ;;  %v8877_v21 = vcombine.low %v5614_v25, %v5618_v28  ;;  %v5558_v28 = vld [vmem:[#allocation9 + $0x3d8] sm:$0xff] }
 0xfca   :  { %7199 = vmatprep.subr.bf16.mxu0 %v8796_v22  ;;  %v5482_v22 = vld [vmem:[#allocation9 + $0x178] sm:$0xff] }
 0xfcb   :  { %7239 = vmatpush2.bf16.msra.mxu1 %v8931_v12  ;;  %v5478_v12 = vld [vmem:[#allocation9 + $0x158] sm:$0xff] }
 0xfcc   :  { %7240 = vmatprep.subr.bf16.mxu1 %v8924_v23  ;;  %v5606_v23 = vld [vmem:[#allocation9 + $0x558] sm:$0xff]  ;;  %v8742_v0 = vcombine.high %v5478_v12, %v5482_v22  ;;  %v8741_v61 = vcombine.low %v5478_v12, %v5482_v22 }
 0xfcd   :  { %7200 = vmatpush2.bf16.msra.mxu0 %v8795_v1  ;;  %v8870_v1 = vcombine.high %v5606_v23, %v5610_v8  ;;  %v8869_v43 = vcombine.low %v5606_v23, %v5610_v8  ;;  %v5550_v8 = vld [vmem:[#allocation9 + $0x398] sm:$0xff] }
 0xfce   :  { %7201 = vmatprep.subr.bf16.mxu0 %v8788_v54  ;;  %v5474_v54 = vld [vmem:[#allocation9 + $0x138] sm:$0xff] }
 0xfcf   :  { %7241 = vmatpush2.bf16.msra.mxu1 %v8923_v51  ;;  %v5470_v51 = vld [vmem:[#allocation9 + $0x118] sm:$0xff] }
 0xfd0   :  { %7242 = vmatprep.subr.bf16.mxu1 %v8916_v3  ;;  %v5598_v3 = vld [vmem:[#allocation9 + $0x518] sm:$0xff]  ;;  %v8734_v46 = vcombine.high %v5470_v51, %v5474_v54  ;;  %v8733_v38 = vcombine.low %v5470_v51, %v5474_v54 }
 0xfd1   :  { %7202 = vmatpush2.bf16.msra.mxu0 %v8787_v31  ;;  %v8862_v31 = vcombine.high %v5598_v3, %v5602_v42 }
 0xfd2   :  { %7203 = vmatprep.subr.bf16.mxu0 %v8780_v7  ;;  %v5466_v7 = vld [vmem:[#allocation9 + $0xf8] sm:$0xff] }
 0xfd3   :  { %7243 = vmatpush2.bf16.msra.mxu1 %v8915_v47  ;;  %v5462_v47 = vld [vmem:[#allocation9 + $0xd8] sm:$0xff] }
 0xfd4   :  { %7244 = vmatprep.subr.bf16.mxu1 %v8908_v34  ;;  %v5590_v34 = vld [vmem:[#allocation9 + $0x4d8] sm:$0xff]  ;;  %v8726_v26 = vcombine.high %v5462_v47, %v5466_v7 }
 0xfd5   :  { %7204 = vmatpush2.bf16.msra.mxu0 %v8779_v30  ;;  %v5458_v30 = vld [vmem:[#allocation9 + $0xb8] sm:$0xff]  ;;  %v8853_v19 = vcombine.low %v5590_v34, %v5594_v35 }
 0xfd6   :  { %7205 = vmatprep.subr.bf16.mxu0 %v8772_v6  ;;  %v5586_v6 = vld [vmem:[#allocation9 + $0x4b8] sm:$0xff]  ;;  %v8718_v20 = vcombine.high %v5454_v27, %v5458_v30 }
 0xfd7   :  { %7245 = vmatpush2.bf16.msra.mxu1 %v8907_v2  ;;  %v5582_v2 = vld [vmem:[#allocation9 + $0x498] sm:$0xff] }
 0xfd8   :  { %7246 = vmatprep.subr.bf16.mxu1 %v8900_v18  ;;  %v8725_v18 = vcombine.low %v5462_v47, %v5466_v7  ;;  %v8846_v56 = vcombine.high %v5582_v2, %v5586_v6  ;;  %v8845_v41 = vcombine.low %v5582_v2, %v5586_v6  ;;  %v5526_v6 = vld [vmem:[#allocation9 + $0x2d8] sm:$0xff] }
 0xfd9   :  { %7206 = vmatpush2.bf16.msra.mxu0 %v8771_v60  ;;  %v5450_v60 = vld [vmem:[#allocation9 + $0x78] sm:$0xff] }
 0xfda   :  { %7207 = vmatprep.subr.bf16.mxu0 %v8764_v14  ;;  %v5578_v14 = vld [vmem:[#allocation9 + $0x478] sm:$0xff]  ;;  %v8710_v44 = vcombine.high %v5446_v57, %v5450_v60 }
 0xfdb   :  { %7247 = vmatpush2.bf16.msra.mxu1 %v8899_v10  ;;  %v5574_v10 = vld [vmem:[#allocation9 + $0x458] sm:$0xff] }
 0xfdc   :  { %7248 = vmatprep.subr.bf16.mxu1 %v8892_v53  ;;  %v8717_v53 = vcombine.low %v5454_v27, %v5458_v30  ;;  %v8838_v45 = vcombine.high %v5574_v10, %v5578_v14  ;;  %v8837_v37 = vcombine.low %v5574_v10, %v5578_v14  ;;  %v5518_v14 = vld [vmem:[#allocation9 + $0x298] sm:$0xff] }
 0xfdd   :  { %7208 = vmatpush2.bf16.msra.mxu0 %v8763_v5  ;;  %v5442_v5 = vld [vmem:[#allocation9 + $0x38] sm:$0xff] }
 0xfde   :  { %7259 = vmatprep.subr.bf16.mxu0 %v8758_v33  ;;  %v5570_v33 = vld [vmem:[#allocation9 + $0x438] sm:$0xff]  ;;  %v8702_v24 = vcombine.high %v5438_v4, %v5442_v5 }
 0xfdf   :  { %7249 = vmatpush2.bf16.msra.mxu1 %v8891_v32  ;;  %v5566_v32 = vld [vmem:[#allocation9 + $0x418] sm:$0xff] }
 0xfe0   :  { %7300 = vmatprep.subr.bf16.mxu1 %v8886_v36  ;;  %7210 = vmatmul.mubr.bf16.vlgmr.msra.gmra.mxu0 %v11309_v9  ;;  %v8709_v36 = vcombine.low %v5446_v57, %v5450_v60  ;;  %v8830_v25 = vcombine.high %v5566_v32, %v5570_v33  ;;  %v8829_v12 = vcombine.low %v5566_v32, %v5570_v33  ;;  %v5510_v33 = vld [vmem:[#allocation9 + $0x258] sm:$0xff] }
 0xfe1   :  { %7260 = vmatpush1.bf16.msra.mxu0 %v8757_v13  ;;  %7291 = vmatprep.mubr.bf16.mxu0 %v11313_v55  ;;  %v8861_v55 = vcombine.low %v5598_v3, %v5602_v42  ;;  %v5562_v13 = vld [vmem:[#allocation9 + $0x3f8] sm:$0xff] }
 0xfe2   :  { %7251 = vmatmul.mubr.bf16.vlgmr.msra.gmra.mxu1 %v11311_v15  ;;  %7261 = vmatprep.subr.bf16.mxu0 %v8750_v16  ;;  %v5690_v16 = vld [vmem:[#allocation9 + $0x7f8] sm:$0xff]  ;;  %v8822_v22 = vcombine.high %v5558_v28, %v5562_v13 }
 0xfe3   :  { %7301 = vmatpush1.bf16.msra.mxu1 %v8885_v29  ;;  %7332 = vmatprep.mubr.bf16.mxu1 %v11315_v63  ;;  %v8854_v63 = vcombine.high %v5590_v34, %v5594_v35  ;;  %v5686_v29 = vld [vmem:[#allocation9 + $0x7d8] sm:$0xff] }
 0xfe4   :  { %7302 = vmatprep.subr.bf16.mxu1 %v8878_v17  ;;  %v8701_v17 = vcombine.low %v5438_v4, %v5442_v5  ;;  %v8950_v23 = vcombine.high %v5686_v29, %v5690_v16  ;;  %v8949_v51 = vcombine.low %v5686_v29, %v5690_v16  ;;  %v5542_v42 = vld [vmem:[#allocation9 + $0x358] sm:$0xff] }
 0xfe5   :  { %7262 = vmatpush1.bf16.msra.mxu0 %v8749_v39  ;;  %v5554_v39 = vld [vmem:[#allocation9 + $0x3b8] sm:$0xff] }
 0xfe6   :  { %7263 = vmatprep.subr.bf16.mxu0 %v8742_v0  ;;  %v5682_v0 = vld [vmem:[#allocation9 + $0x7b8] sm:$0xff]  ;;  %v8814_v54 = vcombine.high %v5550_v8, %v5554_v39 }
 0xfe7   :  { %7303 = vmatpush1.bf16.msra.mxu1 %v8877_v21  ;;  %v5678_v21 = vld [vmem:[#allocation9 + $0x798] sm:$0xff] }
 0xfe8   :  { %7304 = vmatprep.subr.bf16.mxu1 %v8870_v1  ;;  %v8821_v1 = vcombine.low %v5558_v28, %v5562_v13  ;;  %v8942_v3 = vcombine.high %v5678_v21, %v5682_v0  ;;  %v8941_v47 = vcombine.low %v5678_v21, %v5682_v0  ;;  %v5534_v35 = vld [vmem:[#allocation9 + $0x318] sm:$0xff] }
 0xfe9   :  { %7264 = vmatpush1.bf16.msra.mxu0 %v8741_v61  ;;  %v5546_v61 = vld [vmem:[#allocation9 + $0x378] sm:$0xff] }
 0xfea   :  { %7265 = vmatprep.subr.bf16.mxu0 %v8734_v46  ;;  %v5674_v46 = vld [vmem:[#allocation9 + $0x778] sm:$0xff]  ;;  %v8806_v7 = vcombine.high %v5542_v42, %v5546_v61 }
 0xfeb   :  { %7305 = vmatpush1.bf16.msra.mxu1 %v8869_v43  ;;  %v5670_v43 = vld [vmem:[#allocation9 + $0x758] sm:$0xff] }
 0xfec   :  { %7306 = vmatprep.subr.bf16.mxu1 %v8862_v31  ;;  %v8813_v31 = vcombine.low %v5550_v8, %v5554_v39  ;;  %v8934_v34 = vcombine.high %v5670_v43, %v5674_v46  ;;  %v8933_v27 = vcombine.low %v5670_v43, %v5674_v46  ;;  %v5502_v16 = vld [vmem:[#allocation9 + $0x218] sm:$0xff] }
 0xfed   :  { %7266 = vmatpush1.bf16.msra.mxu0 %v8733_v38  ;;  %v5538_v38 = vld [vmem:[#allocation9 + $0x338] sm:$0xff] }
 0xfee   :  { %7267 = vmatprep.subr.bf16.mxu0 %v8726_v26  ;;  %v5666_v26 = vld [vmem:[#allocation9 + $0x738] sm:$0xff]  ;;  %v8798_v30 = vcombine.high %v5534_v35, %v5538_v38 }
 0xfef   :  { %7307 = vmatpush1.bf16.msra.mxu1 %v8861_v55  ;;  %v5662_v55 = vld [vmem:[#allocation9 + $0x718] sm:$0xff] }
 0xff0   :  { %7308 = vmatprep.subr.bf16.mxu1 %v8854_v63  ;;  %v8805_v63 = vcombine.low %v5542_v42, %v5546_v61  ;;  %v8926_v2 = vcombine.high %v5662_v55, %v5666_v26  ;;  %v8925_v57 = vcombine.low %v5662_v55, %v5666_v26 }
 0xff1   :  { %7268 = vmatpush1.bf16.msra.mxu0 %v8725_v18  ;;  %v5530_v18 = vld [vmem:[#allocation9 + $0x2f8] sm:$0xff] }
 0xff2   :  { %7269 = vmatprep.subr.bf16.mxu0 %v8718_v20  ;;  %v5658_v20 = vld [vmem:[#allocation9 + $0x6f8] sm:$0xff]  ;;  %v8790_v60 = vcombine.high %v5526_v6, %v5530_v18 }
 0xff3   :  { %7309 = vmatpush1.bf16.msra.mxu1 %v8853_v19  ;;  %v5654_v19 = vld [vmem:[#allocation9 + $0x6d8] sm:$0xff] }
 0xff4   :  { %7310 = vmatprep.subr.bf16.mxu1 %v8846_v56  ;;  %v8797_v56 = vcombine.low %v5534_v35, %v5538_v38  ;;  %v8918_v10 = vcombine.high %v5654_v19, %v5658_v20  ;;  %v8917_v4 = vcombine.low %v5654_v19, %v5658_v20 }
 0xff5   :  { %7270 = vmatpush1.bf16.msra.mxu0 %v8717_v53  ;;  %v5522_v53 = vld [vmem:[#allocation9 + $0x2b8] sm:$0xff] }
 0xff6   :  { %7271 = vmatprep.subr.bf16.mxu0 %v8710_v44  ;;  %v5650_v44 = vld [vmem:[#allocation9 + $0x6b8] sm:$0xff]  ;;  %v8782_v5 = vcombine.high %v5518_v14, %v5522_v53 }
 0xff7   :  { %7311 = vmatpush1.bf16.msra.mxu1 %v8845_v41  ;;  %v5646_v41 = vld [vmem:[#allocation9 + $0x698] sm:$0xff] }
 0xff8   :  { %7312 = vmatprep.subr.bf16.mxu1 %v8838_v45  ;;  %v8789_v45 = vcombine.low %v5526_v6, %v5530_v18  ;;  %v8910_v32 = vcombine.high %v5646_v41, %v5650_v44  ;;  %v8909_v28 = vcombine.low %v5646_v41, %v5650_v44 }
 0xff9   :  { %7272 = vmatpush1.bf16.msra.mxu0 %v8709_v36  ;;  %v5514_v36 = vld [vmem:[#allocation9 + $0x278] sm:$0xff] }
 0xffa   :  { %7273 = vmatprep.subr.bf16.mxu0 %v8702_v24  ;;  %v5642_v24 = vld [vmem:[#allocation9 + $0x678] sm:$0xff]  ;;  %v8774_v13 = vcombine.high %v5510_v33, %v5514_v36 }
 0xffb   :  { %7313 = vmatpush1.bf16.msra.mxu1 %v8837_v37  ;;  %v5638_v37 = vld [vmem:[#allocation9 + $0x658] sm:$0xff] }
 0xffc   :  { %7314 = vmatprep.subr.bf16.mxu1 %v8830_v25  ;;  %v8781_v25 = vcombine.low %v5518_v14, %v5522_v53  ;;  %v8902_v29 = vcombine.high %v5638_v37, %v5642_v24  ;;  %v8901_v8 = vcombine.low %v5638_v37, %v5642_v24 }
 0xffd   :  { %7274 = vmatpush1.bf16.msra.mxu0 %v8701_v17  ;;  %v5506_v17 = vld [vmem:[#allocation9 + $0x238] sm:$0xff] }
 0xffe   :  { %7275 = vmatprep.subr.bf16.mxu0 %v8822_v22  ;;  %v5634_v22 = vld [vmem:[#allocation9 + $0x638] sm:$0xff]  ;;  %v8766_v39 = vcombine.high %v5502_v16, %v5506_v17  ;;  %v8765_v0 = vcombine.low %v5502_v16, %v5506_v17 }
 0xfff   :  { %7315 = vmatpush1.bf16.msra.mxu1 %v8829_v12  ;;  %v5630_v12 = vld [vmem:[#allocation9 + $0x618] sm:$0xff] }
0x1000   :  { %7316 = vmatprep.subr.bf16.mxu1 %v8950_v23  ;;  %v8773_v23 = vcombine.low %v5510_v33, %v5514_v36  ;;  %v8894_v21 = vcombine.high %v5630_v12, %v5634_v22 }
0x1001   :  { %7276 = vmatpush2.bf16.msra.mxu0 %v8821_v1  ;;  %v8893_v1 = vcombine.low %v5630_v12, %v5634_v22 }
0x1002   :  { %7277 = vmatprep.subr.bf16.mxu0 %v8814_v54 }
0x1003   :  { %7317 = vmatpush2.bf16.msra.mxu1 %v8949_v51  ;;  %v5691_v51 = vld [vmem:[#allocation12 + $0x1f] sm:$0xff] }
0x1004   :  { %7318 = vmatprep.subr.bf16.mxu1 %v8942_v3  ;;  %v5696_v54 = vrot.slane %v5691_v51, %v11127_v49  ;;  %v5700_v3 = vrot.slane %v5691_v51, %v11133_v11 }
0x1005   :  { %7278 = vmatpush2.bf16.msra.mxu0 %v8813_v31 }
0x1006   :  { %7279 = vmatprep.subr.bf16.mxu0 %v8806_v7 }
0x1007   :  { %7319 = vmatpush2.bf16.msra.mxu1 %v8941_v47 }
0x1008   :  { %7320 = vmatprep.subr.bf16.mxu1 %v8934_v34 }
0x1009   :  { %7280 = vmatpush2.bf16.msra.mxu0 %v8805_v63 }
0x100a   :  { %7281 = vmatprep.subr.bf16.mxu0 %v8798_v30  ;;  %v5708_v30 = vrot.slane %v5691_v51, %v11136_v40  ;;  %v5716_v40 = vrot.slane %v5691_v51, %v550_v62  ;;  %v5720_v62 = vrot.slane %v5691_v51, %v554_v59 }
0x100b   :  { %7321 = vmatpush2.bf16.msra.mxu1 %v8933_v27 }
0x100c   :  { %7322 = vmatprep.subr.bf16.mxu1 %v8926_v2 }
0x100d   :  { %7282 = vmatpush2.bf16.msra.mxu0 %v8797_v56 }
0x100e   :  { %7283 = vmatprep.subr.bf16.mxu0 %v8790_v60 }
0x100f   :  { %7323 = vmatpush2.bf16.msra.mxu1 %v8925_v57 }
0x1010   :  { %7324 = vmatprep.subr.bf16.mxu1 %v8918_v10 }
0x1011   :  { %7284 = vmatpush2.bf16.msra.mxu0 %v8789_v45 }
0x1012   :  { %7285 = vmatprep.subr.bf16.mxu0 %v8782_v5 }
0x1013   :  { %7325 = vmatpush2.bf16.msra.mxu1 %v8917_v4 }
0x1014   :  { %7326 = vmatprep.subr.bf16.mxu1 %v8910_v32 }
0x1015   :  { %7286 = vmatpush2.bf16.msra.mxu0 %v8781_v25 }
0x1016   :  { %7287 = vmatprep.subr.bf16.mxu0 %v8774_v13 }
0x1017   :  { %7327 = vmatpush2.bf16.msra.mxu1 %v8909_v28 }
0x1018   :  { %7328 = vmatprep.subr.bf16.mxu1 %v8902_v29 }
0x1019   :  { %7288 = vmatpush2.bf16.msra.mxu0 %v8773_v23 }
0x101a   :  { %7289 = vmatprep.subr.bf16.mxu0 %v8766_v39 }
0x101b   :  { %7329 = vmatpush2.bf16.msra.mxu1 %v8901_v8  ;;  %v5724_v8 = vrot.slane %v5691_v51, %v558_v50 }
0x101c   :  { %7330 = vmatprep.subr.bf16.mxu1 %v8894_v21 }
0x101d   :  { %7290 = vmatpush2.bf16.msra.mxu0 %v8765_v0 }
0x101f   :  { %7331 = vmatpush2.bf16.msra.mxu1 %v8893_v1 }
0x1020   :  { %v7047_v42 = vpop.f32.mrf.mxu0  ;;  %7292 = vmatmul.mubr.bf16.vlgmr.msra.gmra.mxu0 %v11309_v9  ;;  %v5704_v9 = vrot.slane %v5691_v51, %v11130_v52  ;;  %v5712_v52 = vrot.slane %v5691_v51, %v546_v58 }
0x1021   :  { %v7048_v61 = vadd.f32 %v7047_v42, %v5696_v54 }
0x1022   :  { %v7088_v43 = vpop.f32.mrf.mxu1  ;;  %7333 = vmatmul.mubr.bf16.vlgmr.msra.gmra.mxu1 %v11311_v15  ;;  %v7049_v46 = vpop.f32.mrf.mxu0 }
0x1023   :  { %v7089_v31 = vadd.f32 %v7088_v43, %v7048_v61  ;;  %v7050_v47 = vadd.f32 %v7049_v46, %v5700_v3 }
0x1024   :  { %v7090_v7 = vpop.f32.mrf.mxu1  ;;  %v7051_v34 = vpop.f32.mrf.mxu0 }
0x1025   :  { %v7341_v35 = vmax.f32 %v7089_v31, 0.0  ;;  %v7091_v38 = vadd.f32 %v7090_v7, %v7050_v47 }
0x1026   :  { %v7092_v55 = vpop.f32.mrf.mxu1  ;;  %v7052_v26 = vpop.f32.mrf.mxu0 }
0x1027   :  { %v11335_v49 = vpack.c.bf16 %v7341_v35, %v7341_v35  ;;  %v7342_v63 = vmax.f32 %v7091_v38, 0.0 }
0x1028   :  { %v7093_v11 = vpop.f32.mrf.mxu1 }
0x1029   :  { %v7350_v27 = vpack.c.bf16 %v7342_v63, %v7342_v63 }
0x1060   :  { %v7129_v2 = vpop.f32.mrf.mxu0 }
0x1061   :  { %v7130_v15 = vadd.f32 %v7129_v2, %v5704_v9 }
0x1062   :  { %v7170_v6 = vpop.f32.mrf.mxu1  ;;  %v7131_v18 = vpop.f32.mrf.mxu0 }
0x1063   :  { %v7171_v19 = vadd.f32 %v7170_v6, %v7130_v15  ;;  %v7132_v20 = vadd.f32 %v7131_v18, %v5708_v30 }
0x1064   :  { %v7172_v56 = vpop.f32.mrf.mxu1  ;;  %v7133_v57 = vpop.f32.mrf.mxu0 }
0x1065   :  { %v7343_v60 = vmax.f32 %v7171_v19, 0.0  ;;  %v7173_v10 = vadd.f32 %v7172_v56, %v7132_v20 }
0x1066   :  { %v7174_v14 = vpop.f32.mrf.mxu1  ;;  %v7134_v53 = vpop.f32.mrf.mxu0 }
0x1067   :  { %v11339_v41 = vpack.c.bf16 %v7343_v60, %v7343_v60  ;;  %v7344_v44 = vmax.f32 %v7173_v10, 0.0 }
0x1068   :  { %v7175_v45 = vpop.f32.mrf.mxu1 }
0x1069   :  { %v7352_v4 = vpack.c.bf16 %v7344_v44, %v7344_v44 }
0x10a0   :  { %v7211_v5 = vpop.f32.mrf.mxu0 }
0x10a1   :  { %v7212_v32 = vadd.f32 %v7211_v5, %v5712_v52 }
0x10a2   :  { %v7252_v33 = vpop.f32.mrf.mxu1  ;;  %v7213_v36 = vpop.f32.mrf.mxu0 }
0x10a3   :  { %v7253_v37 = vadd.f32 %v7252_v33, %v7212_v32  ;;  %v7214_v24 = vadd.f32 %v7213_v36, %v5716_v40 }
0x10a4   :  { %v7254_v25 = vpop.f32.mrf.mxu1  ;;  %v7215_v28 = vpop.f32.mrf.mxu0 }
0x10a5   :  { %v7345_v13 = vmax.f32 %v7253_v37, 0.0  ;;  %v7255_v29 = vadd.f32 %v7254_v25, %v7214_v24 }
0x10a6   :  { %v7256_v16 = vpop.f32.mrf.mxu1  ;;  %v7216_v17 = vpop.f32.mrf.mxu0 }
0x10a7   :  { %v11345_v12 = vpack.c.bf16 %v7345_v13, %v7345_v13  ;;  %v7346_v22 = vmax.f32 %v7255_v29, 0.0 }
0x10a8   :  { %v7257_v23 = vpop.f32.mrf.mxu1 }
0x10a9   :  { %v11347_v58 = vpack.c.bf16 %v7346_v22, %v7346_v22 }
0x10e0   :  { %v7293_v39 = vpop.f32.mrf.mxu0 }
0x10e1   :  { %v7294_v21 = vadd.f32 %v7293_v39, %v5720_v62 }
0x10e2   :  { %v7334_v0 = vpop.f32.mrf.mxu1  ;;  %v7295_v1 = vpop.f32.mrf.mxu0 }
0x10e3   :  { %v7335_v54 = vadd.f32 %v7334_v0, %v7294_v21  ;;  %v7296_v3 = vadd.f32 %v7295_v1, %v5724_v8 }
0x10e4   :  { %v7336_v42 = vpop.f32.mrf.mxu1  ;;  %v7297_v61 = vpop.f32.mrf.mxu0 }
0x10e5   :  { %v7347_v43 = vmax.f32 %v7335_v54, 0.0  ;;  %v7337_v46 = vadd.f32 %v7336_v42, %v7296_v3 }
0x10e6   :  { %v7338_v31 = vpop.f32.mrf.mxu1  ;;  %v7298_v47 = vpop.f32.mrf.mxu0 }
0x10e7   :  { %v11353_v7 = vpack.c.bf16 %v7347_v43, %v7347_v43  ;;  %v7348_v34 = vmax.f32 %v7337_v46, 0.0 }
0x10e8   :  { %v7339_v35 = vpop.f32.mrf.mxu1 }
0x10e9   :  { %v11355_v59 = vpack.c.bf16 %v7348_v34, %v7348_v34 }
0x10ea   :  { %10374 = dma.done.wait [#allocation11 + $0x8], 8192 }
0x10eb   :  { %10375 = vsyncadd [#allocation11 + $0x8], 4294959104  ;;  %7911 = vmatprep.mubr.bf16.mxu0 %v7350_v27  ;;  %7951 = vmatprep.mubr.bf16.mxu1 %v7352_v4  ;;  %v10132_v48 = vld [vmem:[#allocation10 + $0x78] sm:$0xff]   ;;  %v10136_v55 = vld [vmem:[#allocation10 + $0x70] sm:$0xff]   ;;  %vm8039_vm1 = vcmask 15360  }
0x10ec   :  { %v10133_v50 = vld [vmem:[#allocation10 + $0xf8] sm:$0xff]   ;;  %9137 = vmatprep.subr.bf16.mxu0 %v10132_v48  ;;  %v10137_v26 = vld [vmem:[#allocation10 + $0xf0] sm:$0xff]   ;;  %v10140_v9 = vld [vmem:[#allocation10 + $0x68] sm:$0xff]  }
0x10ed   :  { %v10134_v51 = vld [vmem:[#allocation10 + $0x38] sm:$0xff]   ;;  %9159 = vmatprep.subr.bf16.mxu1 %v10133_v50  ;;  %v10138_v63 = vld [vmem:[#allocation10 + $0x30] sm:$0xff]   ;;  %v10141_v30 = vld [vmem:[#allocation10 + $0xe8] sm:$0xff]  }
0x10ee   :  { %v10135_v38 = vld [vmem:[#allocation10 + $0xb8] sm:$0xff]   ;;  %9138 = vmatpush3.bf16.msra.mxu0 %v10134_v51  ;;  %v10139_v11 = vld [vmem:[#allocation10 + $0xb0] sm:$0xff]   ;;  %v10142_v27 = vld [vmem:[#allocation10 + $0x28] sm:$0xff]  }
0x10ef   :  { %9160 = vmatpush3.bf16.msra.mxu1 %v10135_v38  ;;  %9139 = vmatprep.subr.bf16.mxu0 %v10136_v55  ;;  %v10143_v2 = vld [vmem:[#allocation10 + $0xa8] sm:$0xff]   ;;  %v10144_v15 = vld [vmem:[#allocation10 + $0x60] sm:$0xff]   ;;  %v10148_v20 = vld [vmem:[#allocation10 + $0x58] sm:$0xff]  }
0x10f0   :  { %9161 = vmatprep.subr.bf16.mxu1 %v10137_v26  ;;  %v10145_v6 = vld [vmem:[#allocation10 + $0xe0] sm:$0xff]   ;;  %v10149_v56 = vld [vmem:[#allocation10 + $0xd8] sm:$0xff]   ;;  %v10152_v10 = vld [vmem:[#allocation10 + $0x50] sm:$0xff]  }
0x10f1   :  { %v10146_v18 = vld [vmem:[#allocation10 + $0x20] sm:$0xff]   ;;  %v10150_v57 = vld [vmem:[#allocation10 + $0x18] sm:$0xff]   ;;  %v10153_v14 = vld [vmem:[#allocation10 + $0xd0] sm:$0xff]  }
0x10f2   :  { %9140 = vmatpush3.bf16.msra.mxu0 %v10138_v63  ;;  %v10147_v19 = vld [vmem:[#allocation10 + $0xa0] sm:$0xff]   ;;  %v10151_v60 = vld [vmem:[#allocation10 + $0x98] sm:$0xff]   ;;  %v10154_v53 = vld [vmem:[#allocation10 + $0x10] sm:$0xff]  }
0x10f3   :  { %9162 = vmatpush3.bf16.msra.mxu1 %v10139_v11  ;;  %9141 = vmatprep.subr.bf16.mxu0 %v10140_v9  ;;  %v10155_v44 = vld [vmem:[#allocation10 + $0x90] sm:$0xff]   ;;  %v10156_v45 = vld [vmem:[#allocation10 + $0x48] sm:$0xff]   ;;  %v10160_v5 = vld [vmem:[#allocation10 + $0x40] sm:$0xff]  }
0x10f4   :  { %9163 = vmatprep.subr.bf16.mxu1 %v10141_v30  ;;  %v10157_v4 = vld [vmem:[#allocation10 + $0xc8] sm:$0xff]   ;;  %v10161_v32 = vld [vmem:[#allocation10 + $0xc0] sm:$0xff]   ;;  %v10164_v37 = vld [vmem:[#allocation10 + $0x178] sm:$0xff]  }
0x10f5   :  { %v10158_v52 = vld [vmem:[#allocation10 + $0x8] sm:$0xff]   ;;  %v10162_v33 = vld [vmem:[#allocation10] sm:$0xff]   ;;  %v10165_v24 = vld [vmem:[#allocation10 + $0x1f8] sm:$0xff]  }
0x10f6   :  { %9142 = vmatpush3.bf16.msra.mxu0 %v10142_v27  ;;  %v10159_v40 = vld [vmem:[#allocation10 + $0x88] sm:$0xff]   ;;  %v10163_v36 = vld [vmem:[#allocation10 + $0x80] sm:$0xff]   ;;  %v10166_v25 = vld [vmem:[#allocation10 + $0x138] sm:$0xff]  }
0x10f7   :  { %9164 = vmatpush3.bf16.msra.mxu1 %v10143_v2  ;;  %9143 = vmatprep.subr.bf16.mxu0 %v10144_v15  ;;  %v10167_v28 = vld [vmem:[#allocation10 + $0x1b8] sm:$0xff]   ;;  %v10168_v13 = vld [vmem:[#allocation10 + $0x170] sm:$0xff]   ;;  %v10172_v22 = vld [vmem:[#allocation10 + $0x168] sm:$0xff]  }
0x10f8   :  { %9165 = vmatprep.subr.bf16.mxu1 %v10145_v6  ;;  %v10169_v29 = vld [vmem:[#allocation10 + $0x1f0] sm:$0xff]   ;;  %v10174_v23 = vld [vmem:[#allocation10 + $0x128] sm:$0xff]   ;;  %v10176_v62 = vld [vmem:[#allocation10 + $0x160] sm:$0xff]  }
0x10f9   :  { %v10170_v16 = vld [vmem:[#allocation10 + $0x130] sm:$0xff]   ;;  %v10177_v8 = vld [vmem:[#allocation10 + $0x1e0] sm:$0xff]   ;;  %v10180_v21 = vld [vmem:[#allocation10 + $0x158] sm:$0xff]  }
0x10fa   :  { %9144 = vmatpush3.bf16.msra.mxu0 %v10146_v18  ;;  %v10171_v17 = vld [vmem:[#allocation10 + $0x1b0] sm:$0xff]   ;;  %v10179_v39 = vld [vmem:[#allocation10 + $0x1a0] sm:$0xff]   ;;  %v10181_v0 = vld [vmem:[#allocation10 + $0x1d8] sm:$0xff]  }
0x10fb   :  { %9166 = vmatpush3.bf16.msra.mxu1 %v10147_v19  ;;  %9145 = vmatprep.subr.bf16.mxu0 %v10148_v20  ;;  %v10182_v1 = vld [vmem:[#allocation10 + $0x118] sm:$0xff]   ;;  %v10184_v3 = vld [vmem:[#allocation10 + $0x150] sm:$0xff]   ;;  %v10188_v46 = vld [vmem:[#allocation10 + $0x148] sm:$0xff]  }
0x10fc   :  { %9167 = vmatprep.subr.bf16.mxu1 %v10149_v56  ;;  %v10183_v54 = vld [vmem:[#allocation10 + $0x198] sm:$0xff]   ;;  %v10185_v42 = vld [vmem:[#allocation10 + $0x1d0] sm:$0xff]   ;;  %v10189_v31 = vld [vmem:[#allocation10 + $0x1c8] sm:$0xff]  }
0x10fd   :  { %v10186_v61 = vld [vmem:[#allocation10 + $0x110] sm:$0xff]   ;;  %v10190_v47 = vld [vmem:[#allocation10 + $0x108] sm:$0xff]   ;;  %v10192_v35 = vld [vmem:[#allocation10 + $0x140] sm:$0xff]  }
0x10fe   :  { %9146 = vmatpush3.bf16.msra.mxu0 %v10150_v57  ;;  %v10187_v43 = vld [vmem:[#allocation10 + $0x190] sm:$0xff]   ;;  %v10191_v34 = vld [vmem:[#allocation10 + $0x188] sm:$0xff]   ;;  %v10194_v48 = vld [vmem:[#allocation10 + $0x100] sm:$0xff]  }
0x10ff   :  { %9168 = vmatpush3.bf16.msra.mxu1 %v10151_v60  ;;  %9147 = vmatprep.subr.bf16.mxu0 %v10152_v10  ;;  %v10195_v50 = vld [vmem:[#allocation10 + $0x180] sm:$0xff]  }
0x1100   :  { %9169 = vmatprep.subr.bf16.mxu1 %v10153_v14  ;;  %v8951_v2 = vld [vmem:[#allocation12 + $0x27] ss:$0 sm:$0xff] }
0x1102   :  { %9148 = vmatpush3.bf16.msra.mxu0 %v10154_v53 }
0x1103   :  { %9170 = vmatpush3.bf16.msra.mxu1 %v10155_v44  ;;  %9149 = vmatprep.subr.bf16.mxu0 %v10156_v45 }
0x1104   :  { %9171 = vmatprep.subr.bf16.mxu1 %v10157_v4 }
0x1106   :  { %9150 = vmatpush3.bf16.msra.mxu0 %v10158_v52 }
0x1107   :  { %9172 = vmatpush3.bf16.msra.mxu1 %v10159_v40  ;;  %9151 = vmatprep.subr.bf16.mxu0 %v10160_v5 }
0x1108   :  { %9173 = vmatprep.subr.bf16.mxu1 %v10161_v32 }
0x110a   :  { %9152 = vmatpush3.bf16.msra.mxu0 %v10162_v33 }
0x110b   :  { %9174 = vmatpush3.bf16.msra.mxu1 %v10163_v36  ;;  %9181 = vmatprep.subr.bf16.mxu0 %v10164_v37 }
0x110c   :  { %9203 = vmatprep.subr.bf16.mxu1 %v10165_v24 }
0x110d   :  { %7912 = vmatmul.mubr.bf16.vlgmr.msra.gmra.mxu0 %v11335_v49  ;;  %v10173_v49 = vld [vmem:[#allocation10 + $0x1e8] sm:$0xff]  }
0x110e   :  { %7952 = vmatmul.mubr.bf16.vlgmr.msra.gmra.mxu1 %v11339_v41  ;;  %9182 = vmatpush3.bf16.msra.mxu0 %v10166_v25  ;;  %v10175_v41 = vld [vmem:[#allocation10 + $0x1a8] sm:$0xff]  }
0x110f   :  { %9204 = vmatpush3.bf16.msra.mxu1 %v10167_v28  ;;  %7991 = vmatprep.mubr.bf16.mxu0 %v11347_v58  ;;  %v10178_v58 = vld [vmem:[#allocation10 + $0x120] sm:$0xff]  }
0x1110   :  { %9183 = vmatprep.subr.bf16.mxu0 %v10168_v13  ;;  %8031 = vmatprep.mubr.bf16.mxu1 %v11355_v59  ;;  %v10193_v59 = vld [vmem:[#allocation10 + $0x1c0] sm:$0xff]  }
0x1111   :  { %9205 = vmatprep.subr.bf16.mxu1 %v10169_v29 }
0x1112   :  { %9184 = vmatpush3.bf16.msra.mxu0 %v10170_v16 }
0x1113   :  { %9206 = vmatpush3.bf16.msra.mxu1 %v10171_v17  ;;  %9185 = vmatprep.subr.bf16.mxu0 %v10172_v22 }
0x1114   :  { %9207 = vmatprep.subr.bf16.mxu1 %v10173_v49 }
0x1116   :  { %9186 = vmatpush3.bf16.msra.mxu0 %v10174_v23 }
0x1117   :  { %9208 = vmatpush3.bf16.msra.mxu1 %v10175_v41  ;;  %9187 = vmatprep.subr.bf16.mxu0 %v10176_v62 }
0x1118   :  { %9209 = vmatprep.subr.bf16.mxu1 %v10177_v8 }
0x111a   :  { %9188 = vmatpush3.bf16.msra.mxu0 %v10178_v58 }
0x111b   :  { %9210 = vmatpush3.bf16.msra.mxu1 %v10179_v39  ;;  %9189 = vmatprep.subr.bf16.mxu0 %v10180_v21 }
0x111c   :  { %9211 = vmatprep.subr.bf16.mxu1 %v10181_v0 }
0x111e   :  { %9190 = vmatpush3.bf16.msra.mxu0 %v10182_v1 }
0x111f   :  { %9212 = vmatpush3.bf16.msra.mxu1 %v10183_v54  ;;  %9191 = vmatprep.subr.bf16.mxu0 %v10184_v3 }
0x1120   :  { %9213 = vmatprep.subr.bf16.mxu1 %v10185_v42 }
0x1122   :  { %9192 = vmatpush3.bf16.msra.mxu0 %v10186_v61 }
0x1123   :  { %9214 = vmatpush3.bf16.msra.mxu1 %v10187_v43  ;;  %9193 = vmatprep.subr.bf16.mxu0 %v10188_v46 }
0x1124   :  { %9215 = vmatprep.subr.bf16.mxu1 %v10189_v31 }
0x1126   :  { %9194 = vmatpush3.bf16.msra.mxu0 %v10190_v47 }
0x1127   :  { %9216 = vmatpush3.bf16.msra.mxu1 %v10191_v34  ;;  %9195 = vmatprep.subr.bf16.mxu0 %v10192_v35 }
0x1128   :  { %9217 = vmatprep.subr.bf16.mxu1 %v10193_v59 }
0x112a   :  { %9196 = vmatpush3.bf16.msra.mxu0 %v10194_v48 }
0x112b   :  { %9218 = vmatpush3.bf16.msra.mxu1 %v10195_v50 }
0x112d   :  { %7992 = vmatmul.mubr.bf16.vlgmr.msra.gmra.mxu0 %v11345_v12 }
0x112e   :  { %8032 = vmatmul.mubr.bf16.vlgmr.msra.gmra.mxu1 %v11353_v7 }
0x11cd   :  { %v9153_v51 = vpop.f32.mrf.mxu0 }
0x11ce   :  { %v9175_v38 = vpop.f32.mrf.mxu1 }
0x11cf   :  { %v9154_v55 = vpop.f32.mrf.mxu0 }
0x11d0   :  { %v9176_v26 = vpop.f32.mrf.mxu1  ;;  %v9155_v27 = vadd.f32 %v9154_v55, %v9153_v51 }
0x11d1   :  { %v9156_v63 = vpop.f32.mrf.mxu0  ;;  %v9177_v6 = vadd.f32 %v9176_v26, %v9175_v38 }
0x11d2   :  { %v9178_v11 = vpop.f32.mrf.mxu1  ;;  %v7914_v15 = vadd.f32 %v9155_v27, %v8951_v2 }
0x11d3   :  { %v9157_v9 = vpop.f32.mrf.mxu0 }
0x11d4   :  { %v9179_v30 = vpop.f32.mrf.mxu1  ;;  %v7954_v56 = vadd.f32 %v9177_v6, %v7914_v15 }
0x11ed   :  { %v9197_v18 = vpop.f32.mrf.mxu0 }
0x11ee   :  { %v9219_v19 = vpop.f32.mrf.mxu1 }
0x11ef   :  { %v9198_v20 = vpop.f32.mrf.mxu0 }
0x11f0   :  { %v9199_v57 = vadd.f32 %v9198_v20, %v9197_v18  ;;  %v9220_v12 = vpop.f32.mrf.mxu1 }
0x11f1   :  { %v9200_v60 = vpop.f32.mrf.mxu0  ;;  %v9221_v10 = vadd.f32 %v9220_v12, %v9219_v19 }
0x11f2   :  { %v7994_v7 = vadd.f32 %v9199_v57, %v7954_v56  ;;  %v9222_v14 = vpop.f32.mrf.mxu1 }
0x11f3   :  { %v9201_v53 = vpop.f32.mrf.mxu0 }
0x11f4   :  { %v8034_v44 = vadd.f32 %v9221_v10, %v7994_v7  ;;  %v9223_v45 = vpop.f32.mrf.mxu1 }
0x11f6   :  { %8040 = vst.msk [vmem:[%s11377_s11] sm:$0xff] %vm8039_vm1, %v8034_v44 }
0x11f7   :  { %8045 = vsyncpa [#allocation13], 1 }
0x11f8   :  { %8046 = vsyncmov [#allocation11] }
0x11fb   :  { %s8047_s7 = vpop.sfrf %8046 }
0x11fc   :  { %p9016_p12 = scmp.ne.s32.totalorder %s8047_s7, 0 }
0x11fe   :  { %8051 = shalt.err (%p9016_p12)  }
0x11ff   :  { %8053 = vsyncmov [#allocation11 + $0x1] }
0x1202   :  { %s8054_s25 = vpop.sfrf %8053 }
0x1203   :  { %p9017_p13 = scmp.ne.s32.totalorder %s8054_s25, 0 }
0x1205   :  { %8058 = shalt.err (%p9017_p13)  }
0x1206   :  { %8060 = vsyncmov [#allocation11 + $0x2] }
0x1209   :  { %s8061_s26 = vpop.sfrf %8060 }
0x120a   :  { %p9018_p0 = scmp.ne.s32.totalorder %s8061_s26, 0 }
0x120c   :  { %8065 = shalt.err (%p9018_p0)  }
0x120d   :  { %8067 = vsyncmov [#allocation11 + $0x3] }
0x1210   :  { %s8068_s17 = vpop.sfrf %8067 }
0x1211   :  { %p9019_p1 = scmp.ne.s32.totalorder %s8068_s17, 0 }
0x1213   :  { %8072 = shalt.err (%p9019_p1)  }
0x1214   :  { %8074 = vsyncmov [#allocation11 + $0x4] }
0x1217   :  { %s8075_s27 = vpop.sfrf %8074 }
0x1218   :  { %p9020_p2 = scmp.ne.s32.totalorder %s8075_s27, 0 }
0x121a   :  { %8079 = shalt.err (%p9020_p2)  }
0x121b   :  { %8081 = vsyncmov [#allocation11 + $0x5] }
0x121e   :  { %s8082_s11 = vpop.sfrf %8081 }
0x121f   :  { %p9021_p3 = scmp.ne.s32.totalorder %s8082_s11, 0 }
0x1221   :  { %8086 = shalt.err (%p9021_p3)  }
0x1222   :  { %8088 = vsyncmov [#allocation11 + $0x6] }
0x1225   :  { %s8089_s28 = vpop.sfrf %8088 }
0x1226   :  { %p9022_p4 = scmp.ne.s32.totalorder %s8089_s28, 0 }
0x1228   :  { %8093 = shalt.err (%p9022_p4)  }
0x1229   :  { %8095 = vsyncmov [#allocation11 + $0x7] }
0x122c   :  { %s8096_s29 = vpop.sfrf %8095 }
0x122d   :  { %p9023_p5 = scmp.ne.s32.totalorder %s8096_s29, 0 }
0x122f   :  { %8100 = shalt.err (%p9023_p5)  }
0x1230   :  { %8102 = vsyncmov [#allocation11 + $0x8] }
0x1233   :  { %s8103_s1 = vpop.sfrf %8102 }
0x1234   :  { %p9024_p6 = scmp.ne.s32.totalorder %s8103_s1, 0 }
0x1236   :  { %8107 = shalt.err (%p9024_p6)  }

</bundles_post_ra>
